<compile_context>
chip_gen: v7x
topology: tpu7x:2x2x1
jax: 0.10.0
libtpu: 0.0.40
codegen_flags: <defaults>
</compile_context>

<pallas_src>
import functools

import jax
import jax.numpy as jnp
from jax.experimental import pallas as pl
from jax.experimental.pallas import tpu as pltpu

_EPS = 1e-5
_MAX_TM = 512                       # rows per M tile
_VMEM_LIMIT = 32 * 1024 * 1024      # fits v7x (64 MiB physical) and v5e/v6e


def _round_up(x, m):
    return (x + m - 1) // m * m


def _pick_tiling(m):
    """Return (M_pad, TM) with M_pad % TM == 0 and TM % 8 == 0."""
    m8 = _round_up(m, 8)
    if m8 <= _MAX_TM:
        return m8, m8
    return _round_up(m, _MAX_TM), _MAX_TM


# ----------------------------------------------------------------------------
# Pallas kernels
# ----------------------------------------------------------------------------
def _gemm_act_kernel(a_ref, b_ref, o_ref, *, act):
    """bf16 GEMM tile -> f32 accum -> optional LeakyReLU -> bf16 out."""
    y = jnp.dot(a_ref[...], b_ref[...], preferred_element_type=jnp.float32)
    if act == "leaky":
        y = jnp.where(y > 0, y, 0.2 * y)
    o_ref[...] = y.astype(o_ref.dtype)


def _gemm_stats_kernel(a_ref, b_ref, y_ref, sum_ref, sq_ref, *, m_true, tm):
    """bf16 GEMM tile; also accumulate per-channel sum / sum-of-squares across
    all M tiles (padded rows masked out) for training-mode BatchNorm stats."""
    i = pl.program_id(0)
    y = jnp.dot(a_ref[...], b_ref[...], preferred_element_type=jnp.float32)
    y_ref[...] = y

    @pl.when(i == 0)
    def _():
        sum_ref[...] = jnp.zeros_like(sum_ref)
        sq_ref[...] = jnp.zeros_like(sq_ref)

    row = jax.lax.broadcasted_iota(jnp.int32, (tm, 1), 0) + i * tm
    ym = jnp.where(row < m_true, y, 0.0)
    sum_ref[...] += jnp.sum(ym, axis=0, keepdims=True)
    sq_ref[...] += jnp.sum(ym * ym, axis=0, keepdims=True)


def _bn_leaky_kernel(y_ref, scale_ref, shift_ref, o_ref):
    """Apply precomputed per-channel affine (folded BN) + LeakyReLU(0.2)."""
    y = y_ref[...] * scale_ref[...] + shift_ref[...]
    o_ref[...] = jnp.where(y > 0, y, 0.2 * y).astype(o_ref.dtype)


def _matvec_sigmoid_kernel(x_ref, w_ref, o_ref):
    """Final Conv(Cin->1,4,1,0): VPU multiply + lane reduction + sigmoid."""
    x = x_ref[...].astype(jnp.float32)
    w = w_ref[...].astype(jnp.float32)
    y = jnp.sum(x * w, axis=-1, keepdims=True)
    o_ref[...] = 1.0 / (1.0 + jnp.exp(-y))


# ----------------------------------------------------------------------------
# Glue: im2col (plain JAX) and weight layout conversion
# ----------------------------------------------------------------------------
def im2col(x_nhwc, k, stride, pad):
    """x: (N, H, W, C) -> (N*Ho*Wo, k*k*C), patch feature order (kh, kw, c)."""
    N, H, W, C = x_nhwc.shape
    xp = jnp.pad(x_nhwc, ((0, 0), (pad, pad), (pad, pad), (0, 0)))
    Ho = (H + 2 * pad - k) // stride + 1
    Wo = (W + 2 * pad - k) // stride + 1
    slices = []
    for kh in range(k):
        for kw in range(k):
            slices.append(
                xp[:, kh:kh + stride * Ho:stride, kw:kw + stride * Wo:stride, :])
    p = jnp.stack(slices, axis=3)                 # (N, Ho, Wo, k*k, C)
    p = p.reshape(N * Ho * Wo, k * k * C)
    return p, (N, Ho, Wo)


def conv_weight_to_mat(w_oihw):
    """PyTorch (Cout, Cin, kh, kw) -> (kh*kw*Cin, Cout) matching im2col order."""
    Cout, Cin, kh, kw = w_oihw.shape
    return jnp.transpose(w_oihw, (2, 3, 1, 0)).reshape(kh * kw * Cin, Cout)


# ----------------------------------------------------------------------------
# Layer wrappers
# ----------------------------------------------------------------------------
def conv_layer(x_nhwc, w_oihw, *, stride, pad, gamma=None, beta=None,
               use_bn=False, act="leaky"):
    """Conv(4x4, bias=False) [+ BatchNorm(batch stats)] + LeakyReLU(0.2)."""
    patches, (N, Ho, Wo) = im2col(x_nhwc, 4, stride, pad)
    M, K = patches.shape
    Cout = w_oihw.shape[0]

    Kp = _round_up(K, 128)
    Cp = _round_up(Cout, 128)
    M_pad, TM = _pick_tiling(M)
    grid = (M_pad // TM,)

    patches = jnp.pad(patches, ((0, M_pad - M), (0, Kp - K))).astype(jnp.bfloat16)
    w_mat = conv_weight_to_mat(w_oihw)
    w_mat = jnp.pad(w_mat, ((0, Kp - K), (0, Cp - Cout))).astype(jnp.bfloat16)

    a_spec = pl.BlockSpec((TM, Kp), lambda i: (i, 0))
    b_spec = pl.BlockSpec((Kp, Cp), lambda i: (0, 0))
    o_spec = pl.BlockSpec((TM, Cp), lambda i: (i, 0))
    vec_spec = pl.BlockSpec((1, Cp), lambda i: (0, 0))

    if not use_bn:
        y = pl.pallas_call(
            functools.partial(_gemm_act_kernel, act=act),
            out_shape=jax.ShapeDtypeStruct((M_pad, Cp), jnp.bfloat16),
            grid=grid,
            in_specs=[a_spec, b_spec],
            out_specs=o_spec,
            compiler_params=pltpu.CompilerParams(
                dimension_semantics=("parallel",),
                vmem_limit_bytes=_VMEM_LIMIT),
        )(patches, w_mat)
    else:
        # Pass 1: tiled GEMM + cross-tile per-channel sum / sum-of-squares.
        y_pre, s, sq = pl.pallas_call(
            functools.partial(_gemm_stats_kernel, m_true=M, tm=TM),
            out_shape=(jax.ShapeDtypeStruct((M_pad, Cp), jnp.float32),
                       jax.ShapeDtypeStruct((1, Cp), jnp.float32),
                       jax.ShapeDtypeStruct((1, Cp), jnp.float32)),
            grid=grid,
            in_specs=[a_spec, b_spec],
            out_specs=(o_spec, vec_spec, vec_spec),
            compiler_params=pltpu.CompilerParams(
                dimension_semantics=("arbitrary",),
                vmem_limit_bytes=_VMEM_LIMIT),
        )(patches, w_mat)

        # Tiny (Cout,)-sized math in plain JAX: fold BN into scale/shift.
        mean = s[0, :Cout] / M
        var = jnp.maximum(sq[0, :Cout] / M - mean * mean, 0.0)  # biased var
        scale = gamma * jax.lax.rsqrt(var + _EPS)
        shift = beta - mean * scale
        scale_p = jnp.zeros((1, Cp), jnp.float32).at[0, :Cout].set(scale)
        shift_p = jnp.zeros((1, Cp), jnp.float32).at[0, :Cout].set(shift)

        # Pass 2: tiled BN-apply + LeakyReLU.
        y = pl.pallas_call(
            _bn_leaky_kernel,
            out_shape=jax.ShapeDtypeStruct((M_pad, Cp), jnp.bfloat16),
            grid=grid,
            in_specs=[o_spec, vec_spec, vec_spec],
            out_specs=o_spec,
            compiler_params=pltpu.CompilerParams(
                dimension_semantics=("parallel",),
                vmem_limit_bytes=_VMEM_LIMIT),
        )(y_pre, scale_p, shift_p)

    return y[:M, :Cout].reshape(N, Ho, Wo, Cout)


def final_conv_sigmoid(x_nhwc, w_oihw):
    """Conv(Cin -> 1, 4, 1, 0) + Sigmoid as a matvec (VPU reduction)."""
    patches, (N, Ho, Wo) = im2col(x_nhwc, 4, 1, 0)   # Ho = Wo = 1
    M, K = patches.shape
    Kp = _round_up(K, 128)
    M8 = _round_up(M, 8)

    patches = jnp.pad(patches, ((0, M8 - M), (0, Kp - K))).astype(jnp.bfloat16)
    w_row = conv_weight_to_mat(w_oihw).T                      # (1, K)
    w_row = jnp.pad(w_row, ((0, 0), (0, Kp - K))).astype(jnp.bfloat16)

    y = pl.pallas_call(
        _matvec_sigmoid_kernel,
        out_shape=jax.ShapeDtypeStruct((M8, 1), jnp.float32),
        grid=(1,),
        in_specs=[pl.BlockSpec((M8, Kp), lambda i: (0, 0)),
                  pl.BlockSpec((1, Kp), lambda i: (0, 0))],
        out_specs=pl.BlockSpec((M8, 1), lambda i: (0, 0)),
        compiler_params=pltpu.CompilerParams(vmem_limit_bytes=_VMEM_LIMIT),
    )(patches, w_row)

    return y[:M].reshape(N, Ho, Wo, 1)


# ----------------------------------------------------------------------------
# Discriminator forward
# ----------------------------------------------------------------------------
def init_params(key, ndf, nc):
    ks = jax.random.split(key, 8)
    std = 0.02  # DCGAN-style init
    return {
        "w1": jax.random.normal(ks[0], (ndf, nc, 4, 4), jnp.float32) * std,
        "w2": jax.random.normal(ks[1], (ndf * 2, ndf, 4, 4), jnp.float32) * std,
        "w3": jax.random.normal(ks[2], (ndf * 4, ndf * 2, 4, 4), jnp.float32) * std,
        "w4": jax.random.normal(ks[3], (ndf * 8, ndf * 4, 4, 4), jnp.float32) * std,
        "w5": jax.random.normal(ks[4], (1, ndf * 8, 4, 4), jnp.float32) * std,
        "g2": 1.0 + jax.random.normal(ks[5], (ndf * 2,), jnp.float32) * std,
        "b2": jnp.zeros((ndf * 2,), jnp.float32),
        "g3": 1.0 + jax.random.normal(ks[6], (ndf * 4,), jnp.float32) * std,
        "b3": jnp.zeros((ndf * 4,), jnp.float32),
        "g4": 1.0 + jax.random.normal(ks[7], (ndf * 8,), jnp.float32) * std,
        "b4": jnp.zeros((ndf * 8,), jnp.float32),
    }


def discriminator_forward(params, x_nchw):
    # NCHW (PyTorch) -> NHWC (kernel layout); bf16 activations feed the MXU.
    x = jnp.transpose(x_nchw, (0, 2, 3, 1)).astype(jnp.bfloat16)

    # Conv(nc->ndf, 4, 2, 1) + LeakyReLU(0.2)
    x = conv_layer(x, params["w1"], stride=2, pad=1, act="leaky")
    # Conv(ndf->2ndf) + BN + LeakyReLU
    x = conv_layer(x, params["w2"], stride=2, pad=1, use_bn=True,
                   gamma=params["g2"], beta=params["b2"])
    # Conv(2ndf->4ndf) + BN + LeakyReLU
    x = conv_layer(x, params["w3"], stride=2, pad=1, use_bn=True,
                   gamma=params["g3"], beta=params["b3"])
    # Conv(4ndf->8ndf) + BN + LeakyReLU
    x = conv_layer(x, params["w4"], stride=2, pad=1, use_bn=True,
                   gamma=params["g4"], beta=params["b4"])
    # Conv(8ndf->1, 4, 1, 0) + Sigmoid (matvec path, no MXU waste)
    x = final_conv_sigmoid(x, params["w5"])

    # NHWC -> NCHW, final shape (N, 1, 1, 1) like the PyTorch module
    return jnp.transpose(x, (0, 3, 1, 2))


if __name__ == "__main__":
    key = jax.random.PRNGKey(0)
    k_param, k_x = jax.random.split(key)

    ndf, nc, batch = 8, 3, 2
    # DCGAN discriminator requires 64x64 input so the last conv yields 1x1.
    x = jax.random.normal(k_x, (batch, nc, 64, 64), jnp.float32)
    params = init_params(k_param, ndf, nc)

    fwd = jax.jit(discriminator_forward)
    out = jax.block_until_ready(fwd(params, x))

    assert out.shape == (batch, 1, 1, 1)
    assert bool(jnp.all(jnp.isfinite(out)))
    assert bool(jnp.all((out >= 0.0) & (out <= 1.0)))
    print("KERNEL_OK")
</pallas_src>

<mosaic_0001>
module attributes {stable_mosaic.version = 11 : i64} {
  func.func @_gemm_act_kernel(%arg0: i32, %arg1: memref<512x128xbf16, #tpu.memory_space<vmem>>, %arg2: memref<128x128xbf16, #tpu.memory_space<vmem>>, %arg3: memref<512x128xbf16, #tpu.memory_space<vmem>>) attributes {dimension_semantics = [#tpu.dimension_semantics<parallel>], iteration_bounds = array<i64: 4>, scalar_prefetch = 0 : i64, scratch_operands = 0 : i64, tpu.core_type = #tpu.core_type<tc>, window_params = [{transform_indices = @transform_0, window_bounds = array<i64: 512, 128>}, {pipeline_mode = #tpu.pipeline_mode<synchronous>, transform_indices = @transform_1, window_bounds = array<i64: 128, 128>}, {transform_indices = @transform_2, window_bounds = array<i64: 512, 128>}]} {
    %c0 = arith.constant 0 : index
    %c0_0 = arith.constant 0 : index
    %0 = vector.load %arg1[%c0, %c0_0] : memref<512x128xbf16, #tpu.memory_space<vmem>>, vector<512x128xbf16>
    %c0_1 = arith.constant 0 : index
    %c0_2 = arith.constant 0 : index
    %1 = vector.load %arg2[%c0_1, %c0_2] : memref<128x128xbf16, #tpu.memory_space<vmem>>, vector<128x128xbf16>
    %cst = arith.constant dense<0.000000e+00> : vector<512x128xf32>
    %2 = tpu.matmul %0, %1, %cst {dimension_numbers = #tpu.dot_dimension_numbers<[1], [0], [0], [1], [0, 0, 1, 1], [], []>} : vector<512x128xbf16>, vector<128x128xbf16>, vector<512x128xf32> -> vector<512x128xf32>
    %cst_3 = arith.constant 0.000000e+00 : f32
    %3 = vector.broadcast %cst_3 : f32 to vector<512x128xf32>
    %4 = arith.cmpf ogt, %2, %3 : vector<512x128xf32>
    %cst_4 = arith.constant 2.000000e-01 : f32
    %5 = vector.broadcast %cst_4 : f32 to vector<512x128xf32>
    %6 = arith.mulf %5, %2 : vector<512x128xf32>
    %7 = arith.select %4, %2, %6 : vector<512x128xi1>, vector<512x128xf32>
    %8 = arith.truncf %7 : vector<512x128xf32> to vector<512x128xbf16>
    %c0_5 = arith.constant 0 : index
    %c0_6 = arith.constant 0 : index
    %9 = vector.load %arg3[%c0_5, %c0_6] : memref<512x128xbf16, #tpu.memory_space<vmem>>, vector<512x128xbf16>
    tpu.vector_store %arg3[%c0_5, %c0_6], %8 {strides = array<i32>} : memref<512x128xbf16, #tpu.memory_space<vmem>>, vector<512x128xbf16>,
    return
  }
  func.func @transform_0(%arg0: i32) -> (i32, i32) {
    %c0_i32 = arith.constant 0 : i32
    %c0_i32_0 = arith.constant 0 : i32
    return %arg0, %c0_i32 : i32, i32
  }
  func.func @transform_1(%arg0: i32) -> (i32, i32) {
    %c0_i32 = arith.constant 0 : i32
    %c0_i32_0 = arith.constant 0 : i32
    %c0_i32_1 = arith.constant 0 : i32
    return %c0_i32, %c0_i32_0 : i32, i32
  }
  func.func @transform_2(%arg0: i32) -> (i32, i32) {
    %c0_i32 = arith.constant 0 : i32
    %c0_i32_0 = arith.constant 0 : i32
    return %arg0, %c0_i32 : i32, i32
  }
}

module attributes {stable_mosaic.version = 11 : i64} {
  func.func @_gemm_stats_kernel(%arg0: i32, %arg1: memref<512x128xbf16, #tpu.memory_space<vmem>>, %arg2: memref<128x128xbf16, #tpu.memory_space<vmem>>, %arg3: memref<512x128xf32, #tpu.memory_space<vmem>>, %arg4: memref<1x128xf32, #tpu.memory_space<vmem>>, %arg5: memref<1x128xf32, #tpu.memory_space<vmem>>) attributes {dimension_semantics = [#tpu.dimension_semantics<arbitrary>], iteration_bounds = array<i64: 1>, scalar_prefetch = 0 : i64, scratch_operands = 0 : i64, tpu.core_type = #tpu.core_type<tc>, window_params = [{transform_indices = @transform_0, window_bounds = array<i64: 512, 128>}, {pipeline_mode = #tpu.pipeline_mode<synchronous>, transform_indices = @transform_1, window_bounds = array<i64: 128, 128>}, {transform_indices = @transform_2, window_bounds = array<i64: 512, 128>}, {pipeline_mode = #tpu.pipeline_mode<synchronous>, transform_indices = @transform_3, window_bounds = array<i64: 1, 128>}, {pipeline_mode = #tpu.pipeline_mode<synchronous>, transform_indices = @transform_4, window_bounds = array<i64: 1, 128>}]} {
    %c0 = arith.constant 0 : index
    %c0_0 = arith.constant 0 : index
    %0 = vector.load %arg1[%c0, %c0_0] : memref<512x128xbf16, #tpu.memory_space<vmem>>, vector<512x128xbf16>
    %c0_1 = arith.constant 0 : index
    %c0_2 = arith.constant 0 : index
    %1 = vector.load %arg2[%c0_1, %c0_2] : memref<128x128xbf16, #tpu.memory_space<vmem>>, vector<128x128xbf16>
    %cst = arith.constant dense<0.000000e+00> : vector<512x128xf32>
    %2 = tpu.matmul %0, %1, %cst {dimension_numbers = #tpu.dot_dimension_numbers<[1], [0], [0], [1], [0, 0, 1, 1], [], []>} : vector<512x128xbf16>, vector<128x128xbf16>, vector<512x128xf32> -> vector<512x128xf32>
    %c0_3 = arith.constant 0 : index
    %c0_4 = arith.constant 0 : index
    %3 = vector.load %arg3[%c0_3, %c0_4] : memref<512x128xf32, #tpu.memory_space<vmem>>, vector<512x128xf32>
    tpu.vector_store %arg3[%c0_3, %c0_4], %2 {strides = array<i32>} : memref<512x128xf32, #tpu.memory_space<vmem>>, vector<512x128xf32>,
    %c0_i32 = arith.constant 0 : i32
    %4 = arith.cmpi eq, %arg0, %c0_i32 : i32
    %5 = arith.extui %4 : i1 to i32
    %c0_i32_5 = arith.constant 0 : i32
    %6 = arith.cmpi ne, %5, %c0_i32_5 : i32
    scf.if %6 {
      %cst_18 = arith.constant 0.000000e+00 : f32
      %28 = vector.broadcast %cst_18 : f32 to vector<1x128xf32>
      %c0_19 = arith.constant 0 : index
      %c0_20 = arith.constant 0 : index
      %29 = vector.load %arg4[%c0_19, %c0_20] : memref<1x128xf32, #tpu.memory_space<vmem>>, vector<1x128xf32>
      tpu.vector_store %arg4[%c0_19, %c0_20], %28 {strides = array<i32>} : memref<1x128xf32, #tpu.memory_space<vmem>>, vector<1x128xf32>,
      %cst_21 = arith.constant 0.000000e+00 : f32
      %30 = vector.broadcast %cst_21 : f32 to vector<1x128xf32>
      %c0_22 = arith.constant 0 : index
      %c0_23 = arith.constant 0 : index
      %31 = vector.load %arg5[%c0_22, %c0_23] : memref<1x128xf32, #tpu.memory_space<vmem>>, vector<1x128xf32>
      tpu.vector_store %arg5[%c0_22, %c0_23], %30 {strides = array<i32>} : memref<1x128xf32, #tpu.memory_space<vmem>>, vector<1x128xf32>,
    } else {
    }
    %7 = tpu.iota {dimensions = array<i32: 0>} : vector<512x1xi32>
    %c512_i32 = arith.constant 512 : i32
    %8 = arith.muli %arg0, %c512_i32 : i32
    %9 = vector.broadcast %8 : i32 to vector<512x1xi32>
    %10 = arith.addi %7, %9 : vector<512x1xi32>
    %c512_i32_6 = arith.constant 512 : i32
    %11 = vector.broadcast %c512_i32_6 : i32 to vector<512x1xi32>
    %12 = arith.cmpi slt, %10, %11 : vector<512x1xi32>
    %cst_7 = arith.constant 0.000000e+00 : f32
    %13 = vector.shape_cast %12 : vector<512x1xi1> to vector<512x1xi1>
    %14 = vector.broadcast %13 : vector<512x1xi1> to vector<512x128xi1>
    %15 = vector.broadcast %cst_7 : f32 to vector<512x128xf32>
    %16 = arith.select %14, %2, %15 : vector<512x128xi1>, vector<512x128xf32>
    %c0_8 = arith.constant 0 : index
    %c0_9 = arith.constant 0 : index
    %17 = vector.load %arg4[%c0_8, %c0_9] : memref<1x128xf32, #tpu.memory_space<vmem>>, vector<1x128xf32>
    %cst_10 = arith.constant dense<0.000000e+00> : vector<128xf32>
    %18 = vector.multi_reduction <add>, %16, %cst_10 [0] : vector<512x128xf32> to vector<128xf32>
    %19 = vector.shape_cast %18 : vector<128xf32> to vector<1x128xf32>
    %20 = arith.addf %17, %19 : vector<1x128xf32>
    %c0_11 = arith.constant 0 : index
    %c0_12 = arith.constant 0 : index
    %21 = vector.load %arg4[%c0_11, %c0_12] : memref<1x128xf32, #tpu.memory_space<vmem>>, vector<1x128xf32>
    tpu.vector_store %arg4[%c0_11, %c0_12], %20 {strides = array<i32>} : memref<1x128xf32, #tpu.memory_space<vmem>>, vector<1x128xf32>,
    %c0_13 = arith.constant 0 : index
    %c0_14 = arith.constant 0 : index
    %22 = vector.load %arg5[%c0_13, %c0_14] : memref<1x128xf32, #tpu.memory_space<vmem>>, vector<1x128xf32>
    %23 = arith.mulf %16, %16 : vector<512x128xf32>
    %cst_15 = arith.constant dense<0.000000e+00> : vector<128xf32>
    %24 = vector.multi_reduction <add>, %23, %cst_15 [0] : vector<512x128xf32> to vector<128xf32>
    %25 = vector.shape_cast %24 : vector<128xf32> to vector<1x128xf32>
    %26 = arith.addf %22, %25 : vector<1x128xf32>
    %c0_16 = arith.constant 0 : index
    %c0_17 = arith.constant 0 : index
    %27 = vector.load %arg5[%c0_16, %c0_17] : memref<1x128xf32, #tpu.memory_space<vmem>>, vector<1x128xf32>
    tpu.vector_store %arg5[%c0_16, %c0_17], %26 {strides = array<i32>} : memref<1x128xf32, #tpu.memory_space<vmem>>, vector<1x128xf32>,
    return
  }
  func.func @transform_0(%arg0: i32) -> (i32, i32) {
    %c0_i32 = arith.constant 0 : i32
    %c0_i32_0 = arith.constant 0 : i32
    return %arg0, %c0_i32 : i32, i32
  }
  func.func @transform_1(%arg0: i32) -> (i32, i32) {
    %c0_i32 = arith.constant 0 : i32
    %c0_i32_0 = arith.constant 0 : i32
    %c0_i32_1 = arith.constant 0 : i32
    return %c0_i32, %c0_i32_0 : i32, i32
  }
  func.func @transform_2(%arg0: i32) -> (i32, i32) {
    %c0_i32 = arith.constant 0 : i32
    %c0_i32_0 = arith.constant 0 : i32
    return %arg0, %c0_i32 : i32, i32
  }
  func.func @transform_3(%arg0: i32) -> (i32, i32) {
    %c0_i32 = arith.constant 0 : i32
    %c0_i32_0 = arith.constant 0 : i32
    %c0_i32_1 = arith.constant 0 : i32
    return %c0_i32, %c0_i32_0 : i32, i32
  }
  func.func @transform_4(%arg0: i32) -> (i32, i32) {
    %c0_i32 = arith.constant 0 : i32
    %c0_i32_0 = arith.constant 0 : i32
    %c0_i32_1 = arith.constant 0 : i32
    return %c0_i32, %c0_i32_0 : i32, i32
  }
}

module attributes {stable_mosaic.version = 11 : i64} {
  func.func @_bn_leaky_kernel(%arg0: i32, %arg1: memref<512x128xf32, #tpu.memory_space<vmem>>, %arg2: memref<1x128xf32, #tpu.memory_space<vmem>>, %arg3: memref<1x128xf32, #tpu.memory_space<vmem>>, %arg4: memref<512x128xbf16, #tpu.memory_space<vmem>>) attributes {dimension_semantics = [#tpu.dimension_semantics<parallel>], iteration_bounds = array<i64: 1>, scalar_prefetch = 0 : i64, scratch_operands = 0 : i64, tpu.core_type = #tpu.core_type<tc>, window_params = [{transform_indices = @transform_0, window_bounds = array<i64: 512, 128>}, {pipeline_mode = #tpu.pipeline_mode<synchronous>, transform_indices = @transform_1, window_bounds = array<i64: 1, 128>}, {pipeline_mode = #tpu.pipeline_mode<synchronous>, transform_indices = @transform_2, window_bounds = array<i64: 1, 128>}, {transform_indices = @transform_3, window_bounds = array<i64: 512, 128>}]} {
    %c0 = arith.constant 0 : index
    %c0_0 = arith.constant 0 : index
    %0 = vector.load %arg1[%c0, %c0_0] : memref<512x128xf32, #tpu.memory_space<vmem>>, vector<512x128xf32>
    %c0_1 = arith.constant 0 : index
    %c0_2 = arith.constant 0 : index
    %1 = vector.load %arg2[%c0_1, %c0_2] : memref<1x128xf32, #tpu.memory_space<vmem>>, vector<1x128xf32>
    %2 = vector.broadcast %1 : vector<1x128xf32> to vector<512x128xf32>
    %3 = arith.mulf %0, %2 : vector<512x128xf32>
    %c0_3 = arith.constant 0 : index
    %c0_4 = arith.constant 0 : index
    %4 = vector.load %arg3[%c0_3, %c0_4] : memref<1x128xf32, #tpu.memory_space<vmem>>, vector<1x128xf32>
    %5 = vector.broadcast %4 : vector<1x128xf32> to vector<512x128xf32>
    %6 = arith.addf %3, %5 : vector<512x128xf32>
    %cst = arith.constant 0.000000e+00 : f32
    %7 = vector.broadcast %cst : f32 to vector<512x128xf32>
    %8 = arith.cmpf ogt, %6, %7 : vector<512x128xf32>
    %cst_5 = arith.constant 2.000000e-01 : f32
    %9 = vector.broadcast %cst_5 : f32 to vector<512x128xf32>
    %10 = arith.mulf %9, %6 : vector<512x128xf32>
    %11 = arith.select %8, %6, %10 : vector<512x128xi1>, vector<512x128xf32>
    %12 = arith.truncf %11 : vector<512x128xf32> to vector<512x128xbf16>
    %c0_6 = arith.constant 0 : index
    %c0_7 = arith.constant 0 : index
    %13 = vector.load %arg4[%c0_6, %c0_7] : memref<512x128xbf16, #tpu.memory_space<vmem>>, vector<512x128xbf16>
    tpu.vector_store %arg4[%c0_6, %c0_7], %12 {strides = array<i32>} : memref<512x128xbf16, #tpu.memory_space<vmem>>, vector<512x128xbf16>,
    return
  }
  func.func @transform_0(%arg0: i32) -> (i32, i32) {
    %c0_i32 = arith.constant 0 : i32
    %c0_i32_0 = arith.constant 0 : i32
    return %arg0, %c0_i32 : i32, i32
  }
  func.func @transform_1(%arg0: i32) -> (i32, i32) {
    %c0_i32 = arith.constant 0 : i32
    %c0_i32_0 = arith.constant 0 : i32
    %c0_i32_1 = arith.constant 0 : i32
    return %c0_i32, %c0_i32_0 : i32, i32
  }
  func.func @transform_2(%arg0: i32) -> (i32, i32) {
    %c0_i32 = arith.constant 0 : i32
    %c0_i32_0 = arith.constant 0 : i32
    %c0_i32_1 = arith.constant 0 : i32
    return %c0_i32, %c0_i32_0 : i32, i32
  }
  func.func @transform_3(%arg0: i32) -> (i32, i32) {
    %c0_i32 = arith.constant 0 : i32
    %c0_i32_0 = arith.constant 0 : i32
    return %arg0, %c0_i32 : i32, i32
  }
}

module attributes {stable_mosaic.version = 11 : i64} {
  func.func @_gemm_stats_kernel(%arg0: i32, %arg1: memref<128x256xbf16, #tpu.memory_space<vmem>>, %arg2: memref<256x128xbf16, #tpu.memory_space<vmem>>, %arg3: memref<128x128xf32, #tpu.memory_space<vmem>>, %arg4: memref<1x128xf32, #tpu.memory_space<vmem>>, %arg5: memref<1x128xf32, #tpu.memory_space<vmem>>) attributes {dimension_semantics = [#tpu.dimension_semantics<arbitrary>], iteration_bounds = array<i64: 1>, scalar_prefetch = 0 : i64, scratch_operands = 0 : i64, tpu.core_type = #tpu.core_type<tc>, window_params = [{transform_indices = @transform_0, window_bounds = array<i64: 128, 256>}, {pipeline_mode = #tpu.pipeline_mode<synchronous>, transform_indices = @transform_1, window_bounds = array<i64: 256, 128>}, {transform_indices = @transform_2, window_bounds = array<i64: 128, 128>}, {pipeline_mode = #tpu.pipeline_mode<synchronous>, transform_indices = @transform_3, window_bounds = array<i64: 1, 128>}, {pipeline_mode = #tpu.pipeline_mode<synchronous>, transform_indices = @transform_4, window_bounds = array<i64: 1, 128>}]} {
    %c0 = arith.constant 0 : index
    %c0_0 = arith.constant 0 : index
    %0 = vector.load %arg1[%c0, %c0_0] : memref<128x256xbf16, #tpu.memory_space<vmem>>, vector<128x256xbf16>
    %c0_1 = arith.constant 0 : index
    %c0_2 = arith.constant 0 : index
    %1 = vector.load %arg2[%c0_1, %c0_2] : memref<256x128xbf16, #tpu.memory_space<vmem>>, vector<256x128xbf16>
    %cst = arith.constant dense<0.000000e+00> : vector<128x128xf32>
    %2 = tpu.matmul %0, %1, %cst {dimension_numbers = #tpu.dot_dimension_numbers<[1], [0], [0], [1], [0, 0, 1, 1], [], []>} : vector<128x256xbf16>, vector<256x128xbf16>, vector<128x128xf32> -> vector<128x128xf32>
    %c0_3 = arith.constant 0 : index
    %c0_4 = arith.constant 0 : index
    %3 = vector.load %arg3[%c0_3, %c0_4] : memref<128x128xf32, #tpu.memory_space<vmem>>, vector<128x128xf32>
    tpu.vector_store %arg3[%c0_3, %c0_4], %2 {strides = array<i32>} : memref<128x128xf32, #tpu.memory_space<vmem>>, vector<128x128xf32>,
    %c0_i32 = arith.constant 0 : i32
    %4 = arith.cmpi eq, %arg0, %c0_i32 : i32
    %5 = arith.extui %4 : i1 to i32
    %c0_i32_5 = arith.constant 0 : i32
    %6 = arith.cmpi ne, %5, %c0_i32_5 : i32
    scf.if %6 {
      %cst_18 = arith.constant 0.000000e+00 : f32
      %28 = vector.broadcast %cst_18 : f32 to vector<1x128xf32>
      %c0_19 = arith.constant 0 : index
      %c0_20 = arith.constant 0 : index
      %29 = vector.load %arg4[%c0_19, %c0_20] : memref<1x128xf32, #tpu.memory_space<vmem>>, vector<1x128xf32>
      tpu.vector_store %arg4[%c0_19, %c0_20], %28 {strides = array<i32>} : memref<1x128xf32, #tpu.memory_space<vmem>>, vector<1x128xf32>,
      %cst_21 = arith.constant 0.000000e+00 : f32
      %30 = vector.broadcast %cst_21 : f32 to vector<1x128xf32>
      %c0_22 = arith.constant 0 : index
      %c0_23 = arith.constant 0 : index
      %31 = vector.load %arg5[%c0_22, %c0_23] : memref<1x128xf32, #tpu.memory_space<vmem>>, vector<1x128xf32>
      tpu.vector_store %arg5[%c0_22, %c0_23], %30 {strides = array<i32>} : memref<1x128xf32, #tpu.memory_space<vmem>>, vector<1x128xf32>,
    } else {
    }
    %7 = tpu.iota {dimensions = array<i32: 0>} : vector<128x1xi32>
    %c128_i32 = arith.constant 128 : i32
    %8 = arith.muli %arg0, %c128_i32 : i32
    %9 = vector.broadcast %8 : i32 to vector<128x1xi32>
    %10 = arith.addi %7, %9 : vector<128x1xi32>
    %c128_i32_6 = arith.constant 128 : i32
    %11 = vector.broadcast %c128_i32_6 : i32 to vector<128x1xi32>
    %12 = arith.cmpi slt, %10, %11 : vector<128x1xi32>
    %cst_7 = arith.constant 0.000000e+00 : f32
    %13 = vector.shape_cast %12 : vector<128x1xi1> to vector<128x1xi1>
    %14 = vector.broadcast %13 : vector<128x1xi1> to vector<128x128xi1>
    %15 = vector.broadcast %cst_7 : f32 to vector<128x128xf32>
    %16 = arith.select %14, %2, %15 : vector<128x128xi1>, vector<128x128xf32>
    %c0_8 = arith.constant 0 : index
    %c0_9 = arith.constant 0 : index
    %17 = vector.load %arg4[%c0_8, %c0_9] : memref<1x128xf32, #tpu.memory_space<vmem>>, vector<1x128xf32>
    %cst_10 = arith.constant dense<0.000000e+00> : vector<128xf32>
    %18 = vector.multi_reduction <add>, %16, %cst_10 [0] : vector<128x128xf32> to vector<128xf32>
    %19 = vector.shape_cast %18 : vector<128xf32> to vector<1x128xf32>
    %20 = arith.addf %17, %19 : vector<1x128xf32>
    %c0_11 = arith.constant 0 : index
    %c0_12 = arith.constant 0 : index
    %21 = vector.load %arg4[%c0_11, %c0_12] : memref<1x128xf32, #tpu.memory_space<vmem>>, vector<1x128xf32>
    tpu.vector_store %arg4[%c0_11, %c0_12], %20 {strides = array<i32>} : memref<1x128xf32, #tpu.memory_space<vmem>>, vector<1x128xf32>,
    %c0_13 = arith.constant 0 : index
    %c0_14 = arith.constant 0 : index
    %22 = vector.load %arg5[%c0_13, %c0_14] : memref<1x128xf32, #tpu.memory_space<vmem>>, vector<1x128xf32>
    %23 = arith.mulf %16, %16 : vector<128x128xf32>
    %cst_15 = arith.constant dense<0.000000e+00> : vector<128xf32>
    %24 = vector.multi_reduction <add>, %23, %cst_15 [0] : vector<128x128xf32> to vector<128xf32>
    %25 = vector.shape_cast %24 : vector<128xf32> to vector<1x128xf32>
    %26 = arith.addf %22, %25 : vector<1x128xf32>
    %c0_16 = arith.constant 0 : index
    %c0_17 = arith.constant 0 : index
    %27 = vector.load %arg5[%c0_16, %c0_17] : memref<1x128xf32, #tpu.memory_space<vmem>>, vector<1x128xf32>
    tpu.vector_store %arg5[%c0_16, %c0_17], %26 {strides = array<i32>} : memref<1x128xf32, #tpu.memory_space<vmem>>, vector<1x128xf32>,
    return
  }
  func.func @transform_0(%arg0: i32) -> (i32, i32) {
    %c0_i32 = arith.constant 0 : i32
    %c0_i32_0 = arith.constant 0 : i32
    return %arg0, %c0_i32 : i32, i32
  }
  func.func @transform_1(%arg0: i32) -> (i32, i32) {
    %c0_i32 = arith.constant 0 : i32
    %c0_i32_0 = arith.constant 0 : i32
    %c0_i32_1 = arith.constant 0 : i32
    return %c0_i32, %c0_i32_0 : i32, i32
  }
  func.func @transform_2(%arg0: i32) -> (i32, i32) {
    %c0_i32 = arith.constant 0 : i32
    %c0_i32_0 = arith.constant 0 : i32
    return %arg0, %c0_i32 : i32, i32
  }
  func.func @transform_3(%arg0: i32) -> (i32, i32) {
    %c0_i32 = arith.constant 0 : i32
    %c0_i32_0 = arith.constant 0 : i32
    %c0_i32_1 = arith.constant 0 : i32
    return %c0_i32, %c0_i32_0 : i32, i32
  }
  func.func @transform_4(%arg0: i32) -> (i32, i32) {
    %c0_i32 = arith.constant 0 : i32
    %c0_i32_0 = arith.constant 0 : i32
    %c0_i32_1 = arith.constant 0 : i32
    return %c0_i32, %c0_i32_0 : i32, i32
  }
}

module attributes {stable_mosaic.version = 11 : i64} {
  func.func @_bn_leaky_kernel(%arg0: i32, %arg1: memref<128x128xf32, #tpu.memory_space<vmem>>, %arg2: memref<1x128xf32, #tpu.memory_space<vmem>>, %arg3: memref<1x128xf32, #tpu.memory_space<vmem>>, %arg4: memref<128x128xbf16, #tpu.memory_space<vmem>>) attributes {dimension_semantics = [#tpu.dimension_semantics<parallel>], iteration_bounds = array<i64: 1>, scalar_prefetch = 0 : i64, scratch_operands = 0 : i64, tpu.core_type = #tpu.core_type<tc>, window_params = [{transform_indices = @transform_0, window_bounds = array<i64: 128, 128>}, {pipeline_mode = #tpu.pipeline_mode<synchronous>, transform_indices = @transform_1, window_bounds = array<i64: 1, 128>}, {pipeline_mode = #tpu.pipeline_mode<synchronous>, transform_indices = @transform_2, window_bounds = array<i64: 1, 128>}, {transform_indices = @transform_3, window_bounds = array<i64: 128, 128>}]} {
    %c0 = arith.constant 0 : index
    %c0_0 = arith.constant 0 : index
    %0 = vector.load %arg1[%c0, %c0_0] : memref<128x128xf32, #tpu.memory_space<vmem>>, vector<128x128xf32>
    %c0_1 = arith.constant 0 : index
    %c0_2 = arith.constant 0 : index
    %1 = vector.load %arg2[%c0_1, %c0_2] : memref<1x128xf32, #tpu.memory_space<vmem>>, vector<1x128xf32>
    %2 = vector.broadcast %1 : vector<1x128xf32> to vector<128x128xf32>
    %3 = arith.mulf %0, %2 : vector<128x128xf32>
    %c0_3 = arith.constant 0 : index
    %c0_4 = arith.constant 0 : index
    %4 = vector.load %arg3[%c0_3, %c0_4] : memref<1x128xf32, #tpu.memory_space<vmem>>, vector<1x128xf32>
    %5 = vector.broadcast %4 : vector<1x128xf32> to vector<128x128xf32>
    %6 = arith.addf %3, %5 : vector<128x128xf32>
    %cst = arith.constant 0.000000e+00 : f32
    %7 = vector.broadcast %cst : f32 to vector<128x128xf32>
    %8 = arith.cmpf ogt, %6, %7 : vector<128x128xf32>
    %cst_5 = arith.constant 2.000000e-01 : f32
    %9 = vector.broadcast %cst_5 : f32 to vector<128x128xf32>
    %10 = arith.mulf %9, %6 : vector<128x128xf32>
    %11 = arith.select %8, %6, %10 : vector<128x128xi1>, vector<128x128xf32>
    %12 = arith.truncf %11 : vector<128x128xf32> to vector<128x128xbf16>
    %c0_6 = arith.constant 0 : index
    %c0_7 = arith.constant 0 : index
    %13 = vector.load %arg4[%c0_6, %c0_7] : memref<128x128xbf16, #tpu.memory_space<vmem>>, vector<128x128xbf16>
    tpu.vector_store %arg4[%c0_6, %c0_7], %12 {strides = array<i32>} : memref<128x128xbf16, #tpu.memory_space<vmem>>, vector<128x128xbf16>,
    return
  }
  func.func @transform_0(%arg0: i32) -> (i32, i32) {
    %c0_i32 = arith.constant 0 : i32
    %c0_i32_0 = arith.constant 0 : i32
    return %arg0, %c0_i32 : i32, i32
  }
  func.func @transform_1(%arg0: i32) -> (i32, i32) {
    %c0_i32 = arith.constant 0 : i32
    %c0_i32_0 = arith.constant 0 : i32
    %c0_i32_1 = arith.constant 0 : i32
    return %c0_i32, %c0_i32_0 : i32, i32
  }
  func.func @transform_2(%arg0: i32) -> (i32, i32) {
    %c0_i32 = arith.constant 0 : i32
    %c0_i32_0 = arith.constant 0 : i32
    %c0_i32_1 = arith.constant 0 : i32
    return %c0_i32, %c0_i32_0 : i32, i32
  }
  func.func @transform_3(%arg0: i32) -> (i32, i32) {
    %c0_i32 = arith.constant 0 : i32
    %c0_i32_0 = arith.constant 0 : i32
    return %arg0, %c0_i32 : i32, i32
  }
}

module attributes {stable_mosaic.version = 11 : i64} {
  func.func @_gemm_stats_kernel(%arg0: i32, %arg1: memref<32x512xbf16, #tpu.memory_space<vmem>>, %arg2: memref<512x128xbf16, #tpu.memory_space<vmem>>, %arg3: memref<32x128xf32, #tpu.memory_space<vmem>>, %arg4: memref<1x128xf32, #tpu.memory_space<vmem>>, %arg5: memref<1x128xf32, #tpu.memory_space<vmem>>) attributes {dimension_semantics = [#tpu.dimension_semantics<arbitrary>], iteration_bounds = array<i64: 1>, scalar_prefetch = 0 : i64, scratch_operands = 0 : i64, tpu.core_type = #tpu.core_type<tc>, window_params = [{transform_indices = @transform_0, window_bounds = array<i64: 32, 512>}, {pipeline_mode = #tpu.pipeline_mode<synchronous>, transform_indices = @transform_1, window_bounds = array<i64: 512, 128>}, {transform_indices = @transform_2, window_bounds = array<i64: 32, 128>}, {pipeline_mode = #tpu.pipeline_mode<synchronous>, transform_indices = @transform_3, window_bounds = array<i64: 1, 128>}, {pipeline_mode = #tpu.pipeline_mode<synchronous>, transform_indices = @transform_4, window_bounds = array<i64: 1, 128>}]} {
    %c0 = arith.constant 0 : index
    %c0_0 = arith.constant 0 : index
    %0 = vector.load %arg1[%c0, %c0_0] : memref<32x512xbf16, #tpu.memory_space<vmem>>, vector<32x512xbf16>
    %c0_1 = arith.constant 0 : index
    %c0_2 = arith.constant 0 : index
    %1 = vector.load %arg2[%c0_1, %c0_2] : memref<512x128xbf16, #tpu.memory_space<vmem>>, vector<512x128xbf16>
    %cst = arith.constant dense<0.000000e+00> : vector<32x128xf32>
    %2 = tpu.matmul %0, %1, %cst {dimension_numbers = #tpu.dot_dimension_numbers<[1], [0], [0], [1], [0, 0, 1, 1], [], []>} : vector<32x512xbf16>, vector<512x128xbf16>, vector<32x128xf32> -> vector<32x128xf32>
    %c0_3 = arith.constant 0 : index
    %c0_4 = arith.constant 0 : index
    %3 = vector.load %arg3[%c0_3, %c0_4] : memref<32x128xf32, #tpu.memory_space<vmem>>, vector<32x128xf32>
    tpu.vector_store %arg3[%c0_3, %c0_4], %2 {strides = array<i32>} : memref<32x128xf32, #tpu.memory_space<vmem>>, vector<32x128xf32>,
    %c0_i32 = arith.constant 0 : i32
    %4 = arith.cmpi eq, %arg0, %c0_i32 : i32
    %5 = arith.extui %4 : i1 to i32
    %c0_i32_5 = arith.constant 0 : i32
    %6 = arith.cmpi ne, %5, %c0_i32_5 : i32
    scf.if %6 {
      %cst_18 = arith.constant 0.000000e+00 : f32
      %28 = vector.broadcast %cst_18 : f32 to vector<1x128xf32>
      %c0_19 = arith.constant 0 : index
      %c0_20 = arith.constant 0 : index
      %29 = vector.load %arg4[%c0_19, %c0_20] : memref<1x128xf32, #tpu.memory_space<vmem>>, vector<1x128xf32>
      tpu.vector_store %arg4[%c0_19, %c0_20], %28 {strides = array<i32>} : memref<1x128xf32, #tpu.memory_space<vmem>>, vector<1x128xf32>,
      %cst_21 = arith.constant 0.000000e+00 : f32
      %30 = vector.broadcast %cst_21 : f32 to vector<1x128xf32>
      %c0_22 = arith.constant 0 : index
      %c0_23 = arith.constant 0 : index
      %31 = vector.load %arg5[%c0_22, %c0_23] : memref<1x128xf32, #tpu.memory_space<vmem>>, vector<1x128xf32>
      tpu.vector_store %arg5[%c0_22, %c0_23], %30 {strides = array<i32>} : memref<1x128xf32, #tpu.memory_space<vmem>>, vector<1x128xf32>,
    } else {
    }
    %7 = tpu.iota {dimensions = array<i32: 0>} : vector<32x1xi32>
    %c32_i32 = arith.constant 32 : i32
    %8 = arith.muli %arg0, %c32_i32 : i32
    %9 = vector.broadcast %8 : i32 to vector<32x1xi32>
    %10 = arith.addi %7, %9 : vector<32x1xi32>
    %c32_i32_6 = arith.constant 32 : i32
    %11 = vector.broadcast %c32_i32_6 : i32 to vector<32x1xi32>
    %12 = arith.cmpi slt, %10, %11 : vector<32x1xi32>
    %cst_7 = arith.constant 0.000000e+00 : f32
    %13 = vector.shape_cast %12 : vector<32x1xi1> to vector<32x1xi1>
    %14 = vector.broadcast %13 : vector<32x1xi1> to vector<32x128xi1>
    %15 = vector.broadcast %cst_7 : f32 to vector<32x128xf32>
    %16 = arith.select %14, %2, %15 : vector<32x128xi1>, vector<32x128xf32>
    %c0_8 = arith.constant 0 : index
    %c0_9 = arith.constant 0 : index
    %17 = vector.load %arg4[%c0_8, %c0_9] : memref<1x128xf32, #tpu.memory_space<vmem>>, vector<1x128xf32>
    %cst_10 = arith.constant dense<0.000000e+00> : vector<128xf32>
    %18 = vector.multi_reduction <add>, %16, %cst_10 [0] : vector<32x128xf32> to vector<128xf32>
    %19 = vector.shape_cast %18 : vector<128xf32> to vector<1x128xf32>
    %20 = arith.addf %17, %19 : vector<1x128xf32>
    %c0_11 = arith.constant 0 : index
    %c0_12 = arith.constant 0 : index
    %21 = vector.load %arg4[%c0_11, %c0_12] : memref<1x128xf32, #tpu.memory_space<vmem>>, vector<1x128xf32>
    tpu.vector_store %arg4[%c0_11, %c0_12], %20 {strides = array<i32>} : memref<1x128xf32, #tpu.memory_space<vmem>>, vector<1x128xf32>,
    %c0_13 = arith.constant 0 : index
    %c0_14 = arith.constant 0 : index
    %22 = vector.load %arg5[%c0_13, %c0_14] : memref<1x128xf32, #tpu.memory_space<vmem>>, vector<1x128xf32>
    %23 = arith.mulf %16, %16 : vector<32x128xf32>
    %cst_15 = arith.constant dense<0.000000e+00> : vector<128xf32>
    %24 = vector.multi_reduction <add>, %23, %cst_15 [0] : vector<32x128xf32> to vector<128xf32>
    %25 = vector.shape_cast %24 : vector<128xf32> to vector<1x128xf32>
    %26 = arith.addf %22, %25 : vector<1x128xf32>
    %c0_16 = arith.constant 0 : index
    %c0_17 = arith.constant 0 : index
    %27 = vector.load %arg5[%c0_16, %c0_17] : memref<1x128xf32, #tpu.memory_space<vmem>>, vector<1x128xf32>
    tpu.vector_store %arg5[%c0_16, %c0_17], %26 {strides = array<i32>} : memref<1x128xf32, #tpu.memory_space<vmem>>, vector<1x128xf32>,
    return
  }
  func.func @transform_0(%arg0: i32) -> (i32, i32) {
    %c0_i32 = arith.constant 0 : i32
    %c0_i32_0 = arith.constant 0 : i32
    return %arg0, %c0_i32 : i32, i32
  }
  func.func @transform_1(%arg0: i32) -> (i32, i32) {
    %c0_i32 = arith.constant 0 : i32
    %c0_i32_0 = arith.constant 0 : i32
    %c0_i32_1 = arith.constant 0 : i32
    return %c0_i32, %c0_i32_0 : i32, i32
  }
  func.func @transform_2(%arg0: i32) -> (i32, i32) {
    %c0_i32 = arith.constant 0 : i32
    %c0_i32_0 = arith.constant 0 : i32
    return %arg0, %c0_i32 : i32, i32
  }
  func.func @transform_3(%arg0: i32) -> (i32, i32) {
    %c0_i32 = arith.constant 0 : i32
    %c0_i32_0 = arith.constant 0 : i32
    %c0_i32_1 = arith.constant 0 : i32
    return %c0_i32, %c0_i32_0 : i32, i32
  }
  func.func @transform_4(%arg0: i32) -> (i32, i32) {
    %c0_i32 = arith.constant 0 : i32
    %c0_i32_0 = arith.constant 0 : i32
    %c0_i32_1 = arith.constant 0 : i32
    return %c0_i32, %c0_i32_0 : i32, i32
  }
}

module attributes {stable_mosaic.version = 11 : i64} {
  func.func @_bn_leaky_kernel(%arg0: i32, %arg1: memref<32x128xf32, #tpu.memory_space<vmem>>, %arg2: memref<1x128xf32, #tpu.memory_space<vmem>>, %arg3: memref<1x128xf32, #tpu.memory_space<vmem>>, %arg4: memref<32x128xbf16, #tpu.memory_space<vmem>>) attributes {dimension_semantics = [#tpu.dimension_semantics<parallel>], iteration_bounds = array<i64: 1>, scalar_prefetch = 0 : i64, scratch_operands = 0 : i64, tpu.core_type = #tpu.core_type<tc>, window_params = [{transform_indices = @transform_0, window_bounds = array<i64: 32, 128>}, {pipeline_mode = #tpu.pipeline_mode<synchronous>, transform_indices = @transform_1, window_bounds = array<i64: 1, 128>}, {pipeline_mode = #tpu.pipeline_mode<synchronous>, transform_indices = @transform_2, window_bounds = array<i64: 1, 128>}, {transform_indices = @transform_3, window_bounds = array<i64: 32, 128>}]} {
    %c0 = arith.constant 0 : index
    %c0_0 = arith.constant 0 : index
    %0 = vector.load %arg1[%c0, %c0_0] : memref<32x128xf32, #tpu.memory_space<vmem>>, vector<32x128xf32>
    %c0_1 = arith.constant 0 : index
    %c0_2 = arith.constant 0 : index
    %1 = vector.load %arg2[%c0_1, %c0_2] : memref<1x128xf32, #tpu.memory_space<vmem>>, vector<1x128xf32>
    %2 = vector.broadcast %1 : vector<1x128xf32> to vector<32x128xf32>
    %3 = arith.mulf %0, %2 : vector<32x128xf32>
    %c0_3 = arith.constant 0 : index
    %c0_4 = arith.constant 0 : index
    %4 = vector.load %arg3[%c0_3, %c0_4] : memref<1x128xf32, #tpu.memory_space<vmem>>, vector<1x128xf32>
    %5 = vector.broadcast %4 : vector<1x128xf32> to vector<32x128xf32>
    %6 = arith.addf %3, %5 : vector<32x128xf32>
    %cst = arith.constant 0.000000e+00 : f32
    %7 = vector.broadcast %cst : f32 to vector<32x128xf32>
    %8 = arith.cmpf ogt, %6, %7 : vector<32x128xf32>
    %cst_5 = arith.constant 2.000000e-01 : f32
    %9 = vector.broadcast %cst_5 : f32 to vector<32x128xf32>
    %10 = arith.mulf %9, %6 : vector<32x128xf32>
    %11 = arith.select %8, %6, %10 : vector<32x128xi1>, vector<32x128xf32>
    %12 = arith.truncf %11 : vector<32x128xf32> to vector<32x128xbf16>
    %c0_6 = arith.constant 0 : index
    %c0_7 = arith.constant 0 : index
    %13 = vector.load %arg4[%c0_6, %c0_7] : memref<32x128xbf16, #tpu.memory_space<vmem>>, vector<32x128xbf16>
    tpu.vector_store %arg4[%c0_6, %c0_7], %12 {strides = array<i32>} : memref<32x128xbf16, #tpu.memory_space<vmem>>, vector<32x128xbf16>,
    return
  }
  func.func @transform_0(%arg0: i32) -> (i32, i32) {
    %c0_i32 = arith.constant 0 : i32
    %c0_i32_0 = arith.constant 0 : i32
    return %arg0, %c0_i32 : i32, i32
  }
  func.func @transform_1(%arg0: i32) -> (i32, i32) {
    %c0_i32 = arith.constant 0 : i32
    %c0_i32_0 = arith.constant 0 : i32
    %c0_i32_1 = arith.constant 0 : i32
    return %c0_i32, %c0_i32_0 : i32, i32
  }
  func.func @transform_2(%arg0: i32) -> (i32, i32) {
    %c0_i32 = arith.constant 0 : i32
    %c0_i32_0 = arith.constant 0 : i32
    %c0_i32_1 = arith.constant 0 : i32
    return %c0_i32, %c0_i32_0 : i32, i32
  }
  func.func @transform_3(%arg0: i32) -> (i32, i32) {
    %c0_i32 = arith.constant 0 : i32
    %c0_i32_0 = arith.constant 0 : i32
    return %arg0, %c0_i32 : i32, i32
  }
}

module attributes {stable_mosaic.version = 11 : i64} {
  func.func @_matvec_sigmoid_kernel(%arg0: i32, %arg1: memref<8x1024xbf16, #tpu.memory_space<vmem>>, %arg2: memref<1x1024xbf16, #tpu.memory_space<vmem>>, %arg3: memref<8x1xf32, #tpu.memory_space<vmem>>) attributes {dimension_semantics = [#tpu.dimension_semantics<arbitrary>], iteration_bounds = array<i64: 1>, scalar_prefetch = 0 : i64, scratch_operands = 0 : i64, tpu.core_type = #tpu.core_type<tc>, window_params = [{pipeline_mode = #tpu.pipeline_mode<synchronous>, transform_indices = @transform_0, window_bounds = array<i64: 8, 1024>}, {pipeline_mode = #tpu.pipeline_mode<synchronous>, transform_indices = @transform_1, window_bounds = array<i64: 1, 1024>}, {pipeline_mode = #tpu.pipeline_mode<synchronous>, transform_indices = @transform_2, window_bounds = array<i64: 8, 1>}]} {
    %c0 = arith.constant 0 : index
    %c0_0 = arith.constant 0 : index
    %0 = vector.load %arg1[%c0, %c0_0] : memref<8x1024xbf16, #tpu.memory_space<vmem>>, vector<8x1024xbf16>
    %1 = arith.extf %0 : vector<8x1024xbf16> to vector<8x1024xf32>
    %c0_1 = arith.constant 0 : index
    %c0_2 = arith.constant 0 : index
    %2 = vector.load %arg2[%c0_1, %c0_2] : memref<1x1024xbf16, #tpu.memory_space<vmem>>, vector<1x1024xbf16>
    %3 = arith.extf %2 : vector<1x1024xbf16> to vector<1x1024xf32>
    %4 = vector.broadcast %3 : vector<1x1024xf32> to vector<8x1024xf32>
    %5 = arith.mulf %1, %4 : vector<8x1024xf32>
    %cst = arith.constant dense<0.000000e+00> : vector<8xf32>
    %6 = vector.multi_reduction <add>, %5, %cst [1] : vector<8x1024xf32> to vector<8xf32>
    %7 = vector.shape_cast %6 : vector<8xf32> to vector<8x1xf32>
    %cst_3 = arith.constant 0.000000e+00 : f32
    %8 = vector.broadcast %cst_3 : f32 to vector<8x1xf32>
    %9 = arith.subf %8, %7 : vector<8x1xf32>
    %10 = math.exp %9 : vector<8x1xf32>
    %cst_4 = arith.constant 1.000000e+00 : f32
    %11 = vector.broadcast %cst_4 : f32 to vector<8x1xf32>
    %12 = arith.addf %11, %10 : vector<8x1xf32>
    %cst_5 = arith.constant 1.000000e+00 : f32
    %13 = vector.broadcast %cst_5 : f32 to vector<8x1xf32>
    %14 = arith.divf %13, %12 : vector<8x1xf32>
    %c0_6 = arith.constant 0 : index
    %c0_7 = arith.constant 0 : index
    %15 = vector.load %arg3[%c0_6, %c0_7] : memref<8x1xf32, #tpu.memory_space<vmem>>, vector<8x1xf32>
    tpu.vector_store %arg3[%c0_6, %c0_7], %14 {strides = array<i32>} : memref<8x1xf32, #tpu.memory_space<vmem>>, vector<8x1xf32>,
    return
  }
  func.func @transform_0(%arg0: i32) -> (i32, i32) {
    %c0_i32 = arith.constant 0 : i32
    %c0_i32_0 = arith.constant 0 : i32
    %c0_i32_1 = arith.constant 0 : i32
    return %c0_i32, %c0_i32_0 : i32, i32
  }
  func.func @transform_1(%arg0: i32) -> (i32, i32) {
    %c0_i32 = arith.constant 0 : i32
    %c0_i32_0 = arith.constant 0 : i32
    %c0_i32_1 = arith.constant 0 : i32
    return %c0_i32, %c0_i32_0 : i32, i32
  }
  func.func @transform_2(%arg0: i32) -> (i32, i32) {
    %c0_i32 = arith.constant 0 : i32
    %c0_i32_0 = arith.constant 0 : i32
    %c0_i32_1 = arith.constant 0 : i32
    return %c0_i32, %c0_i32_0 : i32, i32
  }
}

</mosaic_0001>

<bundles_post_ra>
// kernel: discriminator_forward.8
= control target key start
LH: loop header
LB: loop body
LE: loop exit
PB: predicated region body
PF: predicated region fallthrough
CT: control target
= control target key end

     0   :  { %s1902_s9 = smov 0   ;;  %s2025_s0 = inlined_call_operand.vmem [shape: bf16[2048,128], index: 0, kind: input, shape index: {}]   ;;  %s2026_s1 = inlined_call_operand.vmem [shape: bf16[128,128], index: 1, kind: input, shape index: {}]   ;;  %s2027_s2 = inlined_call_operand.vmem [shape: bf16[2048,128], index: 2, kind: output, shape index: {}]  }
   0x1 LB: > { %s1325_s10 = sadd.s32 4294967295, %s1885_s9   ;;  %p1329_p0 = scmp.ge.s32.totalorder %s1885_s9, 1  ;;  %s1885_s9 = sphi %s1902_s9, %s12_s9  }
   0x2   : > { %p113_p1 = scmp.lt.s32.totalorder %s1885_s9, 5 }
   0x4   : > { %p114_p2 = pnand %p1329_p0, %p113_p1 }
   0x5   : > { %v1839_v0 = vld [vmem:[%s2026_s1] sm:$0xff] (!%p114_p2)   ;;  %s1330_s13 = sshll.u32 (!%p114_p2), %s1325_s10, 6  ;;  %v1840_v1 = vld [vmem:[%s2026_s1 + $0x8] sm:$0xff] (!%p114_p2)   ;;  %v1841_v2 = vld [vmem:[%s2026_s1 + $0x10] sm:$0xff] (!%p114_p2)  }
   0x6   : > { %117 = sbr.rel (%p114_p2) target bundleno = 317 (0x13d), region = 28  ;;  %p136_p3 = scmp.lt.s32.totalorder (!%p114_p2), %s1330_s13, 255  ;;  %1735 = vmatprep.subr.bf16.mxu0 (!%p114_p2), %v1839_v0  ;;  %1815 = vmatprep.subr.bf16.mxu1 (!%p114_p2), %v1839_v0  ;;  %v1842_v3 = vld [vmem:[%s2026_s1 + $0x18] sm:$0xff] (!%p114_p2)   ;;  %v1843_v6 = vld [vmem:[%s2026_s1 + $0x20] sm:$0xff] (!%p114_p2)   ;;  %v1844_v7 = vld [vmem:[%s2026_s1 + $0x28] sm:$0xff] (!%p114_p2)  }
   0x7   : > { %1736 = vmatpush3.bf16.msra.mxu0 (!%p114_p2), %v1839_v0  ;;  %1823 = vmatpush3.bf16.msra.mxu1 (!%p114_p2), %v1839_v0  ;;  %v1845_v8 = vld [vmem:[%s2026_s1 + $0x30] sm:$0xff] (!%p114_p2)   ;;  %v1846_v9 = vld [vmem:[%s2026_s1 + $0x38] sm:$0xff] (!%p114_p2)  }
   0x8   : > { %1737 = vmatprep.subr.bf16.mxu0 (!%p114_p2), %v1840_v1  ;;  %1816 = vmatprep.subr.bf16.mxu1 (!%p114_p2), %v1840_v1 }
   0xb   : > { %1738 = vmatpush3.bf16.msra.mxu0 (!%p114_p2), %v1840_v1  ;;  %1824 = vmatpush3.bf16.msra.mxu1 (!%p114_p2), %v1840_v1 }
   0xc   : > { %1739 = vmatprep.subr.bf16.mxu0 (!%p114_p2), %v1841_v2  ;;  %1817 = vmatprep.subr.bf16.mxu1 (!%p114_p2), %v1841_v2 }
   0xd   : > { %s2029_s13 = smov (!%p136_p3, %s1330_s13), 255 }
   0xe   : > { %s1331_s18 = sshll.u32 %s2029_s13, 2 }
   0xf   : > { %s1927_s21 = scalar_lea.vmem %s2025_s0, %s1331_s18  ;;  %1740 = vmatpush3.bf16.msra.mxu0 %v1841_v2  ;;  %1825 = vmatpush3.bf16.msra.mxu1 %v1841_v2  ;;  %s1981_s6 = scalar_lea.vmem %s2027_s2, %s1331_s18 }
  0x10   : > { %v1847_v4 = vld [vmem:[%s1927_s21] sm:$0xff]   ;;  %1741 = vmatprep.subr.bf16.mxu0 %v1842_v3  ;;  %1818 = vmatprep.subr.bf16.mxu1 %v1842_v3  ;;  %v1849_v10 = vld [vmem:[%s1927_s21 + $0x8] sm:$0xff]   ;;  %v1851_v12 = vld [vmem:[%s1927_s21 + $0x10] sm:$0xff]  }
  0x11   : > { %v1848_v5 = vld [vmem:[%s1927_s21 + $0x80] sm:$0xff]   ;;  %1751 = vmatprep.mubr.bf16.mxu0 %v1847_v4  ;;  %v1850_v11 = vld [vmem:[%s1927_s21 + $0x88] sm:$0xff]   ;;  %v1852_v13 = vld [vmem:[%s1927_s21 + $0x90] sm:$0xff]  }
  0x12   : > { %1783 = vmatprep.mubr.bf16.mxu1 %v1848_v5  ;;  %v1853_v14 = vld [vmem:[%s1927_s21 + $0x18] sm:$0xff]   ;;  %v1855_v16 = vld [vmem:[%s1927_s21 + $0x20] sm:$0xff]   ;;  %v1857_v18 = vld [vmem:[%s1927_s21 + $0x28] sm:$0xff]  }
  0x13   : > { %1742 = vmatpush3.bf16.msra.mxu0 %v1842_v3  ;;  %1826 = vmatpush3.bf16.msra.mxu1 %v1842_v3  ;;  %v1854_v15 = vld [vmem:[%s1927_s21 + $0x98] sm:$0xff]   ;;  %v1856_v17 = vld [vmem:[%s1927_s21 + $0xa0] sm:$0xff]   ;;  %v1858_v19 = vld [vmem:[%s1927_s21 + $0xa8] sm:$0xff]  }
  0x14   : > { %1743 = vmatprep.subr.bf16.mxu0 %v1843_v6  ;;  %1819 = vmatprep.subr.bf16.mxu1 %v1843_v6  ;;  %v1859_v20 = vld [vmem:[%s1927_s21 + $0x30] sm:$0xff]   ;;  %v1861_v22 = vld [vmem:[%s1927_s21 + $0x38] sm:$0xff]   ;;  %v1863_v24 = vld [vmem:[%s1927_s21 + $0x40] sm:$0xff]  }
  0x15   : > { %v1860_v21 = vld [vmem:[%s1927_s21 + $0xb0] sm:$0xff]   ;;  %v1862_v23 = vld [vmem:[%s1927_s21 + $0xb8] sm:$0xff]   ;;  %v1864_v25 = vld [vmem:[%s1927_s21 + $0xc0] sm:$0xff]  }
  0x16   : > { %v1865_v26 = vld [vmem:[%s1927_s21 + $0x48] sm:$0xff]   ;;  %v1867_v28 = vld [vmem:[%s1927_s21 + $0x50] sm:$0xff]   ;;  %v1869_v30 = vld [vmem:[%s1927_s21 + $0x58] sm:$0xff]  }
  0x17   : > { %1744 = vmatpush3.bf16.msra.mxu0 %v1843_v6  ;;  %1827 = vmatpush3.bf16.msra.mxu1 %v1843_v6  ;;  %v1866_v27 = vld [vmem:[%s1927_s21 + $0xc8] sm:$0xff]   ;;  %v1868_v29 = vld [vmem:[%s1927_s21 + $0xd0] sm:$0xff]   ;;  %v1870_v31 = vld [vmem:[%s1927_s21 + $0xd8] sm:$0xff]  }
  0x18   : > { %1745 = vmatprep.subr.bf16.mxu0 %v1844_v7  ;;  %1820 = vmatprep.subr.bf16.mxu1 %v1844_v7  ;;  %v1871_v32 = vld [vmem:[%s1927_s21 + $0x60] sm:$0xff]   ;;  %v1873_v34 = vld [vmem:[%s1927_s21 + $0x68] sm:$0xff]   ;;  %v1875_v36 = vld [vmem:[%s1927_s21 + $0x70] sm:$0xff]  }
  0x19   : > { %v1872_v33 = vld [vmem:[%s1927_s21 + $0xe0] sm:$0xff]   ;;  %v1874_v35 = vld [vmem:[%s1927_s21 + $0xe8] sm:$0xff]   ;;  %v1876_v37 = vld [vmem:[%s1927_s21 + $0xf0] sm:$0xff]  }
  0x1a   : > { %v1877_v38 = vld [vmem:[%s1927_s21 + $0x78] sm:$0xff]  }
  0x1b   : > { %1746 = vmatpush3.bf16.msra.mxu0 %v1844_v7  ;;  %1828 = vmatpush3.bf16.msra.mxu1 %v1844_v7  ;;  %v1878_v39 = vld [vmem:[%s1927_s21 + $0xf8] sm:$0xff]  }
  0x1c   : > { %1747 = vmatprep.subr.bf16.mxu0 %v1845_v8  ;;  %1821 = vmatprep.subr.bf16.mxu1 %v1845_v8 }
  0x1f   : > { %1748 = vmatpush3.bf16.msra.mxu0 %v1845_v8  ;;  %1829 = vmatpush3.bf16.msra.mxu1 %v1845_v8 }
  0x20   : > { %1749 = vmatprep.subr.bf16.mxu0 %v1846_v9  ;;  %1822 = vmatprep.subr.bf16.mxu1 %v1846_v9 }
  0x23   : > { %1750 = vmatpush3.bf16.msra.mxu0 %v1846_v9  ;;  %1830 = vmatpush3.bf16.msra.mxu1 %v1846_v9 }
  0x26   : > { %1752 = vmatmul.mubr.bf16.vlgmr.msra.gmra.mrb[0].mxu0 %v1849_v10  ;;  %1784 = vmatmul.mubr.bf16.vlgmr.msra.gmra.mrb[0].mxu1 %v1850_v11 }
  0x27   : > { %1755 = vmatprep.mubr.bf16.mxu0 %v1851_v12  ;;  %1787 = vmatprep.mubr.bf16.mxu1 %v1852_v13 }
  0x2e   : > { %1756 = vmatmul.mubr.bf16.gmra.mrb[4].mxu0 %v1853_v14  ;;  %1788 = vmatmul.mubr.bf16.gmra.mrb[4].mxu1 %v1854_v15 }
  0x2f   : > { %1759 = vmatprep.mubr.bf16.mxu0 %v1855_v16  ;;  %1791 = vmatprep.mubr.bf16.mxu1 %v1856_v17 }
  0x36   : > { %1760 = vmatmul.mubr.bf16.gmra.mrb[8].mxu0 %v1857_v18  ;;  %1792 = vmatmul.mubr.bf16.gmra.mrb[8].mxu1 %v1858_v19 }
  0x37   : > { %1763 = vmatprep.mubr.bf16.mxu0 %v1859_v20  ;;  %1795 = vmatprep.mubr.bf16.mxu1 %v1860_v21 }
  0x3e   : > { %1764 = vmatmul.mubr.bf16.gmra.mrb[12].mxu0 %v1861_v22  ;;  %1796 = vmatmul.mubr.bf16.gmra.mrb[12].mxu1 %v1862_v23 }
  0x3f   : > { %1767 = vmatprep.mubr.bf16.mxu0 %v1863_v24  ;;  %1799 = vmatprep.mubr.bf16.mxu1 %v1864_v25 }
  0x46   : > { %1768 = vmatmul.mubr.bf16.gmra.mrb[16].mxu0 %v1865_v26  ;;  %1800 = vmatmul.mubr.bf16.gmra.mrb[16].mxu1 %v1866_v27 }
  0x47   : > { %1771 = vmatprep.mubr.bf16.mxu0 %v1867_v28  ;;  %1803 = vmatprep.mubr.bf16.mxu1 %v1868_v29 }
  0x4e   : > { %1772 = vmatmul.mubr.bf16.gmra.mrb[20].mxu0 %v1869_v30  ;;  %1804 = vmatmul.mubr.bf16.gmra.mrb[20].mxu1 %v1870_v31 }
  0x4f   : > { %1775 = vmatprep.mubr.bf16.mxu0 %v1871_v32  ;;  %1807 = vmatprep.mubr.bf16.mxu1 %v1872_v33 }
  0x56   : > { %1776 = vmatmul.mubr.bf16.gmra.mrb[24].mxu0 %v1873_v34  ;;  %1808 = vmatmul.mubr.bf16.gmra.mrb[24].mxu1 %v1874_v35 }
  0x57   : > { %1779 = vmatprep.mubr.bf16.mxu0 %v1875_v36  ;;  %1811 = vmatprep.mubr.bf16.mxu1 %v1876_v37 }
  0x5e   : > { %1780 = vmatmul.mubr.bf16.gmra.mrb[28].mxu0 %v1877_v38  ;;  %1812 = vmatmul.mubr.bf16.gmra.mrb[28].mxu1 %v1878_v39 }
  0xf9   : > { %v1753_v40 = vpop.f32.mrb[0].mxu0  ;;  %v1785_v41 = vpop.f32.mrb[0].mxu1 }
  0xfa   : > { %vm759_vm0 = vcmp.gt.f32.partialorder %v1753_v40, 0.0  ;;  %v823_v42 = vmul.f32 0.2, %v1753_v40  ;;  %v855_v43 = vmul.f32 0.2, %v1785_v41  ;;  %vm791_vm1 = vcmp.gt.f32.partialorder %v1785_v41, 0.0 }
  0xfb   : > { %v502_v44 = vpop.f32.mrb[1].mxu0  ;;  %v630_v45 = vpop.f32.mrb[1].mxu1 }
  0xfc   : > { %v821_v46 = vmul.f32 0.2, %v502_v44  ;;  %v1754_v47 = vpop.f32.mrb[2].mxu0  ;;  %v1786_v48 = vpop.f32.mrb[2].mxu1  ;;  %v887_v49 = vsel %vm759_vm0, %v1753_v40, %v823_v42  ;;  %v853_v50 = vmul.f32 0.2, %v630_v45  ;;  %v919_v52 = vsel %vm791_vm1, %v1785_v41, %v855_v43 }
  0xfd   : > { %vm760_vm2 = vcmp.gt.f32.partialorder %v1754_v47, 0.0  ;;  %v824_v51 = vmul.f32 0.2, %v1754_v47  ;;  %vm757_vm3 = vcmp.gt.f32.partialorder %v502_v44, 0.0  ;;  %vm792_vm4 = vcmp.gt.f32.partialorder %v1786_v48, 0.0  ;;  %v505_v54 = vpop.f32.mrb[3].mxu0 }
  0xfe   : > { %v856_v53 = vmul.f32 0.2, %v1786_v48  ;;  %v633_v55 = vpop.f32.mrb[3].mxu1  ;;  %vm789_vm5 = vcmp.gt.f32.partialorder %v630_v45, 0.0  ;;  %vm758_vm6 = vcmp.gt.f32.partialorder %v505_v54, 0.0  ;;  %v885_v61 = vsel %vm757_vm3, %v502_v44, %v821_v46 }
  0xff   : > { %v888_v56 = vsel %vm760_vm2, %v1754_v47, %v824_v51  ;;  %v822_v57 = vmul.f32 0.2, %v505_v54  ;;  %vm790_vm7 = vcmp.gt.f32.partialorder %v633_v55, 0.0  ;;  %v854_v60 = vmul.f32 0.2, %v633_v55 }
 0x100   : > { %v1512_v58 = vpack.c.bf16 %v888_v56, %v887_v49  ;;  %v920_v59 = vsel %vm792_vm4, %v1786_v48, %v856_v53  ;;  %v917_v2 = vsel %vm789_vm5, %v630_v45, %v853_v50 }
 0x101   : > { %v1592_v62 = vpack.c.bf16 %v920_v59, %v919_v52  ;;  %v886_v63 = vsel %vm758_vm6, %v505_v54, %v822_v57  ;;  %v1757_v0 = vpop.f32.mrb[4].mxu0  ;;  %v1789_v1 = vpop.f32.mrb[4].mxu1  ;;  %v918_v4 = vsel %vm790_vm7, %v633_v55, %v854_v60 }
 0x102   : > { %1664 = vst [vmem:[%s1981_s6 + $0x8] sm:$0xff] %v1512_v58   ;;  %v1507_v3 = vpack.c.bf16 %v886_v63, %v885_v61  ;;  %v827_v5 = vmul.f32 0.2, %v1757_v0  ;;  %v518_v6 = vpop.f32.mrb[5].mxu0  ;;  %v646_v7 = vpop.f32.mrb[5].mxu1  ;;  %v1587_v8 = vpack.c.bf16 %v918_v4, %v917_v2  ;;  %vm763_vm8 = vcmp.gt.f32.partialorder %v1757_v0, 0.0 }
 0x103   : > { %1680 = vst [vmem:[%s1981_s6 + $0x88] sm:$0xff] %v1592_v62   ;;  %v859_v9 = vmul.f32 0.2, %v1789_v1  ;;  %v1758_v10 = vpop.f32.mrb[6].mxu0  ;;  %v1790_v11 = vpop.f32.mrb[6].mxu1  ;;  %vm795_vm9 = vcmp.gt.f32.partialorder %v1789_v1, 0.0 }
 0x104   : > { %1508 = vst [vmem:[%s1981_s6] sm:$0xff] %v1507_v3   ;;  %v825_v12 = vmul.f32 0.2, %v518_v6  ;;  %v857_v13 = vmul.f32 0.2, %v646_v7  ;;  %v521_v14 = vpop.f32.mrb[7].mxu0  ;;  %1679 = vst [vmem:[%s1981_s6 + $0x80] sm:$0xff] %v1587_v8   ;;  %v891_v17 = vsel %vm763_vm8, %v1757_v0, %v827_v5 }
 0x105   : > { %vm761_vm10 = vcmp.gt.f32.partialorder %v518_v6, 0.0  ;;  %vm764_vm11 = vcmp.gt.f32.partialorder %v1758_v10, 0.0  ;;  %v828_v15 = vmul.f32 0.2, %v1758_v10  ;;  %vm796_vm12 = vcmp.gt.f32.partialorder %v1790_v11, 0.0  ;;  %v649_v16 = vpop.f32.mrb[7].mxu1 }
 0x106   : > { %vm793_vm13 = vcmp.gt.f32.partialorder %v646_v7, 0.0  ;;  %v860_v18 = vmul.f32 0.2, %v1790_v11  ;;  %vm762_vm14 = vcmp.gt.f32.partialorder %v521_v14, 0.0  ;;  %v826_v20 = vmul.f32 0.2, %v521_v14 }
 0x107   : > { %v892_v19 = vsel %vm764_vm11, %v1758_v10, %v828_v15  ;;  %vm794_vm15 = vcmp.gt.f32.partialorder %v649_v16, 0.0  ;;  %v858_v21 = vmul.f32 0.2, %v649_v16  ;;  %v923_v22 = vsel %vm795_vm9, %v1789_v1, %v859_v9 }
 0x108   : > { %v889_v23 = vsel %vm761_vm10, %v518_v6, %v825_v12  ;;  %v1522_v24 = vpack.c.bf16 %v892_v19, %v891_v17  ;;  %v924_v25 = vsel %vm796_vm12, %v1790_v11, %v860_v18  ;;  %v921_v26 = vsel %vm793_vm13, %v646_v7, %v857_v13 }
 0x109   : > { %v1602_v27 = vpack.c.bf16 %v924_v25, %v923_v22  ;;  %v890_v28 = vsel %vm762_vm14, %v521_v14, %v826_v20  ;;  %v922_v29 = vsel %vm794_vm15, %v649_v16, %v858_v21  ;;  %v1761_v30 = vpop.f32.mrb[8].mxu0  ;;  %v1793_v31 = vpop.f32.mrb[8].mxu1 }
 0x10a   : > { %1666 = vst [vmem:[%s1981_s6 + $0x18] sm:$0xff] %v1522_v24   ;;  %v1517_v32 = vpack.c.bf16 %v890_v28, %v889_v23  ;;  %v1597_v33 = vpack.c.bf16 %v922_v29, %v921_v26  ;;  %vm767_vm0 = vcmp.gt.f32.partialorder %v1761_v30, 0.0  ;;  %v831_v34 = vmul.f32 0.2, %v1761_v30  ;;  %v534_v35 = vpop.f32.mrb[9].mxu0  ;;  %v662_v36 = vpop.f32.mrb[9].mxu1 }
 0x10b   : > { %1682 = vst [vmem:[%s1981_s6 + $0x98] sm:$0xff] %v1602_v27   ;;  %vm799_vm1 = vcmp.gt.f32.partialorder %v1793_v31, 0.0  ;;  %v863_v37 = vmul.f32 0.2, %v1793_v31  ;;  %v829_v38 = vmul.f32 0.2, %v534_v35 }
 0x10c   : > { %1665 = vst [vmem:[%s1981_s6 + $0x10] sm:$0xff] %v1517_v32   ;;  %1681 = vst [vmem:[%s1981_s6 + $0x90] sm:$0xff] %v1597_v33   ;;  %v861_v39 = vmul.f32 0.2, %v662_v36  ;;  %v1762_v40 = vpop.f32.mrb[10].mxu0  ;;  %v1794_v41 = vpop.f32.mrb[10].mxu1  ;;  %v895_v42 = vsel %vm767_vm0, %v1761_v30, %v831_v34 }
 0x10d   : > { %vm765_vm2 = vcmp.gt.f32.partialorder %v534_v35, 0.0  ;;  %vm768_vm3 = vcmp.gt.f32.partialorder %v1762_v40, 0.0  ;;  %v832_v43 = vmul.f32 0.2, %v1762_v40  ;;  %v537_v44 = vpop.f32.mrb[11].mxu0  ;;  %v665_v45 = vpop.f32.mrb[11].mxu1  ;;  %v927_v50 = vsel %vm799_vm1, %v1793_v31, %v863_v37 }
 0x10e   : > { %vm797_vm4 = vcmp.gt.f32.partialorder %v662_v36, 0.0  ;;  %vm800_vm5 = vcmp.gt.f32.partialorder %v1794_v41, 0.0  ;;  %v864_v46 = vmul.f32 0.2, %v1794_v41  ;;  %vm766_vm6 = vcmp.gt.f32.partialorder %v537_v44, 0.0 }
 0x10f   : > { %v896_v47 = vsel %vm768_vm3, %v1762_v40, %v832_v43  ;;  %v830_v48 = vmul.f32 0.2, %v537_v44  ;;  %vm798_vm7 = vcmp.gt.f32.partialorder %v665_v45, 0.0  ;;  %v862_v49 = vmul.f32 0.2, %v665_v45 }
 0x110   : > { %v893_v51 = vsel %vm765_vm2, %v534_v35, %v829_v38  ;;  %v1532_v52 = vpack.c.bf16 %v896_v47, %v895_v42  ;;  %v928_v53 = vsel %vm800_vm5, %v1794_v41, %v864_v46  ;;  %v925_v54 = vsel %vm797_vm4, %v662_v36, %v861_v39 }
 0x111   : > { %v1612_v55 = vpack.c.bf16 %v928_v53, %v927_v50  ;;  %v894_v56 = vsel %vm766_vm6, %v537_v44, %v830_v48  ;;  %v926_v57 = vsel %vm798_vm7, %v665_v45, %v862_v49  ;;  %v1765_v58 = vpop.f32.mrb[12].mxu0  ;;  %v1797_v59 = vpop.f32.mrb[12].mxu1 }
 0x112   : > { %1668 = vst [vmem:[%s1981_s6 + $0x28] sm:$0xff] %v1532_v52   ;;  %v1527_v60 = vpack.c.bf16 %v894_v56, %v893_v51  ;;  %v1607_v61 = vpack.c.bf16 %v926_v57, %v925_v54  ;;  %vm771_vm8 = vcmp.gt.f32.partialorder %v1765_v58, 0.0  ;;  %v835_v62 = vmul.f32 0.2, %v1765_v58  ;;  %v550_v63 = vpop.f32.mrb[13].mxu0  ;;  %v678_v0 = vpop.f32.mrb[13].mxu1 }
 0x113   : > { %1684 = vst [vmem:[%s1981_s6 + $0xa8] sm:$0xff] %v1612_v55   ;;  %vm803_vm9 = vcmp.gt.f32.partialorder %v1797_v59, 0.0  ;;  %v867_v1 = vmul.f32 0.2, %v1797_v59  ;;  %v833_v2 = vmul.f32 0.2, %v550_v63 }
 0x114   : > { %1667 = vst [vmem:[%s1981_s6 + $0x20] sm:$0xff] %v1527_v60   ;;  %1683 = vst [vmem:[%s1981_s6 + $0xa0] sm:$0xff] %v1607_v61   ;;  %v865_v3 = vmul.f32 0.2, %v678_v0  ;;  %v1766_v4 = vpop.f32.mrb[14].mxu0  ;;  %v1798_v5 = vpop.f32.mrb[14].mxu1  ;;  %v899_v6 = vsel %vm771_vm8, %v1765_v58, %v835_v62 }
 0x115   : > { %vm769_vm10 = vcmp.gt.f32.partialorder %v550_v63, 0.0  ;;  %vm772_vm11 = vcmp.gt.f32.partialorder %v1766_v4, 0.0  ;;  %v836_v7 = vmul.f32 0.2, %v1766_v4  ;;  %v553_v8 = vpop.f32.mrb[15].mxu0  ;;  %v681_v9 = vpop.f32.mrb[15].mxu1  ;;  %v931_v14 = vsel %vm803_vm9, %v1797_v59, %v867_v1 }
 0x116   : > { %vm801_vm12 = vcmp.gt.f32.partialorder %v678_v0, 0.0  ;;  %vm804_vm13 = vcmp.gt.f32.partialorder %v1798_v5, 0.0  ;;  %v868_v10 = vmul.f32 0.2, %v1798_v5  ;;  %vm770_vm14 = vcmp.gt.f32.partialorder %v553_v8, 0.0 }
 0x117   : > { %v900_v11 = vsel %vm772_vm11, %v1766_v4, %v836_v7  ;;  %v834_v12 = vmul.f32 0.2, %v553_v8  ;;  %vm802_vm15 = vcmp.gt.f32.partialorder %v681_v9, 0.0  ;;  %v866_v13 = vmul.f32 0.2, %v681_v9 }
 0x118   : > { %v897_v15 = vsel %vm769_vm10, %v550_v63, %v833_v2  ;;  %v1542_v16 = vpack.c.bf16 %v900_v11, %v899_v6  ;;  %v932_v17 = vsel %vm804_vm13, %v1798_v5, %v868_v10  ;;  %v929_v18 = vsel %vm801_vm12, %v678_v0, %v865_v3 }
 0x119   : > { %v1622_v19 = vpack.c.bf16 %v932_v17, %v931_v14  ;;  %v898_v20 = vsel %vm770_vm14, %v553_v8, %v834_v12  ;;  %v930_v21 = vsel %vm802_vm15, %v681_v9, %v866_v13  ;;  %v1769_v22 = vpop.f32.mrb[16].mxu0  ;;  %v1801_v23 = vpop.f32.mrb[16].mxu1 }
 0x11a   : > { %1670 = vst [vmem:[%s1981_s6 + $0x38] sm:$0xff] %v1542_v16   ;;  %v1537_v24 = vpack.c.bf16 %v898_v20, %v897_v15  ;;  %v1617_v25 = vpack.c.bf16 %v930_v21, %v929_v18  ;;  %vm775_vm0 = vcmp.gt.f32.partialorder %v1769_v22, 0.0  ;;  %v839_v26 = vmul.f32 0.2, %v1769_v22  ;;  %v566_v27 = vpop.f32.mrb[17].mxu0  ;;  %v694_v28 = vpop.f32.mrb[17].mxu1 }
 0x11b   : > { %1686 = vst [vmem:[%s1981_s6 + $0xb8] sm:$0xff] %v1622_v19   ;;  %vm807_vm1 = vcmp.gt.f32.partialorder %v1801_v23, 0.0  ;;  %v871_v29 = vmul.f32 0.2, %v1801_v23  ;;  %v837_v30 = vmul.f32 0.2, %v566_v27 }
 0x11c   : > { %1669 = vst [vmem:[%s1981_s6 + $0x30] sm:$0xff] %v1537_v24   ;;  %1685 = vst [vmem:[%s1981_s6 + $0xb0] sm:$0xff] %v1617_v25   ;;  %v869_v31 = vmul.f32 0.2, %v694_v28  ;;  %v1770_v32 = vpop.f32.mrb[18].mxu0  ;;  %v1802_v33 = vpop.f32.mrb[18].mxu1  ;;  %v903_v34 = vsel %vm775_vm0, %v1769_v22, %v839_v26 }
 0x11d   : > { %vm773_vm2 = vcmp.gt.f32.partialorder %v566_v27, 0.0  ;;  %vm776_vm3 = vcmp.gt.f32.partialorder %v1770_v32, 0.0  ;;  %v840_v35 = vmul.f32 0.2, %v1770_v32  ;;  %v569_v36 = vpop.f32.mrb[19].mxu0  ;;  %v697_v37 = vpop.f32.mrb[19].mxu1  ;;  %v935_v42 = vsel %vm807_vm1, %v1801_v23, %v871_v29 }
 0x11e   : > { %vm805_vm4 = vcmp.gt.f32.partialorder %v694_v28, 0.0  ;;  %vm808_vm5 = vcmp.gt.f32.partialorder %v1802_v33, 0.0  ;;  %v872_v38 = vmul.f32 0.2, %v1802_v33  ;;  %vm774_vm6 = vcmp.gt.f32.partialorder %v569_v36, 0.0 }
 0x11f   : > { %v904_v39 = vsel %vm776_vm3, %v1770_v32, %v840_v35  ;;  %v838_v40 = vmul.f32 0.2, %v569_v36  ;;  %vm806_vm7 = vcmp.gt.f32.partialorder %v697_v37, 0.0  ;;  %v870_v41 = vmul.f32 0.2, %v697_v37 }
 0x120   : > { %v901_v43 = vsel %vm773_vm2, %v566_v27, %v837_v30  ;;  %v1552_v44 = vpack.c.bf16 %v904_v39, %v903_v34  ;;  %v936_v45 = vsel %vm808_vm5, %v1802_v33, %v872_v38  ;;  %v933_v46 = vsel %vm805_vm4, %v694_v28, %v869_v31 }
 0x121   : > { %v1632_v47 = vpack.c.bf16 %v936_v45, %v935_v42  ;;  %v902_v48 = vsel %vm774_vm6, %v569_v36, %v838_v40  ;;  %v934_v49 = vsel %vm806_vm7, %v697_v37, %v870_v41  ;;  %v1773_v50 = vpop.f32.mrb[20].mxu0  ;;  %v1805_v51 = vpop.f32.mrb[20].mxu1 }
 0x122   : > { %1672 = vst [vmem:[%s1981_s6 + $0x48] sm:$0xff] %v1552_v44   ;;  %v1547_v52 = vpack.c.bf16 %v902_v48, %v901_v43  ;;  %v1627_v53 = vpack.c.bf16 %v934_v49, %v933_v46  ;;  %vm779_vm8 = vcmp.gt.f32.partialorder %v1773_v50, 0.0  ;;  %v843_v54 = vmul.f32 0.2, %v1773_v50  ;;  %v582_v55 = vpop.f32.mrb[21].mxu0  ;;  %v710_v56 = vpop.f32.mrb[21].mxu1 }
 0x123   : > { %1688 = vst [vmem:[%s1981_s6 + $0xc8] sm:$0xff] %v1632_v47   ;;  %vm811_vm9 = vcmp.gt.f32.partialorder %v1805_v51, 0.0  ;;  %v875_v57 = vmul.f32 0.2, %v1805_v51  ;;  %v841_v58 = vmul.f32 0.2, %v582_v55 }
 0x124   : > { %1671 = vst [vmem:[%s1981_s6 + $0x40] sm:$0xff] %v1547_v52   ;;  %1687 = vst [vmem:[%s1981_s6 + $0xc0] sm:$0xff] %v1627_v53   ;;  %v873_v59 = vmul.f32 0.2, %v710_v56  ;;  %v1774_v60 = vpop.f32.mrb[22].mxu0  ;;  %v1806_v61 = vpop.f32.mrb[22].mxu1  ;;  %v907_v62 = vsel %vm779_vm8, %v1773_v50, %v843_v54 }
 0x125   : > { %vm777_vm10 = vcmp.gt.f32.partialorder %v582_v55, 0.0  ;;  %vm780_vm11 = vcmp.gt.f32.partialorder %v1774_v60, 0.0  ;;  %v844_v63 = vmul.f32 0.2, %v1774_v60  ;;  %v585_v0 = vpop.f32.mrb[23].mxu0  ;;  %v713_v1 = vpop.f32.mrb[23].mxu1  ;;  %v939_v6 = vsel %vm811_vm9, %v1805_v51, %v875_v57 }
 0x126   : > { %vm809_vm12 = vcmp.gt.f32.partialorder %v710_v56, 0.0  ;;  %vm812_vm13 = vcmp.gt.f32.partialorder %v1806_v61, 0.0  ;;  %v876_v2 = vmul.f32 0.2, %v1806_v61  ;;  %vm778_vm14 = vcmp.gt.f32.partialorder %v585_v0, 0.0 }
 0x127   : > { %v908_v3 = vsel %vm780_vm11, %v1774_v60, %v844_v63  ;;  %v842_v4 = vmul.f32 0.2, %v585_v0  ;;  %vm810_vm15 = vcmp.gt.f32.partialorder %v713_v1, 0.0  ;;  %v874_v5 = vmul.f32 0.2, %v713_v1 }
 0x128   : > { %v905_v7 = vsel %vm777_vm10, %v582_v55, %v841_v58  ;;  %v1562_v8 = vpack.c.bf16 %v908_v3, %v907_v62  ;;  %v940_v9 = vsel %vm812_vm13, %v1806_v61, %v876_v2  ;;  %v937_v10 = vsel %vm809_vm12, %v710_v56, %v873_v59 }
 0x129   : > { %v1642_v11 = vpack.c.bf16 %v940_v9, %v939_v6  ;;  %v906_v12 = vsel %vm778_vm14, %v585_v0, %v842_v4  ;;  %v938_v13 = vsel %vm810_vm15, %v713_v1, %v874_v5  ;;  %v1777_v14 = vpop.f32.mrb[24].mxu0  ;;  %v1809_v15 = vpop.f32.mrb[24].mxu1 }
 0x12a   : > { %1674 = vst [vmem:[%s1981_s6 + $0x58] sm:$0xff] %v1562_v8   ;;  %v1557_v16 = vpack.c.bf16 %v906_v12, %v905_v7  ;;  %v1637_v17 = vpack.c.bf16 %v938_v13, %v937_v10  ;;  %vm783_vm0 = vcmp.gt.f32.partialorder %v1777_v14, 0.0  ;;  %v847_v18 = vmul.f32 0.2, %v1777_v14  ;;  %v598_v19 = vpop.f32.mrb[25].mxu0  ;;  %v726_v20 = vpop.f32.mrb[25].mxu1 }
 0x12b   : > { %1690 = vst [vmem:[%s1981_s6 + $0xd8] sm:$0xff] %v1642_v11   ;;  %vm815_vm1 = vcmp.gt.f32.partialorder %v1809_v15, 0.0  ;;  %v879_v21 = vmul.f32 0.2, %v1809_v15  ;;  %v845_v22 = vmul.f32 0.2, %v598_v19 }
 0x12c   : > { %1673 = vst [vmem:[%s1981_s6 + $0x50] sm:$0xff] %v1557_v16   ;;  %1689 = vst [vmem:[%s1981_s6 + $0xd0] sm:$0xff] %v1637_v17   ;;  %v877_v23 = vmul.f32 0.2, %v726_v20  ;;  %v1778_v24 = vpop.f32.mrb[26].mxu0  ;;  %v1810_v25 = vpop.f32.mrb[26].mxu1  ;;  %v911_v26 = vsel %vm783_vm0, %v1777_v14, %v847_v18 }
 0x12d   : > { %vm781_vm2 = vcmp.gt.f32.partialorder %v598_v19, 0.0  ;;  %vm784_vm3 = vcmp.gt.f32.partialorder %v1778_v24, 0.0  ;;  %v848_v27 = vmul.f32 0.2, %v1778_v24  ;;  %v601_v28 = vpop.f32.mrb[27].mxu0  ;;  %v729_v29 = vpop.f32.mrb[27].mxu1  ;;  %v943_v34 = vsel %vm815_vm1, %v1809_v15, %v879_v21 }
 0x12e   : > { %vm813_vm4 = vcmp.gt.f32.partialorder %v726_v20, 0.0  ;;  %vm816_vm5 = vcmp.gt.f32.partialorder %v1810_v25, 0.0  ;;  %v880_v30 = vmul.f32 0.2, %v1810_v25  ;;  %vm782_vm6 = vcmp.gt.f32.partialorder %v601_v28, 0.0 }
 0x12f   : > { %v912_v31 = vsel %vm784_vm3, %v1778_v24, %v848_v27  ;;  %v846_v32 = vmul.f32 0.2, %v601_v28  ;;  %vm814_vm7 = vcmp.gt.f32.partialorder %v729_v29, 0.0  ;;  %v878_v33 = vmul.f32 0.2, %v729_v29 }
 0x130   : > { %v909_v35 = vsel %vm781_vm2, %v598_v19, %v845_v22  ;;  %v1572_v36 = vpack.c.bf16 %v912_v31, %v911_v26  ;;  %v944_v37 = vsel %vm816_vm5, %v1810_v25, %v880_v30  ;;  %v941_v38 = vsel %vm813_vm4, %v726_v20, %v877_v23 }
 0x131   : > { %v1652_v39 = vpack.c.bf16 %v944_v37, %v943_v34  ;;  %v910_v40 = vsel %vm782_vm6, %v601_v28, %v846_v32  ;;  %v942_v41 = vsel %vm814_vm7, %v729_v29, %v878_v33  ;;  %v1781_v42 = vpop.f32.mrb[28].mxu0  ;;  %v1813_v43 = vpop.f32.mrb[28].mxu1 }
 0x132   : > { %1676 = vst [vmem:[%s1981_s6 + $0x68] sm:$0xff] %v1572_v36   ;;  %v1567_v44 = vpack.c.bf16 %v910_v40, %v909_v35  ;;  %v1647_v45 = vpack.c.bf16 %v942_v41, %v941_v38  ;;  %vm787_vm8 = vcmp.gt.f32.partialorder %v1781_v42, 0.0  ;;  %v851_v46 = vmul.f32 0.2, %v1781_v42  ;;  %v614_v47 = vpop.f32.mrb[29].mxu0  ;;  %v742_v48 = vpop.f32.mrb[29].mxu1 }
 0x133   : > { %1692 = vst [vmem:[%s1981_s6 + $0xe8] sm:$0xff] %v1652_v39   ;;  %vm819_vm9 = vcmp.gt.f32.partialorder %v1813_v43, 0.0  ;;  %v883_v49 = vmul.f32 0.2, %v1813_v43  ;;  %v849_v50 = vmul.f32 0.2, %v614_v47 }
 0x134   : > { %1675 = vst [vmem:[%s1981_s6 + $0x60] sm:$0xff] %v1567_v44   ;;  %1691 = vst [vmem:[%s1981_s6 + $0xe0] sm:$0xff] %v1647_v45   ;;  %v881_v51 = vmul.f32 0.2, %v742_v48  ;;  %v1782_v52 = vpop.f32.mrb[30].mxu0  ;;  %v1814_v53 = vpop.f32.mrb[30].mxu1  ;;  %v915_v54 = vsel %vm787_vm8, %v1781_v42, %v851_v46 }
 0x135   : > { %vm785_vm10 = vcmp.gt.f32.partialorder %v614_v47, 0.0  ;;  %vm788_vm11 = vcmp.gt.f32.partialorder %v1782_v52, 0.0  ;;  %v852_v55 = vmul.f32 0.2, %v1782_v52  ;;  %v617_v56 = vpop.f32.mrb[31].mxu0  ;;  %v745_v57 = vpop.f32.mrb[31].mxu1  ;;  %v947_v62 = vsel %vm819_vm9, %v1813_v43, %v883_v49 }
 0x136   : > { %vm817_vm12 = vcmp.gt.f32.partialorder %v742_v48, 0.0  ;;  %vm820_vm13 = vcmp.gt.f32.partialorder %v1814_v53, 0.0  ;;  %v884_v58 = vmul.f32 0.2, %v1814_v53  ;;  %vm786_vm14 = vcmp.gt.f32.partialorder %v617_v56, 0.0 }
 0x137   : > { %v916_v59 = vsel %vm788_vm11, %v1782_v52, %v852_v55  ;;  %v850_v60 = vmul.f32 0.2, %v617_v56  ;;  %vm818_vm15 = vcmp.gt.f32.partialorder %v745_v57, 0.0  ;;  %v882_v61 = vmul.f32 0.2, %v745_v57 }
 0x138   : > { %v913_v63 = vsel %vm785_vm10, %v614_v47, %v849_v50  ;;  %v1582_v0 = vpack.c.bf16 %v916_v59, %v915_v54  ;;  %v948_v1 = vsel %vm820_vm13, %v1814_v53, %v884_v58  ;;  %v945_v2 = vsel %vm817_vm12, %v742_v48, %v881_v51 }
 0x139   : > { %v1662_v3 = vpack.c.bf16 %v948_v1, %v947_v62  ;;  %v914_v4 = vsel %vm786_vm14, %v617_v56, %v850_v60  ;;  %v946_v5 = vsel %vm818_vm15, %v745_v57, %v882_v61 }
 0x13a   : > { %1678 = vst [vmem:[%s1981_s6 + $0x78] sm:$0xff] %v1582_v0   ;;  %v1577_v6 = vpack.c.bf16 %v914_v4, %v913_v63  ;;  %v1657_v7 = vpack.c.bf16 %v946_v5, %v945_v2 }
 0x13b   : > { %1694 = vst [vmem:[%s1981_s6 + $0xf8] sm:$0xff] %v1662_v3  }
 0x13c   : > { %1677 = vst [vmem:[%s1981_s6 + $0x70] sm:$0xff] %v1577_v6   ;;  %1693 = vst [vmem:[%s1981_s6 + $0xf0] sm:$0xff] %v1657_v7  }
 0x13d PF: > { %s12_s9 = sadd.s32 1, %s1885_s9  }
 0x13e   : > { %p9_p4 = scmp.ge.s32.totalorder %s12_s9, 6  }
 0x140   :  { %11 = sbr.rel (!%p9_p4) target bundleno = 1 (0x1), region = 58 }

// kernel: discriminator_forward.9
= control target key start
LH: loop header
LB: loop body
LE: loop exit
PB: predicated region body
PF: predicated region fallthrough
CT: control target
= control target key end

     0   :  { %v1518_v40 = vmov 0.0   ;;  %s2066_s1 = inlined_call_operand.vmem [shape: bf16[128,128], index: 1, kind: input, shape index: {}]   ;;  %s2067_s0 = inlined_call_operand.vmem [shape: bf16[512,128], index: 0, kind: input, shape index: {}]   ;;  %s2068_s3 = inlined_call_operand.vmem [shape: f32[1,128], index: 3, kind: output, shape index: {1}]   ;;  %s2069_s4 = inlined_call_operand.vmem [shape: f32[1,128], index: 4, kind: output, shape index: {2}]   ;;  %s2070_s2 = inlined_call_operand.vmem [shape: f32[512,128], index: 2, kind: output, shape index: {0}]  }
   0x1   :  { %v1478_v0 = vld [vmem:[%s2066_s1] sm:$0xff]   ;;  %v1479_v1 = vld [vmem:[%s2066_s1 + $0x8] sm:$0xff]   ;;  %v1480_v2 = vld [vmem:[%s2066_s1 + $0x10] sm:$0xff]   ;;  %692 = vst [vmem:[%s2068_s3] sm:$0x1] %v1518_v40 }
   0x2   :  { %1381 = vmatprep.subr.bf16.mxu0 %v1478_v0  ;;  %1461 = vmatprep.subr.bf16.mxu1 %v1478_v0  ;;  %v1481_v3 = vld [vmem:[%s2066_s1 + $0x18] sm:$0xff]   ;;  %v1486_v4 = vld [vmem:[%s2067_s0] sm:$0xff]   ;;  %v1483_v6 = vld [vmem:[%s2066_s1 + $0x28] sm:$0xff]   ;;  %693 = vst [vmem:[%s2069_s4] sm:$0x1] %v1518_v40 }
   0x3   :  { %1382 = vmatpush3.bf16.msra.mxu0 %v1478_v0  ;;  %1469 = vmatpush3.bf16.msra.mxu1 %v1478_v0  ;;  %v1482_v5 = vld [vmem:[%s2066_s1 + $0x20] sm:$0xff]   ;;  %v1484_v7 = vld [vmem:[%s2066_s1 + $0x30] sm:$0xff]   ;;  %v1485_v8 = vld [vmem:[%s2066_s1 + $0x38] sm:$0xff]  }
   0x4   :  { %1383 = vmatprep.subr.bf16.mxu0 %v1479_v1  ;;  %1462 = vmatprep.subr.bf16.mxu1 %v1479_v1  ;;  %v1502_v9 = vld [vmem:[%s2067_s0 + $0x80] sm:$0xff]   ;;  %v1487_v10 = vld [vmem:[%s2067_s0 + $0x8] sm:$0xff]   ;;  %v1488_v11 = vld [vmem:[%s2067_s0 + $0x10] sm:$0xff]  }
   0x5   :  { %1397 = vmatprep.mubr.bf16.mxu0 %v1486_v4  ;;  %1429 = vmatprep.mubr.bf16.mxu1 %v1502_v9  ;;  %v1503_v12 = vld [vmem:[%s2067_s0 + $0x88] sm:$0xff]   ;;  %v1504_v13 = vld [vmem:[%s2067_s0 + $0x90] sm:$0xff]   ;;  %v1489_v14 = vld [vmem:[%s2067_s0 + $0x18] sm:$0xff]  }
   0x6   :  { %v1490_v15 = vld [vmem:[%s2067_s0 + $0x20] sm:$0xff]   ;;  %v1505_v16 = vld [vmem:[%s2067_s0 + $0x98] sm:$0xff]   ;;  %v1491_v18 = vld [vmem:[%s2067_s0 + $0x28] sm:$0xff]  }
   0x7   :  { %1384 = vmatpush3.bf16.msra.mxu0 %v1479_v1  ;;  %1470 = vmatpush3.bf16.msra.mxu1 %v1479_v1  ;;  %v1506_v17 = vld [vmem:[%s2067_s0 + $0xa0] sm:$0xff]   ;;  %v1507_v19 = vld [vmem:[%s2067_s0 + $0xa8] sm:$0xff]   ;;  %v1492_v20 = vld [vmem:[%s2067_s0 + $0x30] sm:$0xff]  }
   0x8   :  { %1385 = vmatprep.subr.bf16.mxu0 %v1480_v2  ;;  %1463 = vmatprep.subr.bf16.mxu1 %v1480_v2  ;;  %v1508_v21 = vld [vmem:[%s2067_s0 + $0xb0] sm:$0xff]   ;;  %v1493_v22 = vld [vmem:[%s2067_s0 + $0x38] sm:$0xff]   ;;  %v1494_v24 = vld [vmem:[%s2067_s0 + $0x40] sm:$0xff]  }
   0x9   :  { %v1509_v23 = vld [vmem:[%s2067_s0 + $0xb8] sm:$0xff]   ;;  %v1510_v25 = vld [vmem:[%s2067_s0 + $0xc0] sm:$0xff]   ;;  %v1495_v26 = vld [vmem:[%s2067_s0 + $0x48] sm:$0xff]  }
   0xa   :  { %v1511_v27 = vld [vmem:[%s2067_s0 + $0xc8] sm:$0xff]   ;;  %v1496_v28 = vld [vmem:[%s2067_s0 + $0x50] sm:$0xff]   ;;  %v1497_v30 = vld [vmem:[%s2067_s0 + $0x58] sm:$0xff]  }
   0xb   :  { %1386 = vmatpush3.bf16.msra.mxu0 %v1480_v2  ;;  %1471 = vmatpush3.bf16.msra.mxu1 %v1480_v2  ;;  %v1512_v29 = vld [vmem:[%s2067_s0 + $0xd0] sm:$0xff]   ;;  %v1513_v31 = vld [vmem:[%s2067_s0 + $0xd8] sm:$0xff]   ;;  %v1498_v32 = vld [vmem:[%s2067_s0 + $0x60] sm:$0xff]  }
   0xc   :  { %1387 = vmatprep.subr.bf16.mxu0 %v1481_v3  ;;  %1464 = vmatprep.subr.bf16.mxu1 %v1481_v3  ;;  %v1514_v33 = vld [vmem:[%s2067_s0 + $0xe0] sm:$0xff]   ;;  %v1499_v34 = vld [vmem:[%s2067_s0 + $0x68] sm:$0xff]   ;;  %v1500_v36 = vld [vmem:[%s2067_s0 + $0x70] sm:$0xff]  }
   0xd   :  { %v1515_v35 = vld [vmem:[%s2067_s0 + $0xe8] sm:$0xff]   ;;  %v1516_v37 = vld [vmem:[%s2067_s0 + $0xf0] sm:$0xff]   ;;  %v1501_v38 = vld [vmem:[%s2067_s0 + $0x78] sm:$0xff]  }
   0xe   :  { %v1517_v39 = vld [vmem:[%s2067_s0 + $0xf8] sm:$0xff]  }
   0xf   :  { %1388 = vmatpush3.bf16.msra.mxu0 %v1481_v3  ;;  %1472 = vmatpush3.bf16.msra.mxu1 %v1481_v3 }
  0x10   :  { %1389 = vmatprep.subr.bf16.mxu0 %v1482_v5  ;;  %1465 = vmatprep.subr.bf16.mxu1 %v1482_v5 }
  0x13   :  { %1390 = vmatpush3.bf16.msra.mxu0 %v1482_v5  ;;  %1473 = vmatpush3.bf16.msra.mxu1 %v1482_v5 }
  0x14   :  { %1391 = vmatprep.subr.bf16.mxu0 %v1483_v6  ;;  %1466 = vmatprep.subr.bf16.mxu1 %v1483_v6 }
  0x17   :  { %1392 = vmatpush3.bf16.msra.mxu0 %v1483_v6  ;;  %1474 = vmatpush3.bf16.msra.mxu1 %v1483_v6 }
  0x18   :  { %1393 = vmatprep.subr.bf16.mxu0 %v1484_v7  ;;  %1467 = vmatprep.subr.bf16.mxu1 %v1484_v7 }
  0x1b   :  { %1394 = vmatpush3.bf16.msra.mxu0 %v1484_v7  ;;  %1475 = vmatpush3.bf16.msra.mxu1 %v1484_v7 }
  0x1c   :  { %1395 = vmatprep.subr.bf16.mxu0 %v1485_v8  ;;  %1468 = vmatprep.subr.bf16.mxu1 %v1485_v8 }
  0x1f   :  { %1396 = vmatpush3.bf16.msra.mxu0 %v1485_v8  ;;  %1476 = vmatpush3.bf16.msra.mxu1 %v1485_v8 }
  0x22   :  { %1398 = vmatmul.mubr.bf16.vlgmr.msra.gmra.mrb[0].mxu0 %v1487_v10  ;;  %1430 = vmatmul.mubr.bf16.vlgmr.msra.gmra.mrb[0].mxu1 %v1503_v12 }
  0x23   :  { %1401 = vmatprep.mubr.bf16.mxu0 %v1488_v11  ;;  %1433 = vmatprep.mubr.bf16.mxu1 %v1504_v13 }
  0x2a   :  { %1402 = vmatmul.mubr.bf16.gmra.mrb[4].mxu0 %v1489_v14  ;;  %1434 = vmatmul.mubr.bf16.gmra.mrb[4].mxu1 %v1505_v16 }
  0x2b   :  { %1405 = vmatprep.mubr.bf16.mxu0 %v1490_v15  ;;  %1437 = vmatprep.mubr.bf16.mxu1 %v1506_v17 }
  0x32   :  { %1406 = vmatmul.mubr.bf16.gmra.mrb[8].mxu0 %v1491_v18  ;;  %1438 = vmatmul.mubr.bf16.gmra.mrb[8].mxu1 %v1507_v19 }
  0x33   :  { %1409 = vmatprep.mubr.bf16.mxu0 %v1492_v20  ;;  %1441 = vmatprep.mubr.bf16.mxu1 %v1508_v21 }
  0x3a   :  { %1410 = vmatmul.mubr.bf16.gmra.mrb[12].mxu0 %v1493_v22  ;;  %1442 = vmatmul.mubr.bf16.gmra.mrb[12].mxu1 %v1509_v23 }
  0x3b   :  { %1413 = vmatprep.mubr.bf16.mxu0 %v1494_v24  ;;  %1445 = vmatprep.mubr.bf16.mxu1 %v1510_v25 }
  0x42   :  { %1414 = vmatmul.mubr.bf16.gmra.mrb[16].mxu0 %v1495_v26  ;;  %1446 = vmatmul.mubr.bf16.gmra.mrb[16].mxu1 %v1511_v27 }
  0x43   :  { %1417 = vmatprep.mubr.bf16.mxu0 %v1496_v28  ;;  %1449 = vmatprep.mubr.bf16.mxu1 %v1512_v29 }
  0x4a   :  { %1418 = vmatmul.mubr.bf16.gmra.mrb[20].mxu0 %v1497_v30  ;;  %1450 = vmatmul.mubr.bf16.gmra.mrb[20].mxu1 %v1513_v31 }
  0x4b   :  { %1421 = vmatprep.mubr.bf16.mxu0 %v1498_v32  ;;  %1453 = vmatprep.mubr.bf16.mxu1 %v1514_v33 }
  0x52   :  { %1422 = vmatmul.mubr.bf16.gmra.mrb[24].mxu0 %v1499_v34  ;;  %1454 = vmatmul.mubr.bf16.gmra.mrb[24].mxu1 %v1515_v35 }
  0x53   :  { %1425 = vmatprep.mubr.bf16.mxu0 %v1500_v36  ;;  %1457 = vmatprep.mubr.bf16.mxu1 %v1516_v37 }
  0x5a   :  { %1426 = vmatmul.mubr.bf16.gmra.mrb[28].mxu0 %v1501_v38  ;;  %1458 = vmatmul.mubr.bf16.gmra.mrb[28].mxu1 %v1517_v39 }
  0xf5   :  { %v1399_v41 = vpop.f32.mrb[0].mxu0  ;;  %v1670_v42 = vpop.f32.mrb[0].mxu1 }
  0xf6   :  { %626 = vst [vmem:[%s2070_s2 + $0x10] sm:$0xff] %v1399_v41  ;;  %v369_v43 = vpop.f32.mrb[1].mxu0  ;;  %658 = vst [vmem:[%s2070_s2 + $0x110] sm:$0xff] %v1670_v42  ;;  %v1679_v44 = vpop.f32.mrb[1].mxu1  ;;  %v1156_v52 = vmul.f32 %v1399_v41, %v1399_v41 }
  0xf7   :  { %624 = vst [vmem:[%s2070_s2] sm:$0xff] %v369_v43  ;;  %v1400_v45 = vpop.f32.mrb[2].mxu0  ;;  %656 = vst [vmem:[%s2070_s2 + $0x100] sm:$0xff] %v1679_v44  ;;  %v1688_v46 = vpop.f32.mrb[2].mxu1  ;;  %v1154_v49 = vmul.f32 %v369_v43, %v369_v43 }
  0xf8   :  { %627 = vst [vmem:[%s2070_s2 + $0x18] sm:$0xff] %v1400_v45  ;;  %v372_v47 = vpop.f32.mrb[3].mxu0  ;;  %659 = vst [vmem:[%s2070_s2 + $0x118] sm:$0xff] %v1688_v46  ;;  %v1697_v48 = vpop.f32.mrb[3].mxu1  ;;  %v1157_v55 = vmul.f32 %v1400_v45, %v1400_v45 }
  0xf9   :  { %625 = vst [vmem:[%s2070_s2 + $0x8] sm:$0xff] %v372_v47  ;;  %v1082_v50 = vadd.f32 %v372_v47, %v369_v43  ;;  %v1155_v51 = vmul.f32 %v372_v47, %v372_v47  ;;  %657 = vst [vmem:[%s2070_s2 + $0x108] sm:$0xff] %v1697_v48 }
  0xfb   :  { %v1083_v53 = vadd.f32 %v1399_v41, %v1082_v50  ;;  %v1218_v54 = vadd.f32 %v1155_v51, %v1154_v49 }
  0xfd   :  { %v1219_v56 = vadd.f32 %v1218_v54, %v1156_v52  ;;  %v1403_v57 = vpop.f32.mrb[4].mxu0  ;;  %v1084_v58 = vadd.f32 %v1400_v45, %v1083_v53  ;;  %v1706_v59 = vpop.f32.mrb[4].mxu1 }
  0xfe   :  { %630 = vst [vmem:[%s2070_s2 + $0x30] sm:$0xff] %v1403_v57  ;;  %v385_v60 = vpop.f32.mrb[5].mxu0  ;;  %662 = vst [vmem:[%s2070_s2 + $0x130] sm:$0xff] %v1706_v59  ;;  %v1715_v61 = vpop.f32.mrb[5].mxu1  ;;  %v1160_v8 = vmul.f32 %v1403_v57, %v1403_v57 }
  0xff   :  { %628 = vst [vmem:[%s2070_s2 + $0x20] sm:$0xff] %v385_v60  ;;  %v1085_v62 = vadd.f32 %v1084_v58, %v385_v60  ;;  %v1158_v63 = vmul.f32 %v385_v60, %v385_v60  ;;  %v1220_v0 = vadd.f32 %v1219_v56, %v1157_v55  ;;  %v1404_v1 = vpop.f32.mrb[6].mxu0  ;;  %660 = vst [vmem:[%s2070_s2 + $0x120] sm:$0xff] %v1715_v61  ;;  %v1724_v2 = vpop.f32.mrb[6].mxu1 }
 0x100   :  { %631 = vst [vmem:[%s2070_s2 + $0x38] sm:$0xff] %v1404_v1  ;;  %v388_v3 = vpop.f32.mrb[7].mxu0  ;;  %663 = vst [vmem:[%s2070_s2 + $0x138] sm:$0xff] %v1724_v2  ;;  %v1733_v4 = vpop.f32.mrb[7].mxu1  ;;  %v1161_v11 = vmul.f32 %v1404_v1, %v1404_v1 }
 0x101   :  { %v1221_v5 = vadd.f32 %v1220_v0, %v1158_v63  ;;  %629 = vst [vmem:[%s2070_s2 + $0x28] sm:$0xff] %v388_v3  ;;  %v1086_v6 = vadd.f32 %v1085_v62, %v388_v3  ;;  %v1159_v7 = vmul.f32 %v388_v3, %v388_v3  ;;  %661 = vst [vmem:[%s2070_s2 + $0x128] sm:$0xff] %v1733_v4 }
 0x103   :  { %v1087_v9 = vadd.f32 %v1403_v57, %v1086_v6  ;;  %v1222_v10 = vadd.f32 %v1221_v5, %v1159_v7 }
 0x105   :  { %v1223_v12 = vadd.f32 %v1222_v10, %v1160_v8  ;;  %v1407_v13 = vpop.f32.mrb[8].mxu0  ;;  %v1088_v14 = vadd.f32 %v1404_v1, %v1087_v9  ;;  %v1742_v15 = vpop.f32.mrb[8].mxu1 }
 0x106   :  { %634 = vst [vmem:[%s2070_s2 + $0x50] sm:$0xff] %v1407_v13  ;;  %v401_v16 = vpop.f32.mrb[9].mxu0  ;;  %666 = vst [vmem:[%s2070_s2 + $0x150] sm:$0xff] %v1742_v15  ;;  %v1751_v17 = vpop.f32.mrb[9].mxu1  ;;  %v1164_v28 = vmul.f32 %v1407_v13, %v1407_v13 }
 0x107   :  { %632 = vst [vmem:[%s2070_s2 + $0x40] sm:$0xff] %v401_v16  ;;  %v1089_v18 = vadd.f32 %v1088_v14, %v401_v16  ;;  %v1162_v19 = vmul.f32 %v401_v16, %v401_v16  ;;  %v1224_v20 = vadd.f32 %v1223_v12, %v1161_v11  ;;  %v1408_v21 = vpop.f32.mrb[10].mxu0  ;;  %664 = vst [vmem:[%s2070_s2 + $0x140] sm:$0xff] %v1751_v17  ;;  %v1760_v22 = vpop.f32.mrb[10].mxu1 }
 0x108   :  { %635 = vst [vmem:[%s2070_s2 + $0x58] sm:$0xff] %v1408_v21  ;;  %v404_v23 = vpop.f32.mrb[11].mxu0  ;;  %667 = vst [vmem:[%s2070_s2 + $0x158] sm:$0xff] %v1760_v22  ;;  %v1769_v24 = vpop.f32.mrb[11].mxu1  ;;  %v1165_v31 = vmul.f32 %v1408_v21, %v1408_v21 }
 0x109   :  { %v1225_v25 = vadd.f32 %v1224_v20, %v1162_v19  ;;  %633 = vst [vmem:[%s2070_s2 + $0x48] sm:$0xff] %v404_v23  ;;  %v1090_v26 = vadd.f32 %v1089_v18, %v404_v23  ;;  %v1163_v27 = vmul.f32 %v404_v23, %v404_v23  ;;  %665 = vst [vmem:[%s2070_s2 + $0x148] sm:$0xff] %v1769_v24 }
 0x10b   :  { %v1091_v29 = vadd.f32 %v1407_v13, %v1090_v26  ;;  %v1226_v30 = vadd.f32 %v1225_v25, %v1163_v27 }
 0x10d   :  { %v1227_v32 = vadd.f32 %v1226_v30, %v1164_v28  ;;  %v1411_v33 = vpop.f32.mrb[12].mxu0  ;;  %v1092_v34 = vadd.f32 %v1408_v21, %v1091_v29  ;;  %v1778_v35 = vpop.f32.mrb[12].mxu1 }
 0x10e   :  { %638 = vst [vmem:[%s2070_s2 + $0x70] sm:$0xff] %v1411_v33  ;;  %v417_v36 = vpop.f32.mrb[13].mxu0  ;;  %670 = vst [vmem:[%s2070_s2 + $0x170] sm:$0xff] %v1778_v35  ;;  %v1787_v37 = vpop.f32.mrb[13].mxu1  ;;  %v1168_v52 = vmul.f32 %v1411_v33, %v1411_v33 }
 0x10f   :  { %636 = vst [vmem:[%s2070_s2 + $0x60] sm:$0xff] %v417_v36  ;;  %v1093_v38 = vadd.f32 %v1092_v34, %v417_v36  ;;  %v1166_v39 = vmul.f32 %v417_v36, %v417_v36  ;;  %v1228_v40 = vadd.f32 %v1227_v32, %v1165_v31  ;;  %v1412_v41 = vpop.f32.mrb[14].mxu0  ;;  %668 = vst [vmem:[%s2070_s2 + $0x160] sm:$0xff] %v1787_v37  ;;  %v1796_v43 = vpop.f32.mrb[14].mxu1 }
 0x110   :  { %639 = vst [vmem:[%s2070_s2 + $0x78] sm:$0xff] %v1412_v41  ;;  %v420_v45 = vpop.f32.mrb[15].mxu0  ;;  %671 = vst [vmem:[%s2070_s2 + $0x178] sm:$0xff] %v1796_v43  ;;  %v1805_v47 = vpop.f32.mrb[15].mxu1  ;;  %v1169_v55 = vmul.f32 %v1412_v41, %v1412_v41 }
 0x111   :  { %v1229_v49 = vadd.f32 %v1228_v40, %v1166_v39  ;;  %637 = vst [vmem:[%s2070_s2 + $0x68] sm:$0xff] %v420_v45  ;;  %v1094_v50 = vadd.f32 %v1093_v38, %v420_v45  ;;  %v1167_v51 = vmul.f32 %v420_v45, %v420_v45  ;;  %669 = vst [vmem:[%s2070_s2 + $0x168] sm:$0xff] %v1805_v47 }
 0x113   :  { %v1095_v53 = vadd.f32 %v1411_v33, %v1094_v50  ;;  %v1230_v54 = vadd.f32 %v1229_v49, %v1167_v51 }
 0x115   :  { %v1231_v56 = vadd.f32 %v1230_v54, %v1168_v52  ;;  %v1415_v57 = vpop.f32.mrb[16].mxu0  ;;  %v1096_v58 = vadd.f32 %v1412_v41, %v1095_v53  ;;  %v1814_v60 = vpop.f32.mrb[16].mxu1 }
 0x116   :  { %642 = vst [vmem:[%s2070_s2 + $0x90] sm:$0xff] %v1415_v57  ;;  %v433_v62 = vpop.f32.mrb[17].mxu0  ;;  %674 = vst [vmem:[%s2070_s2 + $0x190] sm:$0xff] %v1814_v60  ;;  %v1823_v63 = vpop.f32.mrb[17].mxu1  ;;  %v1172_v12 = vmul.f32 %v1415_v57, %v1415_v57 }
 0x117   :  { %640 = vst [vmem:[%s2070_s2 + $0x80] sm:$0xff] %v433_v62  ;;  %v1097_v0 = vadd.f32 %v1096_v58, %v433_v62  ;;  %v1170_v1 = vmul.f32 %v433_v62, %v433_v62  ;;  %v1232_v3 = vadd.f32 %v1231_v56, %v1169_v55  ;;  %v1416_v5 = vpop.f32.mrb[18].mxu0  ;;  %672 = vst [vmem:[%s2070_s2 + $0x180] sm:$0xff] %v1823_v63  ;;  %v1832_v6 = vpop.f32.mrb[18].mxu1 }
 0x118   :  { %643 = vst [vmem:[%s2070_s2 + $0x98] sm:$0xff] %v1416_v5  ;;  %v436_v7 = vpop.f32.mrb[19].mxu0  ;;  %675 = vst [vmem:[%s2070_s2 + $0x198] sm:$0xff] %v1832_v6  ;;  %v1841_v8 = vpop.f32.mrb[19].mxu1  ;;  %v1173_v16 = vmul.f32 %v1416_v5, %v1416_v5 }
 0x119   :  { %v1233_v9 = vadd.f32 %v1232_v3, %v1170_v1  ;;  %641 = vst [vmem:[%s2070_s2 + $0x88] sm:$0xff] %v436_v7  ;;  %v1098_v10 = vadd.f32 %v1097_v0, %v436_v7  ;;  %v1171_v11 = vmul.f32 %v436_v7, %v436_v7  ;;  %673 = vst [vmem:[%s2070_s2 + $0x188] sm:$0xff] %v1841_v8 }
 0x11b   :  { %v1099_v13 = vadd.f32 %v1415_v57, %v1098_v10  ;;  %v1234_v14 = vadd.f32 %v1233_v9, %v1171_v11 }
 0x11d   :  { %v1235_v18 = vadd.f32 %v1234_v14, %v1172_v12  ;;  %v1419_v19 = vpop.f32.mrb[20].mxu0  ;;  %v1100_v20 = vadd.f32 %v1416_v5, %v1099_v13  ;;  %v1850_v21 = vpop.f32.mrb[20].mxu1 }
 0x11e   :  { %646 = vst [vmem:[%s2070_s2 + $0xb0] sm:$0xff] %v1419_v19  ;;  %v449_v23 = vpop.f32.mrb[21].mxu0  ;;  %678 = vst [vmem:[%s2070_s2 + $0x1b0] sm:$0xff] %v1850_v21  ;;  %v1859_v25 = vpop.f32.mrb[21].mxu1  ;;  %v1176_v38 = vmul.f32 %v1419_v19, %v1419_v19 }
 0x11f   :  { %644 = vst [vmem:[%s2070_s2 + $0xa0] sm:$0xff] %v449_v23  ;;  %v1101_v26 = vadd.f32 %v1100_v20, %v449_v23  ;;  %v1174_v27 = vmul.f32 %v449_v23, %v449_v23  ;;  %v1236_v28 = vadd.f32 %v1235_v18, %v1173_v16  ;;  %v1420_v29 = vpop.f32.mrb[22].mxu0  ;;  %676 = vst [vmem:[%s2070_s2 + $0x1a0] sm:$0xff] %v1859_v25  ;;  %v1868_v30 = vpop.f32.mrb[22].mxu1 }
 0x120   :  { %647 = vst [vmem:[%s2070_s2 + $0xb8] sm:$0xff] %v1420_v29  ;;  %v452_v31 = vpop.f32.mrb[23].mxu0  ;;  %679 = vst [vmem:[%s2070_s2 + $0x1b8] sm:$0xff] %v1868_v30  ;;  %v1877_v32 = vpop.f32.mrb[23].mxu1  ;;  %v1177_v41 = vmul.f32 %v1420_v29, %v1420_v29 }
 0x121   :  { %v1237_v33 = vadd.f32 %v1236_v28, %v1174_v27  ;;  %645 = vst [vmem:[%s2070_s2 + $0xa8] sm:$0xff] %v452_v31  ;;  %v1102_v34 = vadd.f32 %v1101_v26, %v452_v31  ;;  %v1175_v36 = vmul.f32 %v452_v31, %v452_v31  ;;  %677 = vst [vmem:[%s2070_s2 + $0x1a8] sm:$0xff] %v1877_v32 }
 0x123   :  { %v1103_v39 = vadd.f32 %v1419_v19, %v1102_v34  ;;  %v1238_v40 = vadd.f32 %v1237_v33, %v1175_v36 }
 0x125   :  { %v1239_v45 = vadd.f32 %v1238_v40, %v1176_v38  ;;  %v1423_v49 = vpop.f32.mrb[24].mxu0  ;;  %v1104_v50 = vadd.f32 %v1420_v29, %v1103_v39  ;;  %v1886_v51 = vpop.f32.mrb[24].mxu1 }
 0x126   :  { %650 = vst [vmem:[%s2070_s2 + $0xd0] sm:$0xff] %v1423_v49  ;;  %v465_v52 = vpop.f32.mrb[25].mxu0  ;;  %682 = vst [vmem:[%s2070_s2 + $0x1d0] sm:$0xff] %v1886_v51  ;;  %v1895_v53 = vpop.f32.mrb[25].mxu1  ;;  %v1180_v7 = vmul.f32 %v1423_v49, %v1423_v49 }
 0x127   :  { %648 = vst [vmem:[%s2070_s2 + $0xc0] sm:$0xff] %v465_v52  ;;  %v1105_v54 = vadd.f32 %v1104_v50, %v465_v52  ;;  %v1178_v55 = vmul.f32 %v465_v52, %v465_v52  ;;  %v1240_v56 = vadd.f32 %v1239_v45, %v1177_v41  ;;  %v1424_v57 = vpop.f32.mrb[26].mxu0  ;;  %680 = vst [vmem:[%s2070_s2 + $0x1c0] sm:$0xff] %v1895_v53  ;;  %v1904_v58 = vpop.f32.mrb[26].mxu1 }
 0x128   :  { %651 = vst [vmem:[%s2070_s2 + $0xd8] sm:$0xff] %v1424_v57  ;;  %v468_v62 = vpop.f32.mrb[27].mxu0  ;;  %683 = vst [vmem:[%s2070_s2 + $0x1d8] sm:$0xff] %v1904_v58  ;;  %v1913_v0 = vpop.f32.mrb[27].mxu1  ;;  %v1181_v11 = vmul.f32 %v1424_v57, %v1424_v57  ;;  %v1186_v50 = vmul.f32 %v1679_v44, %v1679_v44 }
 0x129   :  { %v1241_v1 = vadd.f32 %v1240_v56, %v1178_v55  ;;  %649 = vst [vmem:[%s2070_s2 + $0xc8] sm:$0xff] %v468_v62  ;;  %v1106_v3 = vadd.f32 %v1105_v54, %v468_v62  ;;  %v1179_v5 = vmul.f32 %v468_v62, %v468_v62  ;;  %681 = vst [vmem:[%s2070_s2 + $0x1c8] sm:$0xff] %v1913_v0 }
 0x12a   :  { %v1188_v62 = vmul.f32 %v1670_v42, %v1670_v42 }
 0x12b   :  { %v1107_v9 = vadd.f32 %v1423_v49, %v1106_v3  ;;  %v1242_v10 = vadd.f32 %v1241_v1, %v1179_v5  ;;  %v1189_v5 = vmul.f32 %v1688_v46, %v1688_v46 }
 0x12d   :  { %v1243_v12 = vadd.f32 %v1242_v10, %v1180_v7  ;;  %v1427_v13 = vpop.f32.mrb[28].mxu0  ;;  %v1108_v14 = vadd.f32 %v1424_v57, %v1107_v9  ;;  %v1922_v16 = vpop.f32.mrb[28].mxu1  ;;  %v1187_v57 = vmul.f32 %v1697_v48, %v1697_v48 }
 0x12e   :  { %654 = vst [vmem:[%s2070_s2 + $0xf0] sm:$0xff] %v1427_v13  ;;  %v481_v18 = vpop.f32.mrb[29].mxu0  ;;  %686 = vst [vmem:[%s2070_s2 + $0x1f0] sm:$0xff] %v1922_v16  ;;  %v1931_v19 = vpop.f32.mrb[29].mxu1  ;;  %v1184_v38 = vmul.f32 %v1427_v13, %v1427_v13 }
 0x12f   :  { %652 = vst [vmem:[%s2070_s2 + $0xe0] sm:$0xff] %v481_v18  ;;  %v1109_v20 = vadd.f32 %v1108_v14, %v481_v18  ;;  %v1182_v23 = vmul.f32 %v481_v18, %v481_v18  ;;  %v1244_v26 = vadd.f32 %v1243_v12, %v1181_v11  ;;  %v1428_v27 = vpop.f32.mrb[30].mxu0  ;;  %684 = vst [vmem:[%s2070_s2 + $0x1e0] sm:$0xff] %v1931_v19  ;;  %v1940_v28 = vpop.f32.mrb[30].mxu1 }
 0x130   :  { %655 = vst [vmem:[%s2070_s2 + $0xf8] sm:$0xff] %v1428_v27  ;;  %v484_v29 = vpop.f32.mrb[31].mxu0  ;;  %687 = vst [vmem:[%s2070_s2 + $0x1f8] sm:$0xff] %v1940_v28  ;;  %v1949_v31 = vpop.f32.mrb[31].mxu1  ;;  %v1185_v41 = vmul.f32 %v1428_v27, %v1428_v27 }
 0x131   :  { %v1245_v33 = vadd.f32 %v1244_v26, %v1182_v23  ;;  %653 = vst [vmem:[%s2070_s2 + $0xe8] sm:$0xff] %v484_v29  ;;  %v1110_v34 = vadd.f32 %v1109_v20, %v484_v29  ;;  %v1183_v36 = vmul.f32 %v484_v29, %v484_v29  ;;  %685 = vst [vmem:[%s2070_s2 + $0x1e8] sm:$0xff] %v1949_v31 }
 0x133   :  { %v1111_v39 = vadd.f32 %v1427_v13, %v1110_v34  ;;  %v1246_v40 = vadd.f32 %v1245_v33, %v1183_v36  ;;  %v1191_v13 = vmul.f32 %v1733_v4, %v1733_v4  ;;  %v1195_v33 = vmul.f32 %v1769_v24, %v1769_v24 }
 0x135   :  { %v1247_v45 = vadd.f32 %v1246_v40, %v1184_v38  ;;  %v1112_v49 = vadd.f32 %v1428_v27, %v1111_v39 }
 0x137   :  { %v1113_v52 = vadd.f32 %v1112_v49, %v1679_v44  ;;  %v1248_v54 = vadd.f32 %v1247_v45, %v1185_v41  ;;  %v1190_v44 = vmul.f32 %v1715_v61, %v1715_v61  ;;  %v1199_v49 = vmul.f32 %v1805_v47, %v1805_v47 }
 0x139   :  { %v1249_v55 = vadd.f32 %v1248_v54, %v1186_v50  ;;  %v1114_v56 = vadd.f32 %v1113_v52, %v1697_v48 }
 0x13b   :  { %v1115_v1 = vadd.f32 %v1670_v42, %v1114_v56  ;;  %v1250_v3 = vadd.f32 %v1249_v55, %v1187_v57  ;;  %v1192_v42 = vmul.f32 %v1706_v59, %v1706_v59 }
 0x13d   :  { %v1251_v7 = vadd.f32 %v1250_v3, %v1188_v62  ;;  %v1116_v9 = vadd.f32 %v1688_v46, %v1115_v1  ;;  %v1193_v46 = vmul.f32 %v1724_v2, %v1724_v2  ;;  %v1203_v1 = vmul.f32 %v1841_v8, %v1841_v8 }
 0x13f   :  { %v1117_v10 = vadd.f32 %v1116_v9, %v1715_v61  ;;  %v1252_v11 = vadd.f32 %v1251_v7, %v1189_v5  ;;  %v1194_v61 = vmul.f32 %v1751_v17, %v1751_v17 }
 0x141   :  { %v1253_v12 = vadd.f32 %v1252_v11, %v1190_v44  ;;  %v1118_v48 = vadd.f32 %v1117_v10, %v1733_v4 }
 0x143   :  { %v1119_v14 = vadd.f32 %v1706_v59, %v1118_v48  ;;  %v1254_v18 = vadd.f32 %v1253_v12, %v1191_v13  ;;  %v1196_v59 = vmul.f32 %v1742_v15, %v1742_v15  ;;  %v1207_v12 = vmul.f32 %v1877_v32, %v1877_v32 }
 0x145   :  { %v1255_v20 = vadd.f32 %v1254_v18, %v1192_v42  ;;  %v1120_v23 = vadd.f32 %v1724_v2, %v1119_v14  ;;  %v1197_v2 = vmul.f32 %v1760_v22, %v1760_v22 }
 0x147   :  { %v1121_v26 = vadd.f32 %v1120_v23, %v1751_v17  ;;  %v1256_v27 = vadd.f32 %v1255_v20, %v1193_v46  ;;  %v1198_v17 = vmul.f32 %v1787_v37, %v1787_v37  ;;  %v1211_v23 = vmul.f32 %v1913_v0, %v1913_v0 }
 0x149   :  { %v1257_v29 = vadd.f32 %v1256_v27, %v1194_v61  ;;  %v1122_v4 = vadd.f32 %v1121_v26, %v1769_v24 }
 0x14b   :  { %v1123_v34 = vadd.f32 %v1742_v15, %v1122_v4  ;;  %v1258_v36 = vadd.f32 %v1257_v29, %v1195_v33  ;;  %v1200_v15 = vmul.f32 %v1778_v35, %v1778_v35 }
 0x14d   :  { %v1259_v38 = vadd.f32 %v1258_v36, %v1196_v59  ;;  %v1124_v39 = vadd.f32 %v1760_v22, %v1123_v34  ;;  %v1201_v22 = vmul.f32 %v1796_v43, %v1796_v43  ;;  %v1215_v34 = vmul.f32 %v1949_v31, %v1949_v31 }
 0x14f   :  { %v1125_v40 = vadd.f32 %v1124_v39, %v1787_v37  ;;  %v1260_v41 = vadd.f32 %v1259_v38, %v1197_v2  ;;  %v1202_v37 = vmul.f32 %v1823_v63, %v1823_v63 }
 0x151   :  { %v1261_v45 = vadd.f32 %v1260_v41, %v1198_v17  ;;  %v1126_v24 = vadd.f32 %v1125_v40, %v1805_v47 }
 0x153   :  { %v1127_v50 = vadd.f32 %v1778_v35, %v1126_v24  ;;  %v1262_v52 = vadd.f32 %v1261_v45, %v1199_v49  ;;  %v1204_v35 = vmul.f32 %v1814_v60, %v1814_v60 }
 0x155   :  { %v1263_v54 = vadd.f32 %v1262_v52, %v1200_v15  ;;  %v1128_v55 = vadd.f32 %v1796_v43, %v1127_v50  ;;  %v1205_v43 = vmul.f32 %v1832_v6, %v1832_v6 }
 0x157   :  { %v1129_v56 = vadd.f32 %v1128_v55, %v1823_v63  ;;  %v1264_v57 = vadd.f32 %v1263_v54, %v1201_v22  ;;  %v1206_v63 = vmul.f32 %v1859_v25, %v1859_v25 }
 0x159   :  { %v1265_v62 = vadd.f32 %v1264_v57, %v1202_v37  ;;  %v1130_v47 = vadd.f32 %v1129_v56, %v1841_v8 }
 0x15b   :  { %v1131_v3 = vadd.f32 %v1814_v60, %v1130_v47  ;;  %v1266_v5 = vadd.f32 %v1265_v62, %v1203_v1  ;;  %v1208_v60 = vmul.f32 %v1850_v21, %v1850_v21 }
 0x15d   :  { %v1267_v7 = vadd.f32 %v1266_v5, %v1204_v35  ;;  %v1132_v9 = vadd.f32 %v1832_v6, %v1131_v3  ;;  %v1209_v6 = vmul.f32 %v1868_v30, %v1868_v30 }
 0x15f   :  { %v1133_v44 = vadd.f32 %v1132_v9, %v1859_v25  ;;  %v1268_v10 = vadd.f32 %v1267_v7, %v1205_v43  ;;  %v1210_v25 = vmul.f32 %v1895_v53, %v1895_v53 }
 0x161   :  { %v1269_v11 = vadd.f32 %v1268_v10, %v1206_v63  ;;  %v1134_v8 = vadd.f32 %v1133_v44, %v1877_v32 }
 0x163   :  { %v1135_v48 = vadd.f32 %v1850_v21, %v1134_v8  ;;  %v1270_v13 = vadd.f32 %v1269_v11, %v1207_v12  ;;  %v1212_v21 = vmul.f32 %v1886_v51, %v1886_v51 }
 0x165   :  { %v1271_v42 = vadd.f32 %v1270_v13, %v1208_v60  ;;  %v1136_v14 = vadd.f32 %v1868_v30, %v1135_v48  ;;  %v1213_v30 = vmul.f32 %v1904_v58, %v1904_v58 }
 0x167   :  { %v1137_v18 = vadd.f32 %v1136_v14, %v1895_v53  ;;  %v1272_v46 = vadd.f32 %v1271_v42, %v1209_v6  ;;  %v1214_v53 = vmul.f32 %v1931_v19, %v1931_v19 }
 0x169   :  { %v1273_v20 = vadd.f32 %v1272_v46, %v1210_v25  ;;  %v1138_v32 = vadd.f32 %v1137_v18, %v1913_v0 }
 0x16b   :  { %v1139_v61 = vadd.f32 %v1886_v51, %v1138_v32  ;;  %v1274_v26 = vadd.f32 %v1273_v20, %v1211_v23  ;;  %v1216_v51 = vmul.f32 %v1922_v16, %v1922_v16 }
 0x16d   :  { %v1275_v27 = vadd.f32 %v1274_v26, %v1212_v21  ;;  %v1140_v29 = vadd.f32 %v1904_v58, %v1139_v61  ;;  %v1217_v58 = vmul.f32 %v1940_v28, %v1940_v28 }
 0x16f   :  { %v1141_v4 = vadd.f32 %v1140_v29, %v1931_v19  ;;  %v1276_v33 = vadd.f32 %v1275_v27, %v1213_v30 }
 0x171   :  { %v1277_v59 = vadd.f32 %v1276_v33, %v1214_v53  ;;  %v1142_v0 = vadd.f32 %v1141_v4, %v1949_v31 }
 0x173   :  { %v1143_v36 = vadd.f32 %v1922_v16, %v1142_v0  ;;  %v1278_v2 = vadd.f32 %v1277_v59, %v1215_v34  ;;  %v1081_v16 = vld [vmem:[%s2068_s3] sm:$0x1] }
 0x175   :  { %v1144_v38 = vadd.f32 %v1940_v28, %v1143_v36  ;;  %v1279_v39 = vadd.f32 %v1278_v2, %v1216_v51  ;;  %v1153_v28 = vld [vmem:[%s2069_s4] sm:$0x1] }
 0x177   :  { %v1145_v19 = vrot.slane %v1144_v38, 4  ;;  %v1280_v17 = vadd.f32 %v1279_v39, %v1217_v58 }
 0x179   :  { %v1146_v40 = vadd.f32 %v1145_v19, %v1144_v38  ;;  %v1281_v41 = vrot.slane %v1280_v17, 4 }
 0x17b   :  { %v1147_v45 = vrot.slane %v1146_v40, 2  ;;  %v1282_v24 = vadd.f32 %v1281_v41, %v1280_v17 }
 0x17d   :  { %v1148_v49 = vadd.f32 %v1147_v45, %v1146_v40  ;;  %v1283_v31 = vrot.slane %v1282_v24, 2 }
 0x17f   :  { %v1149_v15 = vrot.slane %v1148_v49, 1  ;;  %v1284_v50 = vadd.f32 %v1283_v31, %v1282_v24 }
 0x181   :  { %v1150_v52 = vadd.f32 %v1149_v15, %v1148_v49  ;;  %v1285_v22 = vrot.slane %v1284_v50, 1 }
 0x183   :  { %v1151_v54 = vadd.f32 %v1150_v52, %v1081_v16  ;;  %v1286_v55 = vadd.f32 %v1285_v22, %v1284_v50 }
 0x185   :  { %1152 = vst [vmem:[%s2068_s3] sm:$0x1] %v1151_v54  ;;  %v1287_v37 = vadd.f32 %v1286_v55, %v1153_v28 }
 0x187   :  { %1288 = vst [vmem:[%s2069_s4] sm:$0x1] %v1287_v37 }

// kernel: discriminator_forward.10
= control target key start
LH: loop header
LB: loop body
LE: loop exit
PB: predicated region body
PF: predicated region fallthrough
CT: control target
= control target key end

     0   :  { %s1503_s0 = inlined_call_operand.vmem [shape: f32[512,128], index: 0, kind: input, shape index: {}]   ;;  %s1504_s1 = inlined_call_operand.vmem [shape: f32[1,128], index: 1, kind: input, shape index: {}]   ;;  %s1505_s2 = inlined_call_operand.vmem [shape: f32[1,128], index: 2, kind: input, shape index: {}]   ;;  %s1506_s3 = inlined_call_operand.vmem [shape: bf16[512,128], index: 3, kind: output, shape index: {}]  }
   0x1   :  { %v14_v0 = vld [vmem:[%s1503_s0] sm:$0xff]  ;;  %v15_v1 = vld [vmem:[%s1503_s0 + $0x8] sm:$0xff]  ;;  %v16_v6 = vld [vmem:[%s1503_s0 + $0x10] sm:$0xff] }
   0x2   :  { %v1086_v2 = vld [vmem:[%s1504_s1] ss:$0 sm:$0xff]  ;;  %v17_v7 = vld [vmem:[%s1503_s0 + $0x18] sm:$0xff]  ;;  %v19_v11 = vld [vmem:[%s1503_s0 + $0x28] sm:$0xff] }
   0x3   :  { %v85_v3 = vmul.f32 %v1086_v2, %v14_v0  ;;  %v86_v4 = vmul.f32 %v1086_v2, %v15_v1  ;;  %v1093_v5 = vld [vmem:[%s1505_s2] ss:$0 sm:$0xff]  ;;  %v87_v8 = vmul.f32 %v1086_v2, %v16_v6  ;;  %v88_v9 = vmul.f32 %v1086_v2, %v17_v7  ;;  %v20_v12 = vld [vmem:[%s1503_s0 + $0x30] sm:$0xff]  ;;  %v21_v17 = vld [vmem:[%s1503_s0 + $0x38] sm:$0xff] }
   0x4   :  { %v18_v10 = vld [vmem:[%s1503_s0 + $0x20] sm:$0xff]  ;;  %v90_v16 = vmul.f32 %v1086_v2, %v19_v11  ;;  %v91_v20 = vmul.f32 %v1086_v2, %v20_v12  ;;  %v92_v21 = vmul.f32 %v1086_v2, %v21_v17  ;;  %v23_v35 = vld [vmem:[%s1503_s0 + $0x48] sm:$0xff]  ;;  %v24_v36 = vld [vmem:[%s1503_s0 + $0x50] sm:$0xff] }
   0x5   :  { %v156_v13 = vadd.f32 %v1093_v5, %v85_v3  ;;  %v157_v14 = vadd.f32 %v1093_v5, %v86_v4  ;;  %v89_v15 = vmul.f32 %v1086_v2, %v18_v10  ;;  %v158_v18 = vadd.f32 %v1093_v5, %v87_v8  ;;  %v22_v34 = vld [vmem:[%s1503_s0 + $0x40] sm:$0xff]  ;;  %v25_v42 = vld [vmem:[%s1503_s0 + $0x58] sm:$0xff]  ;;  %v27_v48 = vld [vmem:[%s1503_s0 + $0x68] sm:$0xff] }
   0x6   :  { %v159_v19 = vadd.f32 %v1093_v5, %v88_v9  ;;  %v161_v29 = vadd.f32 %v1093_v5, %v90_v16  ;;  %v162_v33 = vadd.f32 %v1093_v5, %v91_v20  ;;  %v163_v40 = vadd.f32 %v1093_v5, %v92_v21  ;;  %v26_v47 = vld [vmem:[%s1503_s0 + $0x60] sm:$0xff]  ;;  %v28_v60 = vld [vmem:[%s1503_s0 + $0x70] sm:$0xff]  ;;  %v29_v7 = vld [vmem:[%s1503_s0 + $0x78] sm:$0xff] }
   0x7   :  { %vm220_vm0 = vcmp.gt.f32.partialorder %v156_v13, 0.0  ;;  %vm221_vm1 = vcmp.gt.f32.partialorder %v157_v14, 0.0  ;;  %v284_v22 = vmul.f32 0.2, %v156_v13  ;;  %v285_v23 = vmul.f32 0.2, %v157_v14 }
   0x8   :  { %vm222_vm2 = vcmp.gt.f32.partialorder %v158_v18, 0.0  ;;  %vm223_vm3 = vcmp.gt.f32.partialorder %v159_v19, 0.0  ;;  %v286_v24 = vmul.f32 0.2, %v158_v18  ;;  %v287_v25 = vmul.f32 0.2, %v159_v19 }
   0x9   :  { %v348_v26 = vsel %vm220_vm0, %v156_v13, %v284_v22  ;;  %v349_v27 = vsel %vm221_vm1, %v157_v14, %v285_v23  ;;  %v160_v28 = vadd.f32 %v1093_v5, %v89_v15  ;;  %vm225_vm5 = vcmp.gt.f32.partialorder %v161_v29, 0.0  ;;  %v30_v12 = vld [vmem:[%s1503_s0 + $0x80] sm:$0xff]  ;;  %v31_v13 = vld [vmem:[%s1503_s0 + $0x88] sm:$0xff]  ;;  %v32_v20 = vld [vmem:[%s1503_s0 + $0x90] sm:$0xff] }
   0xa   :  { %v869_v30 = vpack.c.bf16 %v349_v27, %v348_v26  ;;  %v350_v31 = vsel %vm222_vm2, %v158_v18, %v286_v24  ;;  %v351_v32 = vsel %vm223_vm3, %v159_v19, %v287_v25  ;;  %v289_v39 = vmul.f32 0.2, %v161_v29  ;;  %v33_v25 = vld [vmem:[%s1503_s0 + $0x98] sm:$0xff] }
   0xb   :  { %v874_v37 = vpack.c.bf16 %v351_v32, %v350_v31  ;;  %vm224_vm4 = vcmp.gt.f32.partialorder %v160_v28, 0.0  ;;  %v288_v38 = vmul.f32 0.2, %v160_v28  ;;  %vm226_vm6 = vcmp.gt.f32.partialorder %v162_v33, 0.0 }
   0xc   :  { %870 = vst [vmem:[%s1506_s3] sm:$0xff] %v869_v30   ;;  %v290_v41 = vmul.f32 0.2, %v162_v33  ;;  %v93_v44 = vmul.f32 %v1086_v2, %v22_v34  ;;  %v94_v45 = vmul.f32 %v1086_v2, %v23_v35  ;;  %v95_v46 = vmul.f32 %v1086_v2, %v24_v36 }
   0xd   :  { %1026 = vst [vmem:[%s1506_s3 + $0x8] sm:$0xff] %v874_v37   ;;  %v352_v43 = vsel %vm224_vm4, %v160_v28, %v288_v38  ;;  %v353_v49 = vsel %vm225_vm5, %v161_v29, %v289_v39  ;;  %vm227_vm7 = vcmp.gt.f32.partialorder %v163_v40, 0.0  ;;  %v291_v50 = vmul.f32 0.2, %v163_v40  ;;  %v35_v37 = vld [vmem:[%s1503_s0 + $0xa8] sm:$0xff] }
   0xe   :  { %v354_v51 = vsel %vm226_vm6, %v162_v33, %v290_v41  ;;  %v879_v52 = vpack.c.bf16 %v353_v49, %v352_v43  ;;  %v164_v53 = vadd.f32 %v1093_v5, %v93_v44  ;;  %v165_v54 = vadd.f32 %v1093_v5, %v94_v45  ;;  %v34_v33 = vld [vmem:[%s1503_s0 + $0xa0] sm:$0xff]  ;;  %v36_v44 = vld [vmem:[%s1503_s0 + $0xb0] sm:$0xff]  ;;  %v37_v49 = vld [vmem:[%s1503_s0 + $0xb8] sm:$0xff] }
   0xf   :  { %v96_v55 = vmul.f32 %v1086_v2, %v25_v42  ;;  %v355_v56 = vsel %vm227_vm7, %v163_v40, %v291_v50  ;;  %v166_v57 = vadd.f32 %v1093_v5, %v95_v46  ;;  %v97_v58 = vmul.f32 %v1086_v2, %v26_v47  ;;  %v38_v50 = vld [vmem:[%s1503_s0 + $0xc0] sm:$0xff] }
  0x10   :  { %v98_v59 = vmul.f32 %v1086_v2, %v27_v48  ;;  %1027 = vst [vmem:[%s1506_s3 + $0x10] sm:$0xff] %v879_v52   ;;  %v884_v61 = vpack.c.bf16 %v355_v56, %v354_v51  ;;  %vm228_vm8 = vcmp.gt.f32.partialorder %v164_v53, 0.0  ;;  %vm229_vm9 = vcmp.gt.f32.partialorder %v165_v54, 0.0  ;;  %v39_v51 = vld [vmem:[%s1503_s0 + $0xc8] sm:$0xff] }
  0x11   :  { %v292_v62 = vmul.f32 0.2, %v164_v53  ;;  %v293_v63 = vmul.f32 0.2, %v165_v54  ;;  %v167_v0 = vadd.f32 %v1093_v5, %v96_v55  ;;  %vm230_vm10 = vcmp.gt.f32.partialorder %v166_v57, 0.0 }
  0x12   :  { %v294_v1 = vmul.f32 0.2, %v166_v57  ;;  %1028 = vst [vmem:[%s1506_s3 + $0x18] sm:$0xff] %v884_v61   ;;  %v168_v4 = vadd.f32 %v1093_v5, %v97_v58  ;;  %v169_v6 = vadd.f32 %v1093_v5, %v98_v59  ;;  %v99_v8 = vmul.f32 %v1086_v2, %v28_v60 }
  0x13   :  { %v356_v3 = vsel %vm228_vm8, %v164_v53, %v292_v62  ;;  %v357_v9 = vsel %vm229_vm9, %v165_v54, %v293_v63  ;;  %vm231_vm11 = vcmp.gt.f32.partialorder %v167_v0, 0.0  ;;  %v295_v10 = vmul.f32 0.2, %v167_v0  ;;  %v40_v62 = vld [vmem:[%s1503_s0 + $0xd0] sm:$0xff] }
  0x14   :  { %v358_v11 = vsel %vm230_vm10, %v166_v57, %v294_v1  ;;  %v889_v14 = vpack.c.bf16 %v357_v9, %v356_v3  ;;  %vm232_vm12 = vcmp.gt.f32.partialorder %v168_v4, 0.0  ;;  %vm233_vm13 = vcmp.gt.f32.partialorder %v169_v6, 0.0 }
  0x15   :  { %v296_v15 = vmul.f32 0.2, %v168_v4  ;;  %v359_v16 = vsel %vm231_vm11, %v167_v0, %v295_v10  ;;  %v297_v17 = vmul.f32 0.2, %v169_v6  ;;  %v100_v18 = vmul.f32 %v1086_v2, %v29_v7  ;;  %v41_v10 = vld [vmem:[%s1503_s0 + $0xd8] sm:$0xff] }
  0x16   :  { %v170_v19 = vadd.f32 %v1093_v5, %v99_v8  ;;  %1029 = vst [vmem:[%s1506_s3 + $0x20] sm:$0xff] %v889_v14   ;;  %v894_v21 = vpack.c.bf16 %v359_v16, %v358_v11  ;;  %v101_v23 = vmul.f32 %v1086_v2, %v30_v12  ;;  %v102_v24 = vmul.f32 %v1086_v2, %v31_v13  ;;  %v42_v14 = vld [vmem:[%s1503_s0 + $0xe0] sm:$0xff] }
  0x17   :  { %v360_v22 = vsel %vm232_vm12, %v168_v4, %v296_v15  ;;  %v361_v26 = vsel %vm233_vm13, %v169_v6, %v297_v17  ;;  %v171_v27 = vadd.f32 %v1093_v5, %v100_v18  ;;  %v103_v32 = vmul.f32 %v1086_v2, %v32_v20  ;;  %v43_v15 = vld [vmem:[%s1503_s0 + $0xe8] sm:$0xff] }
  0x18   :  { %vm234_vm14 = vcmp.gt.f32.partialorder %v170_v19, 0.0  ;;  %v298_v28 = vmul.f32 0.2, %v170_v19  ;;  %1030 = vst [vmem:[%s1506_s3 + $0x28] sm:$0xff] %v894_v21   ;;  %v899_v29 = vpack.c.bf16 %v361_v26, %v360_v22  ;;  %v172_v30 = vadd.f32 %v1093_v5, %v101_v23  ;;  %v44_v26 = vld [vmem:[%s1503_s0 + $0xf0] sm:$0xff] }
  0x19   :  { %v173_v31 = vadd.f32 %v1093_v5, %v102_v24  ;;  %vm235_vm15 = vcmp.gt.f32.partialorder %v171_v27, 0.0  ;;  %v299_v34 = vmul.f32 0.2, %v171_v27  ;;  %v104_v36 = vmul.f32 %v1086_v2, %v33_v25 }
  0x1a   :  { %v362_v35 = vsel %vm234_vm14, %v170_v19, %v298_v28  ;;  %1031 = vst [vmem:[%s1506_s3 + $0x30] sm:$0xff] %v899_v29   ;;  %vm236_vm0 = vcmp.gt.f32.partialorder %v172_v30, 0.0  ;;  %v300_v38 = vmul.f32 0.2, %v172_v30  ;;  %v174_v41 = vadd.f32 %v1093_v5, %v103_v32 }
  0x1b   :  { %vm237_vm1 = vcmp.gt.f32.partialorder %v173_v31, 0.0  ;;  %v301_v39 = vmul.f32 0.2, %v173_v31  ;;  %v363_v40 = vsel %vm235_vm15, %v171_v27, %v299_v34  ;;  %v175_v42 = vadd.f32 %v1093_v5, %v104_v36 }
  0x1c   :  { %v105_v43 = vmul.f32 %v1086_v2, %v34_v33  ;;  %v904_v45 = vpack.c.bf16 %v363_v40, %v362_v35  ;;  %v364_v46 = vsel %vm236_vm0, %v172_v30, %v300_v38  ;;  %v106_v48 = vmul.f32 %v1086_v2, %v35_v37  ;;  %v46_v38 = vld [vmem:[%s1503_s0 + $0x100] sm:$0xff] }
  0x1d   :  { %v365_v47 = vsel %vm237_vm1, %v173_v31, %v301_v39  ;;  %vm238_vm2 = vcmp.gt.f32.partialorder %v174_v41, 0.0  ;;  %vm239_vm3 = vcmp.gt.f32.partialorder %v175_v42, 0.0  ;;  %v302_v53 = vmul.f32 0.2, %v174_v41  ;;  %v45_v31 = vld [vmem:[%s1503_s0 + $0xf8] sm:$0xff] }
  0x1e   :  { %v909_v52 = vpack.c.bf16 %v365_v47, %v364_v46  ;;  %1032 = vst [vmem:[%s1506_s3 + $0x38] sm:$0xff] %v904_v45   ;;  %v303_v54 = vmul.f32 0.2, %v175_v42  ;;  %v176_v55 = vadd.f32 %v1093_v5, %v105_v43  ;;  %v177_v56 = vadd.f32 %v1093_v5, %v106_v48 }
  0x1f   :  { %v107_v57 = vmul.f32 %v1086_v2, %v36_v44  ;;  %v366_v58 = vsel %vm238_vm2, %v174_v41, %v302_v53  ;;  %v108_v59 = vmul.f32 %v1086_v2, %v37_v49  ;;  %v109_v60 = vmul.f32 %v1086_v2, %v38_v50  ;;  %v48_v50 = vld [vmem:[%s1503_s0 + $0x110] sm:$0xff] }
  0x20   :  { %1033 = vst [vmem:[%s1506_s3 + $0x40] sm:$0xff] %v909_v52   ;;  %v110_v61 = vmul.f32 %v1086_v2, %v39_v51  ;;  %v367_v63 = vsel %vm239_vm3, %v175_v42, %v303_v54  ;;  %vm240_vm4 = vcmp.gt.f32.partialorder %v176_v55, 0.0  ;;  %vm241_vm5 = vcmp.gt.f32.partialorder %v177_v56, 0.0  ;;  %v47_v42 = vld [vmem:[%s1503_s0 + $0x108] sm:$0xff]  ;;  %v49_v51 = vld [vmem:[%s1503_s0 + $0x118] sm:$0xff] }
  0x21   :  { %v304_v0 = vmul.f32 0.2, %v176_v55  ;;  %v914_v1 = vpack.c.bf16 %v367_v63, %v366_v58  ;;  %v305_v3 = vmul.f32 0.2, %v177_v56  ;;  %v178_v4 = vadd.f32 %v1093_v5, %v107_v57  ;;  %v51_v63 = vld [vmem:[%s1503_s0 + $0x128] sm:$0xff] }
  0x22   :  { %v179_v6 = vadd.f32 %v1093_v5, %v108_v59  ;;  %v180_v8 = vadd.f32 %v1093_v5, %v109_v60  ;;  %v181_v9 = vadd.f32 %v1093_v5, %v110_v61  ;;  %v111_v11 = vmul.f32 %v1086_v2, %v40_v62 }
  0x23   :  { %v368_v7 = vsel %vm240_vm4, %v176_v55, %v304_v0  ;;  %1034 = vst [vmem:[%s1506_s3 + $0x48] sm:$0xff] %v914_v1   ;;  %v369_v12 = vsel %vm241_vm5, %v177_v56, %v305_v3  ;;  %vm242_vm6 = vcmp.gt.f32.partialorder %v178_v4, 0.0  ;;  %v306_v13 = vmul.f32 0.2, %v178_v4  ;;  %v50_v55 = vld [vmem:[%s1503_s0 + $0x120] sm:$0xff] }
  0x24   :  { %vm243_vm7 = vcmp.gt.f32.partialorder %v179_v6, 0.0  ;;  %v919_v16 = vpack.c.bf16 %v369_v12, %v368_v7  ;;  %v307_v17 = vmul.f32 0.2, %v179_v6  ;;  %vm244_vm8 = vcmp.gt.f32.partialorder %v180_v8, 0.0 }
  0x25   :  { %vm245_vm9 = vcmp.gt.f32.partialorder %v181_v9, 0.0  ;;  %v370_v18 = vsel %vm242_vm6, %v178_v4, %v306_v13  ;;  %v308_v19 = vmul.f32 0.2, %v180_v8  ;;  %v309_v20 = vmul.f32 0.2, %v181_v9  ;;  %v52_v4 = vld [vmem:[%s1503_s0 + $0x130] sm:$0xff] }
  0x26   :  { %v112_v21 = vmul.f32 %v1086_v2, %v41_v10  ;;  %1035 = vst [vmem:[%s1506_s3 + $0x50] sm:$0xff] %v919_v16   ;;  %v371_v22 = vsel %vm243_vm7, %v179_v6, %v307_v17  ;;  %v182_v23 = vadd.f32 %v1093_v5, %v111_v11  ;;  %v113_v24 = vmul.f32 %v1086_v2, %v42_v14  ;;  %v53_v13 = vld [vmem:[%s1503_s0 + $0x138] sm:$0xff] }
  0x27   :  { %v114_v25 = vmul.f32 %v1086_v2, %v43_v15  ;;  %v924_v27 = vpack.c.bf16 %v371_v22, %v370_v18  ;;  %v372_v28 = vsel %vm244_vm8, %v180_v8, %v308_v19  ;;  %v373_v29 = vsel %vm245_vm9, %v181_v9, %v309_v20  ;;  %v54_v20 = vld [vmem:[%s1503_s0 + $0x140] sm:$0xff] }
  0x28   :  { %v183_v30 = vadd.f32 %v1093_v5, %v112_v21  ;;  %v929_v32 = vpack.c.bf16 %v373_v29, %v372_v28  ;;  %vm246_vm10 = vcmp.gt.f32.partialorder %v182_v23, 0.0  ;;  %v310_v33 = vmul.f32 0.2, %v182_v23 }
  0x29   :  { %v184_v34 = vadd.f32 %v1093_v5, %v113_v24  ;;  %1036 = vst [vmem:[%s1506_s3 + $0x58] sm:$0xff] %v924_v27   ;;  %v185_v36 = vadd.f32 %v1093_v5, %v114_v25  ;;  %v115_v37 = vmul.f32 %v1086_v2, %v44_v26  ;;  %v116_v41 = vmul.f32 %v1086_v2, %v45_v31  ;;  %v55_v24 = vld [vmem:[%s1503_s0 + $0x148] sm:$0xff] }
  0x2a   :  { %vm247_vm11 = vcmp.gt.f32.partialorder %v183_v30, 0.0  ;;  %v311_v35 = vmul.f32 0.2, %v183_v30  ;;  %1037 = vst [vmem:[%s1506_s3 + $0x60] sm:$0xff] %v929_v32   ;;  %v374_v39 = vsel %vm246_vm10, %v182_v23, %v310_v33  ;;  %v117_v49 = vmul.f32 %v1086_v2, %v46_v38  ;;  %v56_v32 = vld [vmem:[%s1503_s0 + $0x150] sm:$0xff]  ;;  %v57_v33 = vld [vmem:[%s1503_s0 + $0x158] sm:$0xff] }
  0x2b   :  { %vm248_vm12 = vcmp.gt.f32.partialorder %v184_v34, 0.0  ;;  %v312_v40 = vmul.f32 0.2, %v184_v34  ;;  %vm249_vm13 = vcmp.gt.f32.partialorder %v185_v36, 0.0  ;;  %v313_v44 = vmul.f32 0.2, %v185_v36 }
  0x2c   :  { %v375_v43 = vsel %vm247_vm11, %v183_v30, %v311_v35  ;;  %v186_v45 = vadd.f32 %v1093_v5, %v115_v37  ;;  %v187_v48 = vadd.f32 %v1093_v5, %v116_v41  ;;  %v118_v54 = vmul.f32 %v1086_v2, %v47_v42  ;;  %v58_v37 = vld [vmem:[%s1503_s0 + $0x160] sm:$0xff] }
  0x2d   :  { %v934_v46 = vpack.c.bf16 %v375_v43, %v374_v39  ;;  %v376_v47 = vsel %vm248_vm12, %v184_v34, %v312_v40  ;;  %v377_v52 = vsel %vm249_vm13, %v185_v36, %v313_v44  ;;  %v188_v58 = vadd.f32 %v1093_v5, %v117_v49  ;;  %v60_v49 = vld [vmem:[%s1503_s0 + $0x170] sm:$0xff] }
  0x2e   :  { %vm250_vm14 = vcmp.gt.f32.partialorder %v186_v45, 0.0  ;;  %v314_v53 = vmul.f32 0.2, %v186_v45  ;;  %v939_v56 = vpack.c.bf16 %v377_v52, %v376_v47  ;;  %vm251_vm15 = vcmp.gt.f32.partialorder %v187_v48, 0.0 }
  0x2f   :  { %1038 = vst [vmem:[%s1506_s3 + $0x68] sm:$0xff] %v934_v46   ;;  %v315_v57 = vmul.f32 0.2, %v187_v48  ;;  %v189_v60 = vadd.f32 %v1093_v5, %v118_v54  ;;  %v119_v61 = vmul.f32 %v1086_v2, %v48_v50  ;;  %v120_v62 = vmul.f32 %v1086_v2, %v49_v51 }
  0x30   :  { %v378_v59 = vsel %vm250_vm14, %v186_v45, %v314_v53  ;;  %1039 = vst [vmem:[%s1506_s3 + $0x70] sm:$0xff] %v939_v56   ;;  %vm252_vm0 = vcmp.gt.f32.partialorder %v188_v58, 0.0  ;;  %v316_v1 = vmul.f32 0.2, %v188_v58  ;;  %v121_v3 = vmul.f32 %v1086_v2, %v50_v55  ;;  %v59_v45 = vld [vmem:[%s1503_s0 + $0x168] sm:$0xff] }
  0x31   :  { %v379_v0 = vsel %vm251_vm15, %v187_v48, %v315_v57  ;;  %vm253_vm1 = vcmp.gt.f32.partialorder %v189_v60, 0.0  ;;  %v317_v7 = vmul.f32 0.2, %v189_v60  ;;  %v190_v8 = vadd.f32 %v1093_v5, %v119_v61  ;;  %v61_v57 = vld [vmem:[%s1503_s0 + $0x178] sm:$0xff] }
  0x32   :  { %v944_v6 = vpack.c.bf16 %v379_v0, %v378_v59  ;;  %v380_v9 = vsel %vm252_vm0, %v188_v58, %v316_v1  ;;  %v191_v10 = vadd.f32 %v1093_v5, %v120_v62  ;;  %v122_v11 = vmul.f32 %v1086_v2, %v51_v63  ;;  %v62_v0 = vld [vmem:[%s1503_s0 + $0x180] sm:$0xff] }
  0x33   :  { %v192_v12 = vadd.f32 %v1093_v5, %v121_v3  ;;  %v381_v14 = vsel %vm253_vm1, %v189_v60, %v317_v7  ;;  %vm254_vm2 = vcmp.gt.f32.partialorder %v190_v8, 0.0  ;;  %v318_v15 = vmul.f32 0.2, %v190_v8 }
  0x34   :  { %1040 = vst [vmem:[%s1506_s3 + $0x78] sm:$0xff] %v944_v6   ;;  %v123_v16 = vmul.f32 %v1086_v2, %v52_v4  ;;  %v949_v17 = vpack.c.bf16 %v381_v14, %v380_v9  ;;  %vm255_vm3 = vcmp.gt.f32.partialorder %v191_v10, 0.0  ;;  %v319_v18 = vmul.f32 0.2, %v191_v10  ;;  %v63_v6 = vld [vmem:[%s1503_s0 + $0x188] sm:$0xff]  ;;  %v64_v14 = vld [vmem:[%s1503_s0 + $0x190] sm:$0xff] }
  0x35   :  { %v193_v19 = vadd.f32 %v1093_v5, %v122_v11  ;;  %v382_v21 = vsel %vm254_vm2, %v190_v8, %v318_v15  ;;  %vm256_vm4 = vcmp.gt.f32.partialorder %v192_v12, 0.0  ;;  %v320_v22 = vmul.f32 0.2, %v192_v12  ;;  %v65_v15 = vld [vmem:[%s1503_s0 + $0x198] sm:$0xff] }
  0x36   :  { %v124_v23 = vmul.f32 %v1086_v2, %v53_v13  ;;  %1041 = vst [vmem:[%s1506_s3 + $0x80] sm:$0xff] %v949_v17   ;;  %v383_v25 = vsel %vm255_vm3, %v191_v10, %v319_v18  ;;  %v194_v27 = vadd.f32 %v1093_v5, %v123_v16  ;;  %v125_v31 = vmul.f32 %v1086_v2, %v54_v20 }
  0x37   :  { %vm257_vm5 = vcmp.gt.f32.partialorder %v193_v19, 0.0  ;;  %v321_v26 = vmul.f32 0.2, %v193_v19  ;;  %v954_v28 = vpack.c.bf16 %v383_v25, %v382_v21  ;;  %v384_v29 = vsel %vm256_vm4, %v192_v12, %v320_v22 }
  0x38   :  { %v195_v30 = vadd.f32 %v1093_v5, %v124_v23  ;;  %vm258_vm6 = vcmp.gt.f32.partialorder %v194_v27, 0.0  ;;  %v322_v35 = vmul.f32 0.2, %v194_v27  ;;  %v126_v36 = vmul.f32 %v1086_v2, %v55_v24 }
  0x39   :  { %v385_v34 = vsel %vm257_vm5, %v193_v19, %v321_v26  ;;  %1042 = vst [vmem:[%s1506_s3 + $0x88] sm:$0xff] %v954_v28   ;;  %v196_v40 = vadd.f32 %v1093_v5, %v125_v31  ;;  %v127_v43 = vmul.f32 %v1086_v2, %v56_v32  ;;  %v128_v44 = vmul.f32 %v1086_v2, %v57_v33  ;;  %v66_v19 = vld [vmem:[%s1503_s0 + $0x1a0] sm:$0xff]  ;;  %v68_v31 = vld [vmem:[%s1503_s0 + $0x1b0] sm:$0xff] }
  0x3a   :  { %v959_v38 = vpack.c.bf16 %v385_v34, %v384_v29  ;;  %vm259_vm7 = vcmp.gt.f32.partialorder %v195_v30, 0.0  ;;  %v323_v39 = vmul.f32 0.2, %v195_v30  ;;  %v386_v41 = vsel %vm258_vm6, %v194_v27, %v322_v35  ;;  %v67_v27 = vld [vmem:[%s1503_s0 + $0x1a8] sm:$0xff] }
  0x3b   :  { %v197_v42 = vadd.f32 %v1093_v5, %v126_v36  ;;  %vm260_vm8 = vcmp.gt.f32.partialorder %v196_v40, 0.0  ;;  %v324_v47 = vmul.f32 0.2, %v196_v40  ;;  %v129_v48 = vmul.f32 %v1086_v2, %v58_v37 }
  0x3c   :  { %1043 = vst [vmem:[%s1506_s3 + $0x90] sm:$0xff] %v959_v38   ;;  %v387_v46 = vsel %vm259_vm7, %v195_v30, %v323_v39  ;;  %v198_v52 = vadd.f32 %v1093_v5, %v127_v43  ;;  %v199_v54 = vadd.f32 %v1093_v5, %v128_v44  ;;  %v130_v55 = vmul.f32 %v1086_v2, %v59_v45  ;;  %v69_v39 = vld [vmem:[%s1503_s0 + $0x1b8] sm:$0xff] }
  0x3d   :  { %v964_v50 = vpack.c.bf16 %v387_v46, %v386_v41  ;;  %vm261_vm9 = vcmp.gt.f32.partialorder %v197_v42, 0.0  ;;  %v325_v51 = vmul.f32 0.2, %v197_v42  ;;  %v388_v53 = vsel %vm260_vm8, %v196_v40, %v324_v47  ;;  %v70_v46 = vld [vmem:[%s1503_s0 + $0x1c0] sm:$0xff] }
  0x3e   :  { %v200_v56 = vadd.f32 %v1093_v5, %v129_v48  ;;  %vm262_vm10 = vcmp.gt.f32.partialorder %v198_v52, 0.0  ;;  %v326_v59 = vmul.f32 0.2, %v198_v52  ;;  %v131_v60 = vmul.f32 %v1086_v2, %v60_v49 }
  0x3f   :  { %1044 = vst [vmem:[%s1506_s3 + $0x98] sm:$0xff] %v964_v50   ;;  %v389_v58 = vsel %vm261_vm9, %v197_v42, %v325_v51  ;;  %vm263_vm11 = vcmp.gt.f32.partialorder %v199_v54, 0.0  ;;  %v327_v62 = vmul.f32 0.2, %v199_v54  ;;  %v201_v63 = vadd.f32 %v1093_v5, %v130_v55  ;;  %v71_v50 = vld [vmem:[%s1503_s0 + $0x1c8] sm:$0xff] }
  0x40   :  { %v969_v61 = vpack.c.bf16 %v389_v58, %v388_v53  ;;  %v390_v1 = vsel %vm262_vm10, %v198_v52, %v326_v59  ;;  %vm264_vm12 = vcmp.gt.f32.partialorder %v200_v56, 0.0  ;;  %v328_v3 = vmul.f32 0.2, %v200_v56  ;;  %v72_v58 = vld [vmem:[%s1503_s0 + $0x1d0] sm:$0xff]  ;;  %v73_v59 = vld [vmem:[%s1503_s0 + $0x1d8] sm:$0xff] }
  0x41   :  { %v132_v4 = vmul.f32 %v1086_v2, %v61_v57  ;;  %v391_v7 = vsel %vm263_vm11, %v199_v54, %v327_v62  ;;  %vm265_vm13 = vcmp.gt.f32.partialorder %v201_v63, 0.0  ;;  %v329_v8 = vmul.f32 0.2, %v201_v63 }
  0x42   :  { %1045 = vst [vmem:[%s1506_s3 + $0xa0] sm:$0xff] %v969_v61   ;;  %v202_v9 = vadd.f32 %v1093_v5, %v131_v60  ;;  %v974_v10 = vpack.c.bf16 %v391_v7, %v390_v1  ;;  %v392_v11 = vsel %vm264_vm12, %v200_v56, %v328_v3  ;;  %v133_v13 = vmul.f32 %v1086_v2, %v62_v0 }
  0x43   :  { %v203_v12 = vadd.f32 %v1093_v5, %v132_v4  ;;  %v393_v16 = vsel %vm265_vm13, %v201_v63, %v329_v8  ;;  %v134_v18 = vmul.f32 %v1086_v2, %v63_v6  ;;  %v135_v25 = vmul.f32 %v1086_v2, %v64_v14  ;;  %v74_v63 = vld [vmem:[%s1503_s0 + $0x1e0] sm:$0xff] }
  0x44   :  { %vm266_vm14 = vcmp.gt.f32.partialorder %v202_v9, 0.0  ;;  %v330_v17 = vmul.f32 0.2, %v202_v9  ;;  %1046 = vst [vmem:[%s1506_s3 + $0xa8] sm:$0xff] %v974_v10   ;;  %v979_v20 = vpack.c.bf16 %v393_v16, %v392_v11  ;;  %v204_v22 = vadd.f32 %v1093_v5, %v133_v13  ;;  %v76_v13 = vld [vmem:[%s1503_s0 + $0x1f0] sm:$0xff] }
  0x45   :  { %vm267_vm15 = vcmp.gt.f32.partialorder %v203_v12, 0.0  ;;  %v331_v21 = vmul.f32 0.2, %v203_v12  ;;  %v205_v24 = vadd.f32 %v1093_v5, %v134_v18  ;;  %v136_v26 = vmul.f32 %v1086_v2, %v65_v15 }
  0x46   :  { %v394_v23 = vsel %vm266_vm14, %v202_v9, %v330_v17  ;;  %1047 = vst [vmem:[%s1506_s3 + $0xb0] sm:$0xff] %v979_v20   ;;  %vm268_vm0 = vcmp.gt.f32.partialorder %v204_v22, 0.0  ;;  %v332_v29 = vmul.f32 0.2, %v204_v22  ;;  %v137_v30 = vmul.f32 %v1086_v2, %v66_v19  ;;  %v75_v9 = vld [vmem:[%s1503_s0 + $0x1e8] sm:$0xff] }
  0x47   :  { %v395_v28 = vsel %vm267_vm15, %v203_v12, %v331_v21  ;;  %vm269_vm1 = vcmp.gt.f32.partialorder %v205_v24, 0.0  ;;  %v333_v33 = vmul.f32 0.2, %v205_v24  ;;  %v206_v34 = vadd.f32 %v1093_v5, %v135_v25  ;;  %v77_v21 = vld [vmem:[%s1503_s0 + $0x1f8] sm:$0xff] }
  0x48   :  { %v984_v32 = vpack.c.bf16 %v395_v28, %v394_v23  ;;  %v396_v35 = vsel %vm268_vm0, %v204_v22, %v332_v29  ;;  %v207_v36 = vadd.f32 %v1093_v5, %v136_v26  ;;  %v138_v37 = vmul.f32 %v1086_v2, %v67_v27 }
  0x49   :  { %v208_v38 = vadd.f32 %v1093_v5, %v137_v30  ;;  %v397_v40 = vsel %vm269_vm1, %v205_v24, %v333_v33  ;;  %vm270_vm2 = vcmp.gt.f32.partialorder %v206_v34, 0.0  ;;  %v334_v41 = vmul.f32 0.2, %v206_v34 }
  0x4a   :  { %1048 = vst [vmem:[%s1506_s3 + $0xb8] sm:$0xff] %v984_v32   ;;  %v139_v42 = vmul.f32 %v1086_v2, %v68_v31  ;;  %v989_v43 = vpack.c.bf16 %v397_v40, %v396_v35  ;;  %vm271_vm3 = vcmp.gt.f32.partialorder %v207_v36, 0.0  ;;  %v335_v44 = vmul.f32 0.2, %v207_v36 }
  0x4b   :  { %v209_v45 = vadd.f32 %v1093_v5, %v138_v37  ;;  %v398_v47 = vsel %vm270_vm2, %v206_v34, %v334_v41  ;;  %vm272_vm4 = vcmp.gt.f32.partialorder %v208_v38, 0.0  ;;  %v336_v48 = vmul.f32 0.2, %v208_v38 }
  0x4c   :  { %v140_v49 = vmul.f32 %v1086_v2, %v69_v39  ;;  %1049 = vst [vmem:[%s1506_s3 + $0xc0] sm:$0xff] %v989_v43   ;;  %v399_v51 = vsel %vm271_vm3, %v207_v36, %v335_v44  ;;  %v210_v53 = vadd.f32 %v1093_v5, %v139_v42  ;;  %v141_v57 = vmul.f32 %v1086_v2, %v70_v46 }
  0x4d   :  { %vm273_vm5 = vcmp.gt.f32.partialorder %v209_v45, 0.0  ;;  %v337_v52 = vmul.f32 0.2, %v209_v45  ;;  %v994_v54 = vpack.c.bf16 %v399_v51, %v398_v47  ;;  %v400_v55 = vsel %vm272_vm4, %v208_v38, %v336_v48 }
  0x4e   :  { %v211_v56 = vadd.f32 %v1093_v5, %v140_v49  ;;  %vm274_vm6 = vcmp.gt.f32.partialorder %v210_v53, 0.0  ;;  %v338_v61 = vmul.f32 0.2, %v210_v53  ;;  %v142_v62 = vmul.f32 %v1086_v2, %v71_v50 }
  0x4f   :  { %v401_v60 = vsel %vm273_vm5, %v209_v45, %v337_v52  ;;  %1050 = vst [vmem:[%s1506_s3 + $0xc8] sm:$0xff] %v994_v54   ;;  %v212_v3 = vadd.f32 %v1093_v5, %v141_v57  ;;  %v143_v7 = vmul.f32 %v1086_v2, %v72_v58  ;;  %v144_v8 = vmul.f32 %v1086_v2, %v73_v59 }
  0x50   :  { %v999_v0 = vpack.c.bf16 %v401_v60, %v400_v55  ;;  %vm275_vm7 = vcmp.gt.f32.partialorder %v211_v56, 0.0  ;;  %v339_v1 = vmul.f32 0.2, %v211_v56  ;;  %v402_v4 = vsel %vm274_vm6, %v210_v53, %v338_v61 }
  0x51   :  { %v213_v6 = vadd.f32 %v1093_v5, %v142_v62  ;;  %vm276_vm8 = vcmp.gt.f32.partialorder %v212_v3, 0.0  ;;  %v340_v11 = vmul.f32 0.2, %v212_v3  ;;  %v145_v12 = vmul.f32 %v1086_v2, %v74_v63 }
  0x52   :  { %1051 = vst [vmem:[%s1506_s3 + $0xd0] sm:$0xff] %v999_v0   ;;  %v403_v10 = vsel %vm275_vm7, %v211_v56, %v339_v1  ;;  %v214_v16 = vadd.f32 %v1093_v5, %v143_v7  ;;  %v215_v18 = vadd.f32 %v1093_v5, %v144_v8  ;;  %v146_v19 = vmul.f32 %v1086_v2, %v75_v9 }
  0x53   :  { %v1004_v14 = vpack.c.bf16 %v403_v10, %v402_v4  ;;  %vm277_vm9 = vcmp.gt.f32.partialorder %v213_v6, 0.0  ;;  %v341_v15 = vmul.f32 0.2, %v213_v6  ;;  %v404_v17 = vsel %vm276_vm8, %v212_v3, %v340_v11 }
  0x54   :  { %v216_v20 = vadd.f32 %v1093_v5, %v145_v12  ;;  %vm278_vm10 = vcmp.gt.f32.partialorder %v214_v16, 0.0  ;;  %v342_v23 = vmul.f32 0.2, %v214_v16  ;;  %v147_v24 = vmul.f32 %v1086_v2, %v76_v13 }
  0x55   :  { %1052 = vst [vmem:[%s1506_s3 + $0xd8] sm:$0xff] %v1004_v14   ;;  %v405_v22 = vsel %vm277_vm9, %v213_v6, %v341_v15  ;;  %vm279_vm11 = vcmp.gt.f32.partialorder %v215_v18, 0.0  ;;  %v343_v26 = vmul.f32 0.2, %v215_v18  ;;  %v217_v27 = vadd.f32 %v1093_v5, %v146_v19 }
  0x56   :  { %v1009_v25 = vpack.c.bf16 %v405_v22, %v404_v17  ;;  %v406_v28 = vsel %vm278_vm10, %v214_v16, %v342_v23  ;;  %vm280_vm12 = vcmp.gt.f32.partialorder %v216_v20, 0.0  ;;  %v344_v29 = vmul.f32 0.2, %v216_v20 }
  0x57   :  { %v148_v30 = vmul.f32 %v1086_v2, %v77_v21  ;;  %v407_v31 = vsel %vm279_vm11, %v215_v18, %v343_v26  ;;  %vm281_vm13 = vcmp.gt.f32.partialorder %v217_v27, 0.0  ;;  %v345_v32 = vmul.f32 0.2, %v217_v27 }
  0x58   :  { %1053 = vst [vmem:[%s1506_s3 + $0xe0] sm:$0xff] %v1009_v25   ;;  %v218_v33 = vadd.f32 %v1093_v5, %v147_v24  ;;  %v1014_v34 = vpack.c.bf16 %v407_v31, %v406_v28  ;;  %v408_v35 = vsel %vm280_vm12, %v216_v20, %v344_v29 }
  0x59   :  { %v219_v36 = vadd.f32 %v1093_v5, %v148_v30  ;;  %v409_v37 = vsel %vm281_vm13, %v217_v27, %v345_v32 }
  0x5a   :  { %vm282_vm14 = vcmp.gt.f32.partialorder %v218_v33, 0.0  ;;  %v346_v38 = vmul.f32 0.2, %v218_v33  ;;  %1054 = vst [vmem:[%s1506_s3 + $0xe8] sm:$0xff] %v1014_v34   ;;  %v1019_v2 = vpack.c.bf16 %v409_v37, %v408_v35 }
  0x5b   :  { %vm283_vm15 = vcmp.gt.f32.partialorder %v219_v36, 0.0  ;;  %v347_v39 = vmul.f32 0.2, %v219_v36 }
  0x5c   :  { %v410_v40 = vsel %vm282_vm14, %v218_v33, %v346_v38  ;;  %1055 = vst [vmem:[%s1506_s3 + $0xf0] sm:$0xff] %v1019_v2  }
  0x5d   :  { %v411_v41 = vsel %vm283_vm15, %v219_v36, %v347_v39 }
  0x5e   :  { %v1024_v42 = vpack.c.bf16 %v411_v41, %v410_v40 }
  0x60   :  { %1056 = vst [vmem:[%s1506_s3 + $0xf8] sm:$0xff] %v1024_v42  }

// kernel: discriminator_forward.11
= control target key start
LH: loop header
LB: loop body
LE: loop exit
PB: predicated region body
PF: predicated region fallthrough
CT: control target
= control target key end

     0   :  { %v686_v32 = vmov 0.0   ;;  %s892_s1 = inlined_call_operand.vmem [shape: bf16[256,128], index: 1, kind: input, shape index: {}]   ;;  %s893_s0 = inlined_call_operand.vmem [shape: bf16[128,256], index: 0, kind: input, shape index: {}]   ;;  %s894_s3 = inlined_call_operand.vmem [shape: f32[1,128], index: 3, kind: output, shape index: {1}]   ;;  %s895_s4 = inlined_call_operand.vmem [shape: f32[1,128], index: 4, kind: output, shape index: {2}]   ;;  %s896_s2 = inlined_call_operand.vmem [shape: f32[128,128], index: 2, kind: output, shape index: {0}]  }
   0x1   :  { %v646_v0 = vld [vmem:[%s892_s1 + $0x40] sm:$0xff]   ;;  %v648_v2 = vld [vmem:[%s892_s1 + $0x48] sm:$0xff]   ;;  %v650_v4 = vld [vmem:[%s892_s1 + $0x50] sm:$0xff]   ;;  %356 = vst [vmem:[%s894_s3] sm:$0x1] %v686_v32 }
   0x2   :  { %v647_v1 = vld [vmem:[%s892_s1] sm:$0xff]   ;;  %565 = vmatprep.subr.bf16.mxu0 %v646_v0  ;;  %629 = vmatprep.subr.bf16.mxu1 %v646_v0  ;;  %v649_v3 = vld [vmem:[%s892_s1 + $0x8] sm:$0xff]   ;;  %v651_v5 = vld [vmem:[%s892_s1 + $0x10] sm:$0xff]   ;;  %357 = vst [vmem:[%s895_s4] sm:$0x1] %v686_v32 }
   0x3   :  { %566 = vmatpush3.bf16.msra.mxu0 %v647_v1  ;;  %637 = vmatpush3.bf16.msra.mxu1 %v647_v1  ;;  %v652_v6 = vld [vmem:[%s892_s1 + $0x58] sm:$0xff]   ;;  %v654_v8 = vld [vmem:[%s892_s1 + $0x60] sm:$0xff]   ;;  %v656_v10 = vld [vmem:[%s892_s1 + $0x68] sm:$0xff]  }
   0x4   :  { %567 = vmatprep.subr.bf16.mxu0 %v648_v2  ;;  %630 = vmatprep.subr.bf16.mxu1 %v648_v2  ;;  %v653_v7 = vld [vmem:[%s892_s1 + $0x18] sm:$0xff]   ;;  %v655_v9 = vld [vmem:[%s892_s1 + $0x20] sm:$0xff]   ;;  %v657_v12 = vld [vmem:[%s892_s1 + $0x28] sm:$0xff]  }
   0x5   :  { %v664_v11 = vld [vmem:[%s893_s0 + $0x4] ss:$8 sps:$4 sm:$0xff]   ;;  %v658_v14 = vld [vmem:[%s892_s1 + $0x70] sm:$0xff]   ;;  %v660_v16 = vld [vmem:[%s892_s1 + $0x78] sm:$0xff]  }
   0x6   :  { %v670_v13 = vld [vmem:[%s893_s0 + $0x44] ss:$8 sps:$4 sm:$0xff]   ;;  %271 = vmatprep.mubr.bf16.mxu0 %v664_v11  ;;  %v659_v15 = vld [vmem:[%s892_s1 + $0x30] sm:$0xff]   ;;  %v661_v17 = vld [vmem:[%s892_s1 + $0x38] sm:$0xff]  }
   0x7   :  { %568 = vmatpush3.bf16.msra.mxu0 %v649_v3  ;;  %638 = vmatpush3.bf16.msra.mxu1 %v649_v3  ;;  %v662_v18 = vld [vmem:[%s893_s0] ss:$8 sps:$4 sm:$0xff]   ;;  %v665_v20 = vld [vmem:[%s893_s0 + $0x14] ss:$8 sps:$4 sm:$0xff]   ;;  %v667_v22 = vld [vmem:[%s893_s0 + $0x10] ss:$8 sps:$4 sm:$0xff]  }
   0x8   :  { %569 = vmatprep.subr.bf16.mxu0 %v650_v4  ;;  %631 = vmatprep.subr.bf16.mxu1 %v650_v4  ;;  %v668_v19 = vld [vmem:[%s893_s0 + $0x40] ss:$8 sps:$4 sm:$0xff]   ;;  %v674_v21 = vld [vmem:[%s893_s0 + $0x54] ss:$8 sps:$4 sm:$0xff]   ;;  %v676_v23 = vld [vmem:[%s893_s0 + $0x50] ss:$8 sps:$4 sm:$0xff]  }
   0x9   :  { %303 = vmatprep.mubr.bf16.mxu1 %v670_v13  ;;  %v671_v24 = vld [vmem:[%s893_s0 + $0x24] ss:$8 sps:$4 sm:$0xff]   ;;  %v673_v26 = vld [vmem:[%s893_s0 + $0x20] ss:$8 sps:$4 sm:$0xff]   ;;  %v677_v28 = vld [vmem:[%s893_s0 + $0x34] ss:$8 sps:$4 sm:$0xff]  }
   0xa   :  { %v680_v25 = vld [vmem:[%s893_s0 + $0x64] ss:$8 sps:$4 sm:$0xff]   ;;  %v682_v27 = vld [vmem:[%s893_s0 + $0x60] ss:$8 sps:$4 sm:$0xff]   ;;  %v683_v29 = vld [vmem:[%s893_s0 + $0x74] ss:$8 sps:$4 sm:$0xff]  }
   0xb   :  { %570 = vmatpush3.bf16.msra.mxu0 %v651_v5  ;;  %639 = vmatpush3.bf16.msra.mxu1 %v651_v5  ;;  %v679_v30 = vld [vmem:[%s893_s0 + $0x30] ss:$8 sps:$4 sm:$0xff]  }
   0xc   :  { %571 = vmatprep.subr.bf16.mxu0 %v652_v6  ;;  %632 = vmatprep.subr.bf16.mxu1 %v652_v6  ;;  %v685_v31 = vld [vmem:[%s893_s0 + $0x70] ss:$8 sps:$4 sm:$0xff]  }
   0xf   :  { %572 = vmatpush3.bf16.msra.mxu0 %v653_v7  ;;  %640 = vmatpush3.bf16.msra.mxu1 %v653_v7 }
  0x10   :  { %573 = vmatprep.subr.bf16.mxu0 %v654_v8  ;;  %633 = vmatprep.subr.bf16.mxu1 %v654_v8 }
  0x13   :  { %574 = vmatpush3.bf16.msra.mxu0 %v655_v9  ;;  %641 = vmatpush3.bf16.msra.mxu1 %v655_v9 }
  0x14   :  { %575 = vmatprep.subr.bf16.mxu0 %v656_v10  ;;  %634 = vmatprep.subr.bf16.mxu1 %v656_v10 }
  0x17   :  { %576 = vmatpush3.bf16.msra.mxu0 %v657_v12  ;;  %642 = vmatpush3.bf16.msra.mxu1 %v657_v12 }
  0x18   :  { %577 = vmatprep.subr.bf16.mxu0 %v658_v14  ;;  %635 = vmatprep.subr.bf16.mxu1 %v658_v14 }
  0x1b   :  { %578 = vmatpush3.bf16.msra.mxu0 %v659_v15  ;;  %643 = vmatpush3.bf16.msra.mxu1 %v659_v15 }
  0x1c   :  { %579 = vmatprep.subr.bf16.mxu0 %v660_v16  ;;  %636 = vmatprep.subr.bf16.mxu1 %v660_v16 }
  0x1f   :  { %580 = vmatpush3.bf16.msra.mxu0 %v661_v17  ;;  %644 = vmatpush3.bf16.msra.mxu1 %v661_v17 }
  0x22   :  { %272 = vmatmul.mubr.bf16.vlgmr.msra.gmra.mrb[0].mxu0 %v662_v18  ;;  %304 = vmatmul.mubr.bf16.vlgmr.msra.gmra.mrb[0].mxu1 %v668_v19 }
  0x23   :  { %279 = vmatprep.mubr.bf16.mxu0 %v665_v20  ;;  %311 = vmatprep.mubr.bf16.mxu1 %v674_v21 }
  0x2a   :  { %280 = vmatmul.mubr.bf16.gmra.mrb[4].mxu0 %v667_v22  ;;  %312 = vmatmul.mubr.bf16.gmra.mrb[4].mxu1 %v676_v23 }
  0x2b   :  { %287 = vmatprep.mubr.bf16.mxu0 %v671_v24  ;;  %319 = vmatprep.mubr.bf16.mxu1 %v680_v25 }
  0x32   :  { %288 = vmatmul.mubr.bf16.gmra.mrb[8].mxu0 %v673_v26  ;;  %320 = vmatmul.mubr.bf16.gmra.mrb[8].mxu1 %v682_v27 }
  0x33   :  { %295 = vmatprep.mubr.bf16.mxu0 %v677_v28  ;;  %327 = vmatprep.mubr.bf16.mxu1 %v683_v29 }
  0x3a   :  { %296 = vmatmul.mubr.bf16.gmra.mrb[12].mxu0 %v679_v30  ;;  %328 = vmatmul.mubr.bf16.gmra.mrb[12].mxu1 %v685_v31 }
  0xf5   :  { %v581_v33 = vpop.f32.mrb[0].mxu0  ;;  %v605_v34 = vpop.f32.mrb[0].mxu1 }
  0xf6   :  { %v582_v35 = vpop.f32.mrb[1].mxu0  ;;  %v606_v36 = vpop.f32.mrb[1].mxu1 }
  0xf7   :  { %v583_v37 = vadd.f32 %v582_v35, %v581_v33  ;;  %v584_v38 = vpop.f32.mrb[2].mxu0  ;;  %v814_v39 = vadd.f32 %v606_v36, %v605_v34  ;;  %v608_v40 = vpop.f32.mrb[2].mxu1 }
  0xf8   :  { %v585_v41 = vpop.f32.mrb[3].mxu0  ;;  %v609_v42 = vpop.f32.mrb[3].mxu1 }
  0xf9   :  { %336 = vst [vmem:[%s896_s2] sm:$0xff] %v583_v37  ;;  %v586_v43 = vadd.f32 %v585_v41, %v584_v38  ;;  %344 = vst [vmem:[%s896_s2 + $0x40] sm:$0xff] %v814_v39  ;;  %v823_v44 = vadd.f32 %v609_v42, %v608_v40  ;;  %v482_v45 = vmul.f32 %v583_v37, %v583_v37 }
  0xfa   :  { %v490_v38 = vmul.f32 %v814_v39, %v814_v39 }
  0xfb   :  { %337 = vst [vmem:[%s896_s2 + $0x8] sm:$0xff] %v586_v43  ;;  %v458_v46 = vadd.f32 %v586_v43, %v583_v37  ;;  %v483_v47 = vmul.f32 %v586_v43, %v586_v43  ;;  %345 = vst [vmem:[%s896_s2 + $0x48] sm:$0xff] %v823_v44  ;;  %v491_v42 = vmul.f32 %v823_v44, %v823_v44 }
  0xfd   :  { %v498_v48 = vadd.f32 %v483_v47, %v482_v45  ;;  %v587_v49 = vpop.f32.mrb[4].mxu0  ;;  %v611_v50 = vpop.f32.mrb[4].mxu1 }
  0xfe   :  { %v588_v51 = vpop.f32.mrb[5].mxu0  ;;  %v612_v52 = vpop.f32.mrb[5].mxu1 }
  0xff   :  { %v589_v53 = vadd.f32 %v588_v51, %v587_v49  ;;  %v590_v54 = vpop.f32.mrb[6].mxu0  ;;  %v832_v55 = vadd.f32 %v612_v52, %v611_v50  ;;  %v614_v56 = vpop.f32.mrb[6].mxu1 }
 0x100   :  { %v591_v57 = vpop.f32.mrb[7].mxu0  ;;  %v615_v58 = vpop.f32.mrb[7].mxu1 }
 0x101   :  { %338 = vst [vmem:[%s896_s2 + $0x10] sm:$0xff] %v589_v53  ;;  %v459_v59 = vadd.f32 %v589_v53, %v458_v46  ;;  %v484_v60 = vmul.f32 %v589_v53, %v589_v53  ;;  %v592_v61 = vadd.f32 %v591_v57, %v590_v54  ;;  %346 = vst [vmem:[%s896_s2 + $0x50] sm:$0xff] %v832_v55 }
 0x102   :  { %v616_v62 = vadd.f32 %v615_v58, %v614_v56  ;;  %v492_v46 = vmul.f32 %v832_v55, %v832_v55 }
 0x103   :  { %v499_v63 = vadd.f32 %v498_v48, %v484_v60  ;;  %339 = vst [vmem:[%s896_s2 + $0x18] sm:$0xff] %v592_v61  ;;  %v460_v0 = vadd.f32 %v592_v61, %v459_v59  ;;  %v485_v1 = vmul.f32 %v592_v61, %v592_v61 }
 0x104   :  { %347 = vst [vmem:[%s896_s2 + $0x58] sm:$0xff] %v616_v62  ;;  %v493_v49 = vmul.f32 %v616_v62, %v616_v62 }
 0x105   :  { %v500_v2 = vadd.f32 %v499_v63, %v485_v1  ;;  %v593_v3 = vpop.f32.mrb[8].mxu0  ;;  %v617_v4 = vpop.f32.mrb[8].mxu1 }
 0x106   :  { %v594_v5 = vpop.f32.mrb[9].mxu0  ;;  %v618_v6 = vpop.f32.mrb[9].mxu1 }
 0x107   :  { %v595_v7 = vadd.f32 %v594_v5, %v593_v3  ;;  %v596_v8 = vpop.f32.mrb[10].mxu0  ;;  %v619_v9 = vadd.f32 %v618_v6, %v617_v4  ;;  %v620_v10 = vpop.f32.mrb[10].mxu1 }
 0x108   :  { %v597_v11 = vpop.f32.mrb[11].mxu0  ;;  %v621_v12 = vpop.f32.mrb[11].mxu1 }
 0x109   :  { %340 = vst [vmem:[%s896_s2 + $0x20] sm:$0xff] %v595_v7  ;;  %v461_v13 = vadd.f32 %v595_v7, %v460_v0  ;;  %v486_v14 = vmul.f32 %v595_v7, %v595_v7  ;;  %v598_v15 = vadd.f32 %v597_v11, %v596_v8  ;;  %348 = vst [vmem:[%s896_s2 + $0x60] sm:$0xff] %v619_v9  ;;  %v457_v8 = vld [vmem:[%s894_s3] sm:$0x1] }
 0x10a   :  { %v622_v16 = vadd.f32 %v621_v12, %v620_v10  ;;  %v494_v53 = vmul.f32 %v619_v9, %v619_v9  ;;  %v481_v11 = vld [vmem:[%s895_s4] sm:$0x1] }
 0x10b   :  { %v501_v17 = vadd.f32 %v500_v2, %v486_v14  ;;  %341 = vst [vmem:[%s896_s2 + $0x28] sm:$0xff] %v598_v15  ;;  %v462_v18 = vadd.f32 %v598_v15, %v461_v13  ;;  %v487_v19 = vmul.f32 %v598_v15, %v598_v15 }
 0x10c   :  { %349 = vst [vmem:[%s896_s2 + $0x68] sm:$0xff] %v622_v16  ;;  %v495_v57 = vmul.f32 %v622_v16, %v622_v16 }
 0x10d   :  { %v502_v20 = vadd.f32 %v501_v17, %v487_v19  ;;  %v599_v21 = vpop.f32.mrb[12].mxu0  ;;  %v623_v22 = vpop.f32.mrb[12].mxu1 }
 0x10e   :  { %v600_v23 = vpop.f32.mrb[13].mxu0  ;;  %v624_v24 = vpop.f32.mrb[13].mxu1 }
 0x10f   :  { %v601_v25 = vadd.f32 %v600_v23, %v599_v21  ;;  %v602_v26 = vpop.f32.mrb[14].mxu0  ;;  %v625_v27 = vadd.f32 %v624_v24, %v623_v22  ;;  %v626_v28 = vpop.f32.mrb[14].mxu1 }
 0x110   :  { %v603_v29 = vpop.f32.mrb[15].mxu0  ;;  %v627_v30 = vpop.f32.mrb[15].mxu1 }
 0x111   :  { %342 = vst [vmem:[%s896_s2 + $0x30] sm:$0xff] %v601_v25  ;;  %v463_v31 = vadd.f32 %v601_v25, %v462_v18  ;;  %v488_v32 = vmul.f32 %v601_v25, %v601_v25  ;;  %v604_v33 = vadd.f32 %v603_v29, %v602_v26  ;;  %350 = vst [vmem:[%s896_s2 + $0x70] sm:$0xff] %v625_v27 }
 0x112   :  { %v628_v34 = vadd.f32 %v627_v30, %v626_v28  ;;  %v496_v58 = vmul.f32 %v625_v27, %v625_v27 }
 0x113   :  { %v503_v35 = vadd.f32 %v502_v20, %v488_v32  ;;  %343 = vst [vmem:[%s896_s2 + $0x38] sm:$0xff] %v604_v33  ;;  %v464_v36 = vadd.f32 %v604_v33, %v463_v31  ;;  %v489_v37 = vmul.f32 %v604_v33, %v604_v33 }
 0x114   :  { %351 = vst [vmem:[%s896_s2 + $0x78] sm:$0xff] %v628_v34  ;;  %v497_v63 = vmul.f32 %v628_v34, %v628_v34 }
 0x115   :  { %v465_v40 = vadd.f32 %v814_v39, %v464_v36  ;;  %v504_v41 = vadd.f32 %v503_v35, %v489_v37 }
 0x117   :  { %v466_v43 = vadd.f32 %v823_v44, %v465_v40  ;;  %v505_v45 = vadd.f32 %v504_v41, %v490_v38 }
 0x119   :  { %v506_v47 = vadd.f32 %v505_v45, %v491_v42  ;;  %v467_v48 = vadd.f32 %v832_v55, %v466_v43 }
 0x11b   :  { %v468_v50 = vadd.f32 %v616_v62, %v467_v48  ;;  %v507_v51 = vadd.f32 %v506_v47, %v492_v46 }
 0x11d   :  { %v469_v52 = vadd.f32 %v619_v9, %v468_v50  ;;  %v508_v54 = vadd.f32 %v507_v51, %v493_v49 }
 0x11f   :  { %v509_v39 = vadd.f32 %v508_v54, %v494_v53  ;;  %v470_v56 = vadd.f32 %v622_v16, %v469_v52 }
 0x121   :  { %v510_v59 = vadd.f32 %v509_v39, %v495_v57  ;;  %v471_v60 = vadd.f32 %v625_v27, %v470_v56 }
 0x123   :  { %v511_v44 = vadd.f32 %v510_v59, %v496_v58  ;;  %v472_v61 = vadd.f32 %v628_v34, %v471_v60 }
 0x125   :  { %v473_v0 = vrot.slane %v472_v61, 4  ;;  %v512_v1 = vadd.f32 %v511_v44, %v497_v63 }
 0x127   :  { %v474_v2 = vadd.f32 %v473_v0, %v472_v61  ;;  %v513_v3 = vrot.slane %v512_v1, 4 }
 0x129   :  { %v475_v55 = vrot.slane %v474_v2, 2  ;;  %v514_v4 = vadd.f32 %v513_v3, %v512_v1 }
 0x12b   :  { %v476_v62 = vadd.f32 %v475_v55, %v474_v2  ;;  %v515_v5 = vrot.slane %v514_v4, 2 }
 0x12d   :  { %v477_v6 = vrot.slane %v476_v62, 1  ;;  %v516_v7 = vadd.f32 %v515_v5, %v514_v4 }
 0x12f   :  { %v478_v9 = vadd.f32 %v477_v6, %v476_v62  ;;  %v517_v10 = vrot.slane %v516_v7, 1 }
 0x131   :  { %v479_v12 = vadd.f32 %v478_v9, %v457_v8  ;;  %v518_v13 = vadd.f32 %v517_v10, %v516_v7 }
 0x133   :  { %480 = vst [vmem:[%s894_s3] sm:$0x1] %v479_v12  ;;  %v519_v14 = vadd.f32 %v518_v13, %v481_v11 }
 0x135   :  { %520 = vst [vmem:[%s895_s4] sm:$0x1] %v519_v14 }

// kernel: discriminator_forward.12
= control target key start
LH: loop header
LB: loop body
LE: loop exit
PB: predicated region body
PF: predicated region fallthrough
CT: control target
= control target key end

     0   :  { %s423_s0 = inlined_call_operand.vmem [shape: f32[128,128], index: 0, kind: input, shape index: {}]   ;;  %s424_s1 = inlined_call_operand.vmem [shape: f32[1,128], index: 1, kind: input, shape index: {}]   ;;  %s425_s2 = inlined_call_operand.vmem [shape: f32[1,128], index: 2, kind: input, shape index: {}]   ;;  %s426_s3 = inlined_call_operand.vmem [shape: bf16[128,128], index: 3, kind: output, shape index: {}]  }
   0x1   :  { %v14_v0 = vld [vmem:[%s423_s0] sm:$0xff]  ;;  %v15_v1 = vld [vmem:[%s423_s0 + $0x8] sm:$0xff]  ;;  %v16_v6 = vld [vmem:[%s423_s0 + $0x10] sm:$0xff] }
   0x2   :  { %v318_v2 = vld [vmem:[%s424_s1] ss:$0 sm:$0xff]  ;;  %v17_v7 = vld [vmem:[%s423_s0 + $0x18] sm:$0xff]  ;;  %v19_v11 = vld [vmem:[%s423_s0 + $0x28] sm:$0xff] }
   0x3   :  { %v37_v3 = vmul.f32 %v318_v2, %v14_v0  ;;  %v38_v4 = vmul.f32 %v318_v2, %v15_v1  ;;  %v325_v5 = vld [vmem:[%s425_s2] ss:$0 sm:$0xff]  ;;  %v39_v8 = vmul.f32 %v318_v2, %v16_v6  ;;  %v40_v9 = vmul.f32 %v318_v2, %v17_v7  ;;  %v20_v12 = vld [vmem:[%s423_s0 + $0x30] sm:$0xff]  ;;  %v21_v17 = vld [vmem:[%s423_s0 + $0x38] sm:$0xff] }
   0x4   :  { %v18_v10 = vld [vmem:[%s423_s0 + $0x20] sm:$0xff]  ;;  %v42_v16 = vmul.f32 %v318_v2, %v19_v11  ;;  %v43_v20 = vmul.f32 %v318_v2, %v20_v12  ;;  %v44_v21 = vmul.f32 %v318_v2, %v21_v17  ;;  %v23_v35 = vld [vmem:[%s423_s0 + $0x48] sm:$0xff]  ;;  %v24_v36 = vld [vmem:[%s423_s0 + $0x50] sm:$0xff] }
   0x5   :  { %v60_v13 = vadd.f32 %v325_v5, %v37_v3  ;;  %v61_v14 = vadd.f32 %v325_v5, %v38_v4  ;;  %v41_v15 = vmul.f32 %v318_v2, %v18_v10  ;;  %v62_v18 = vadd.f32 %v325_v5, %v39_v8  ;;  %v22_v34 = vld [vmem:[%s423_s0 + $0x40] sm:$0xff]  ;;  %v25_v42 = vld [vmem:[%s423_s0 + $0x58] sm:$0xff]  ;;  %v27_v48 = vld [vmem:[%s423_s0 + $0x68] sm:$0xff] }
   0x6   :  { %v63_v19 = vadd.f32 %v325_v5, %v40_v9  ;;  %v65_v29 = vadd.f32 %v325_v5, %v42_v16  ;;  %v66_v33 = vadd.f32 %v325_v5, %v43_v20  ;;  %v67_v40 = vadd.f32 %v325_v5, %v44_v21  ;;  %v26_v47 = vld [vmem:[%s423_s0 + $0x60] sm:$0xff]  ;;  %v28_v60 = vld [vmem:[%s423_s0 + $0x70] sm:$0xff]  ;;  %v29_v7 = vld [vmem:[%s423_s0 + $0x78] sm:$0xff] }
   0x7   :  { %vm76_vm0 = vcmp.gt.f32.partialorder %v60_v13, 0.0  ;;  %vm77_vm1 = vcmp.gt.f32.partialorder %v61_v14, 0.0  ;;  %v92_v22 = vmul.f32 0.2, %v60_v13  ;;  %v93_v23 = vmul.f32 0.2, %v61_v14 }
   0x8   :  { %vm78_vm2 = vcmp.gt.f32.partialorder %v62_v18, 0.0  ;;  %vm79_vm3 = vcmp.gt.f32.partialorder %v63_v19, 0.0  ;;  %v94_v24 = vmul.f32 0.2, %v62_v18  ;;  %v95_v25 = vmul.f32 0.2, %v63_v19 }
   0x9   :  { %v108_v26 = vsel %vm76_vm0, %v60_v13, %v92_v22  ;;  %v109_v27 = vsel %vm77_vm1, %v61_v14, %v93_v23  ;;  %v64_v28 = vadd.f32 %v325_v5, %v41_v15  ;;  %vm81_vm5 = vcmp.gt.f32.partialorder %v65_v29, 0.0 }
   0xa   :  { %v245_v30 = vpack.c.bf16 %v109_v27, %v108_v26  ;;  %v110_v31 = vsel %vm78_vm2, %v62_v18, %v94_v24  ;;  %v111_v32 = vsel %vm79_vm3, %v63_v19, %v95_v25  ;;  %v97_v39 = vmul.f32 0.2, %v65_v29 }
   0xb   :  { %v250_v37 = vpack.c.bf16 %v111_v32, %v110_v31  ;;  %vm80_vm4 = vcmp.gt.f32.partialorder %v64_v28, 0.0  ;;  %v96_v38 = vmul.f32 0.2, %v64_v28  ;;  %vm82_vm6 = vcmp.gt.f32.partialorder %v66_v33, 0.0 }
   0xc   :  { %246 = vst [vmem:[%s426_s3] sm:$0xff] %v245_v30   ;;  %v98_v41 = vmul.f32 0.2, %v66_v33  ;;  %v45_v44 = vmul.f32 %v318_v2, %v22_v34  ;;  %v46_v45 = vmul.f32 %v318_v2, %v23_v35  ;;  %v47_v46 = vmul.f32 %v318_v2, %v24_v36 }
   0xd   :  { %282 = vst [vmem:[%s426_s3 + $0x8] sm:$0xff] %v250_v37   ;;  %v112_v43 = vsel %vm80_vm4, %v64_v28, %v96_v38  ;;  %v113_v49 = vsel %vm81_vm5, %v65_v29, %v97_v39  ;;  %vm83_vm7 = vcmp.gt.f32.partialorder %v67_v40, 0.0  ;;  %v99_v50 = vmul.f32 0.2, %v67_v40 }
   0xe   :  { %v114_v51 = vsel %vm82_vm6, %v66_v33, %v98_v41  ;;  %v255_v52 = vpack.c.bf16 %v113_v49, %v112_v43  ;;  %v68_v53 = vadd.f32 %v325_v5, %v45_v44  ;;  %v69_v54 = vadd.f32 %v325_v5, %v46_v45 }
   0xf   :  { %v48_v55 = vmul.f32 %v318_v2, %v25_v42  ;;  %v115_v56 = vsel %vm83_vm7, %v67_v40, %v99_v50  ;;  %v70_v57 = vadd.f32 %v325_v5, %v47_v46  ;;  %v49_v58 = vmul.f32 %v318_v2, %v26_v47 }
  0x10   :  { %v50_v59 = vmul.f32 %v318_v2, %v27_v48  ;;  %283 = vst [vmem:[%s426_s3 + $0x10] sm:$0xff] %v255_v52   ;;  %v260_v61 = vpack.c.bf16 %v115_v56, %v114_v51  ;;  %vm84_vm8 = vcmp.gt.f32.partialorder %v68_v53, 0.0  ;;  %vm85_vm9 = vcmp.gt.f32.partialorder %v69_v54, 0.0 }
  0x11   :  { %v100_v62 = vmul.f32 0.2, %v68_v53  ;;  %v101_v63 = vmul.f32 0.2, %v69_v54  ;;  %v71_v0 = vadd.f32 %v325_v5, %v48_v55  ;;  %vm86_vm10 = vcmp.gt.f32.partialorder %v70_v57, 0.0 }
  0x12   :  { %v102_v1 = vmul.f32 0.2, %v70_v57  ;;  %284 = vst [vmem:[%s426_s3 + $0x18] sm:$0xff] %v260_v61   ;;  %v72_v4 = vadd.f32 %v325_v5, %v49_v58  ;;  %v73_v6 = vadd.f32 %v325_v5, %v50_v59  ;;  %v51_v8 = vmul.f32 %v318_v2, %v28_v60 }
  0x13   :  { %v116_v3 = vsel %vm84_vm8, %v68_v53, %v100_v62  ;;  %v117_v9 = vsel %vm85_vm9, %v69_v54, %v101_v63  ;;  %vm87_vm11 = vcmp.gt.f32.partialorder %v71_v0, 0.0  ;;  %v103_v10 = vmul.f32 0.2, %v71_v0 }
  0x14   :  { %v118_v11 = vsel %vm86_vm10, %v70_v57, %v102_v1  ;;  %v265_v12 = vpack.c.bf16 %v117_v9, %v116_v3  ;;  %vm88_vm12 = vcmp.gt.f32.partialorder %v72_v4, 0.0  ;;  %vm89_vm13 = vcmp.gt.f32.partialorder %v73_v6, 0.0 }
  0x15   :  { %v104_v13 = vmul.f32 0.2, %v72_v4  ;;  %v119_v14 = vsel %vm87_vm11, %v71_v0, %v103_v10  ;;  %v105_v15 = vmul.f32 0.2, %v73_v6  ;;  %v52_v16 = vmul.f32 %v318_v2, %v29_v7 }
  0x16   :  { %v74_v17 = vadd.f32 %v325_v5, %v51_v8  ;;  %285 = vst [vmem:[%s426_s3 + $0x20] sm:$0xff] %v265_v12   ;;  %v270_v18 = vpack.c.bf16 %v119_v14, %v118_v11 }
  0x17   :  { %v120_v19 = vsel %vm88_vm12, %v72_v4, %v104_v13  ;;  %v121_v20 = vsel %vm89_vm13, %v73_v6, %v105_v15  ;;  %v75_v21 = vadd.f32 %v325_v5, %v52_v16 }
  0x18   :  { %vm90_vm14 = vcmp.gt.f32.partialorder %v74_v17, 0.0  ;;  %v106_v22 = vmul.f32 0.2, %v74_v17  ;;  %286 = vst [vmem:[%s426_s3 + $0x28] sm:$0xff] %v270_v18   ;;  %v275_v23 = vpack.c.bf16 %v121_v20, %v120_v19 }
  0x19   :  { %vm91_vm15 = vcmp.gt.f32.partialorder %v75_v21, 0.0  ;;  %v107_v2 = vmul.f32 0.2, %v75_v21 }
  0x1a   :  { %v122_v24 = vsel %vm90_vm14, %v74_v17, %v106_v22  ;;  %287 = vst [vmem:[%s426_s3 + $0x30] sm:$0xff] %v275_v23  }
  0x1b   :  { %v123_v25 = vsel %vm91_vm15, %v75_v21, %v107_v2 }
  0x1c   :  { %v280_v26 = vpack.c.bf16 %v123_v25, %v122_v24 }
  0x1e   :  { %288 = vst [vmem:[%s426_s3 + $0x38] sm:$0xff] %v280_v26  }

// kernel: discriminator_forward.14
= control target key start
LH: loop header
LB: loop body
LE: loop exit
PB: predicated region body
PF: predicated region fallthrough
CT: control target
= control target key end

     0   :  { %s141_s0 = inlined_call_operand.vmem [shape: f32[32,128], index: 0, kind: input, shape index: {}]   ;;  %s142_s1 = inlined_call_operand.vmem [shape: f32[1,128], index: 1, kind: input, shape index: {}]   ;;  %s143_s2 = inlined_call_operand.vmem [shape: f32[1,128], index: 2, kind: input, shape index: {}]   ;;  %s144_s3 = inlined_call_operand.vmem [shape: bf16[32,128], index: 3, kind: output, shape index: {}]  }
   0x1   :  { %v14_v0 = vld [vmem:[%s141_s0] sm:$0xff]  ;;  %v15_v1 = vld [vmem:[%s141_s0 + $0x8] sm:$0xff]  ;;  %v16_v6 = vld [vmem:[%s141_s0 + $0x10] sm:$0xff] }
   0x2   :  { %v76_v2 = vld [vmem:[%s142_s1] ss:$0 sm:$0xff]  ;;  %v17_v7 = vld [vmem:[%s141_s0 + $0x18] sm:$0xff] }
   0x3   :  { %v25_v3 = vmul.f32 %v76_v2, %v14_v0  ;;  %v26_v4 = vmul.f32 %v76_v2, %v15_v1  ;;  %v77_v5 = vld [vmem:[%s143_s2] ss:$0 sm:$0xff]  ;;  %v27_v8 = vmul.f32 %v76_v2, %v16_v6  ;;  %v28_v9 = vmul.f32 %v76_v2, %v17_v7 }
   0x5   :  { %v36_v10 = vadd.f32 %v77_v5, %v25_v3  ;;  %v37_v11 = vadd.f32 %v77_v5, %v26_v4  ;;  %v38_v12 = vadd.f32 %v77_v5, %v27_v8  ;;  %v39_v13 = vadd.f32 %v77_v5, %v28_v9 }
   0x7   :  { %vm40_vm0 = vcmp.gt.f32.partialorder %v36_v10, 0.0  ;;  %vm41_vm1 = vcmp.gt.f32.partialorder %v37_v11, 0.0  ;;  %v44_v14 = vmul.f32 0.2, %v36_v10  ;;  %v45_v15 = vmul.f32 0.2, %v37_v11 }
   0x8   :  { %vm42_vm2 = vcmp.gt.f32.partialorder %v38_v12, 0.0  ;;  %vm43_vm3 = vcmp.gt.f32.partialorder %v39_v13, 0.0  ;;  %v46_v16 = vmul.f32 0.2, %v38_v12  ;;  %v47_v17 = vmul.f32 0.2, %v39_v13 }
   0x9   :  { %v48_v18 = vsel %vm40_vm0, %v36_v10, %v44_v14  ;;  %v49_v19 = vsel %vm41_vm1, %v37_v11, %v45_v15 }
   0xa   :  { %v89_v20 = vpack.c.bf16 %v49_v19, %v48_v18  ;;  %v50_v21 = vsel %vm42_vm2, %v38_v12, %v46_v16  ;;  %v51_v22 = vsel %vm43_vm3, %v39_v13, %v47_v17 }
   0xb   :  { %v94_v23 = vpack.c.bf16 %v51_v22, %v50_v21 }
   0xc   :  { %90 = vst [vmem:[%s144_s3] sm:$0xff] %v89_v20  }
   0xd   :  { %96 = vst [vmem:[%s144_s3 + $0x8] sm:$0xff] %v94_v23  }

// kernel: discriminator_forward.13
= control target key start
LH: loop header
LB: loop body
LE: loop exit
PB: predicated region body
PF: predicated region fallthrough
CT: control target
= control target key end

     0   :  { %v635_v40 = vmov 0.0   ;;  %s811_s1 = inlined_call_operand.vmem [shape: bf16[512,128], index: 1, kind: input, shape index: {}]   ;;  %s812_s0 = inlined_call_operand.vmem [shape: bf16[32,512], index: 0, kind: input, shape index: {}]   ;;  %s813_s3 = inlined_call_operand.vmem [shape: f32[1,128], index: 3, kind: output, shape index: {1}]   ;;  %s814_s4 = inlined_call_operand.vmem [shape: f32[1,128], index: 4, kind: output, shape index: {2}]   ;;  %s815_s2 = inlined_call_operand.vmem [shape: f32[32,128], index: 2, kind: output, shape index: {0}]  }
   0x1   :  { %v591_v0 = vld [vmem:[%s811_s1 + $0x40] sm:$0xff]   ;;  %v595_v4 = vld [vmem:[%s811_s1 + $0x48] sm:$0xff]   ;;  %v599_v8 = vld [vmem:[%s811_s1 + $0x50] sm:$0xff]   ;;  %425 = vst [vmem:[%s813_s3] sm:$0x1] %v635_v40 }
   0x2   :  { %v592_v1 = vld [vmem:[%s811_s1 + $0xc0] sm:$0xff]   ;;  %534 = vmatprep.subr.bf16.mxu0 %v591_v0  ;;  %v596_v5 = vld [vmem:[%s811_s1 + $0xc8] sm:$0xff]   ;;  %v600_v9 = vld [vmem:[%s811_s1 + $0xd0] sm:$0xff]   ;;  %426 = vst [vmem:[%s814_s4] sm:$0x1] %v635_v40 }
   0x3   :  { %v593_v2 = vld [vmem:[%s811_s1] sm:$0xff]   ;;  %562 = vmatprep.subr.bf16.mxu1 %v592_v1  ;;  %v597_v6 = vld [vmem:[%s811_s1 + $0x8] sm:$0xff]   ;;  %v601_v10 = vld [vmem:[%s811_s1 + $0x10] sm:$0xff]  }
   0x4   :  { %v594_v3 = vld [vmem:[%s811_s1 + $0x80] sm:$0xff]   ;;  %535 = vmatpush3.bf16.msra.mxu0 %v593_v2  ;;  %v598_v7 = vld [vmem:[%s811_s1 + $0x88] sm:$0xff]   ;;  %v602_v11 = vld [vmem:[%s811_s1 + $0x90] sm:$0xff]  }
   0x5   :  { %563 = vmatpush3.bf16.msra.mxu1 %v594_v3  ;;  %536 = vmatprep.subr.bf16.mxu0 %v595_v4  ;;  %v603_v12 = vld [vmem:[%s811_s1 + $0x58] sm:$0xff]   ;;  %v607_v16 = vld [vmem:[%s811_s1 + $0x60] sm:$0xff]   ;;  %v611_v20 = vld [vmem:[%s811_s1 + $0x68] sm:$0xff]  }
   0x6   :  { %564 = vmatprep.subr.bf16.mxu1 %v596_v5  ;;  %v604_v13 = vld [vmem:[%s811_s1 + $0xd8] sm:$0xff]   ;;  %v608_v17 = vld [vmem:[%s811_s1 + $0xe0] sm:$0xff]   ;;  %v612_v21 = vld [vmem:[%s811_s1 + $0xe8] sm:$0xff]  }
   0x7   :  { %v605_v14 = vld [vmem:[%s811_s1 + $0x18] sm:$0xff]   ;;  %v609_v18 = vld [vmem:[%s811_s1 + $0x20] sm:$0xff]   ;;  %v613_v22 = vld [vmem:[%s811_s1 + $0x28] sm:$0xff]  }
   0x8   :  { %537 = vmatpush3.bf16.msra.mxu0 %v597_v6  ;;  %v606_v15 = vld [vmem:[%s811_s1 + $0x98] sm:$0xff]   ;;  %v610_v19 = vld [vmem:[%s811_s1 + $0xa0] sm:$0xff]   ;;  %v614_v23 = vld [vmem:[%s811_s1 + $0xa8] sm:$0xff]  }
   0x9   :  { %565 = vmatpush3.bf16.msra.mxu1 %v598_v7  ;;  %538 = vmatprep.subr.bf16.mxu0 %v599_v8  ;;  %v615_v24 = vld [vmem:[%s811_s1 + $0x70] sm:$0xff]   ;;  %v619_v28 = vld [vmem:[%s811_s1 + $0x78] sm:$0xff]  }
   0xa   :  { %566 = vmatprep.subr.bf16.mxu1 %v600_v9  ;;  %v616_v25 = vld [vmem:[%s811_s1 + $0xf0] sm:$0xff]   ;;  %v620_v29 = vld [vmem:[%s811_s1 + $0xf8] sm:$0xff]  }
   0xb   :  { %v617_v26 = vld [vmem:[%s811_s1 + $0x30] sm:$0xff]   ;;  %v621_v30 = vld [vmem:[%s811_s1 + $0x38] sm:$0xff]  }
   0xc   :  { %539 = vmatpush3.bf16.msra.mxu0 %v601_v10  ;;  %v618_v27 = vld [vmem:[%s811_s1 + $0xb0] sm:$0xff]   ;;  %v622_v31 = vld [vmem:[%s811_s1 + $0xb8] sm:$0xff]  }
   0xd   :  { %567 = vmatpush3.bf16.msra.mxu1 %v602_v11  ;;  %540 = vmatprep.subr.bf16.mxu0 %v603_v12  ;;  %v623_v32 = vld [vmem:[%s812_s0] ss:$16 sps:$4 sm:$0xff]   ;;  %v625_v33 = vld [vmem:[%s812_s0 + $0x4] ss:$16 sps:$4 sm:$0xff]   ;;  %v626_v34 = vld [vmem:[%s812_s0 + $0x8] ss:$16 sps:$4 sm:$0xff]  }
   0xe   :  { %568 = vmatprep.subr.bf16.mxu1 %v604_v13  ;;  %v628_v35 = vld [vmem:[%s812_s0 + $0xc] ss:$16 sps:$4 sm:$0xff]   ;;  %351 = vmatprep.mubr.bf16.mxu0 %v625_v33  ;;  %v629_v36 = vld [vmem:[%s812_s0 + $0x24] ss:$16 sps:$4 sm:$0xff]   ;;  %v633_v38 = vld [vmem:[%s812_s0 + $0x20] ss:$16 sps:$4 sm:$0xff]  }
   0xf   :  { %400 = vmatprep.mubr.bf16.mxu1 %v628_v35  ;;  %v631_v37 = vld [vmem:[%s812_s0 + $0x2c] ss:$16 sps:$4 sm:$0xff]   ;;  %v634_v39 = vld [vmem:[%s812_s0 + $0x28] ss:$16 sps:$4 sm:$0xff]  }
  0x10   :  { %541 = vmatpush3.bf16.msra.mxu0 %v605_v14 }
  0x11   :  { %569 = vmatpush3.bf16.msra.mxu1 %v606_v15  ;;  %542 = vmatprep.subr.bf16.mxu0 %v607_v16 }
  0x12   :  { %570 = vmatprep.subr.bf16.mxu1 %v608_v17 }
  0x14   :  { %543 = vmatpush3.bf16.msra.mxu0 %v609_v18 }
  0x15   :  { %571 = vmatpush3.bf16.msra.mxu1 %v610_v19  ;;  %544 = vmatprep.subr.bf16.mxu0 %v611_v20 }
  0x16   :  { %572 = vmatprep.subr.bf16.mxu1 %v612_v21 }
  0x18   :  { %545 = vmatpush3.bf16.msra.mxu0 %v613_v22 }
  0x19   :  { %573 = vmatpush3.bf16.msra.mxu1 %v614_v23  ;;  %546 = vmatprep.subr.bf16.mxu0 %v615_v24  ;;  %v454_v24 = vld [vmem:[%s813_s3] sm:$0x1] }
  0x1a   :  { %574 = vmatprep.subr.bf16.mxu1 %v616_v25 }
  0x1c   :  { %547 = vmatpush3.bf16.msra.mxu0 %v617_v26 }
  0x1d   :  { %575 = vmatpush3.bf16.msra.mxu1 %v618_v27  ;;  %548 = vmatprep.subr.bf16.mxu0 %v619_v28  ;;  %v466_v27 = vld [vmem:[%s814_s4] sm:$0x1] }
  0x1e   :  { %576 = vmatprep.subr.bf16.mxu1 %v620_v29 }
  0x20   :  { %549 = vmatpush3.bf16.msra.mxu0 %v621_v30 }
  0x21   :  { %577 = vmatpush3.bf16.msra.mxu1 %v622_v31 }
  0x23   :  { %352 = vmatmul.mubr.bf16.vlgmr.msra.gmra.mrb[0].mxu0 %v623_v32 }
  0x24   :  { %401 = vmatmul.mubr.bf16.vlgmr.msra.gmra.mrb[0].mxu1 %v626_v34  ;;  %359 = vmatprep.mubr.bf16.mxu0 %v629_v36 }
  0x25   :  { %408 = vmatprep.mubr.bf16.mxu1 %v631_v37 }
  0x2b   :  { %360 = vmatmul.mubr.bf16.gmra.mrb[4].mxu0 %v633_v38 }
  0x2c   :  { %409 = vmatmul.mubr.bf16.gmra.mrb[4].mxu1 %v634_v39 }
  0xf6   :  { %v550_v41 = vpop.f32.mrb[0].mxu0 }
  0xf7   :  { %v578_v42 = vpop.f32.mrb[0].mxu1  ;;  %v551_v43 = vpop.f32.mrb[1].mxu0 }
  0xf8   :  { %v552_v44 = vadd.f32 %v551_v43, %v550_v41  ;;  %v579_v45 = vpop.f32.mrb[1].mxu1  ;;  %v553_v46 = vpop.f32.mrb[2].mxu0 }
  0xf9   :  { %v580_v47 = vadd.f32 %v579_v45, %v578_v42  ;;  %v581_v48 = vpop.f32.mrb[2].mxu1  ;;  %v554_v49 = vpop.f32.mrb[3].mxu0 }
  0xfa   :  { %v555_v50 = vadd.f32 %v554_v49, %v553_v46  ;;  %v582_v51 = vpop.f32.mrb[3].mxu1 }
  0xfb   :  { %v403_v52 = vadd.f32 %v580_v47, %v552_v44  ;;  %v583_v53 = vadd.f32 %v582_v51, %v581_v48 }
  0xfd   :  { %417 = vst [vmem:[%s815_s2] sm:$0xff] %v403_v52  ;;  %v406_v54 = vadd.f32 %v583_v53, %v555_v50  ;;  %v467_v56 = vmul.f32 %v403_v52, %v403_v52 }
  0xfe   :  { %v556_v55 = vpop.f32.mrb[4].mxu0 }
  0xff   :  { %418 = vst [vmem:[%s815_s2 + $0x8] sm:$0xff] %v406_v54  ;;  %v455_v57 = vadd.f32 %v406_v54, %v403_v52  ;;  %v468_v58 = vmul.f32 %v406_v54, %v406_v54  ;;  %v584_v59 = vpop.f32.mrb[4].mxu1  ;;  %v557_v60 = vpop.f32.mrb[5].mxu0 }
 0x100   :  { %v558_v61 = vadd.f32 %v557_v60, %v556_v55  ;;  %v585_v62 = vpop.f32.mrb[5].mxu1  ;;  %v559_v63 = vpop.f32.mrb[6].mxu0 }
 0x101   :  { %v471_v0 = vadd.f32 %v468_v58, %v467_v56  ;;  %v586_v1 = vadd.f32 %v585_v62, %v584_v59  ;;  %v587_v2 = vpop.f32.mrb[6].mxu1  ;;  %v560_v3 = vpop.f32.mrb[7].mxu0 }
 0x102   :  { %v561_v4 = vadd.f32 %v560_v3, %v559_v63  ;;  %v588_v5 = vpop.f32.mrb[7].mxu1 }
 0x103   :  { %v411_v6 = vadd.f32 %v586_v1, %v558_v61  ;;  %v589_v7 = vadd.f32 %v588_v5, %v587_v2 }
 0x105   :  { %419 = vst [vmem:[%s815_s2 + $0x10] sm:$0xff] %v411_v6  ;;  %v456_v8 = vadd.f32 %v455_v57, %v411_v6  ;;  %v469_v9 = vmul.f32 %v411_v6, %v411_v6  ;;  %v414_v10 = vadd.f32 %v589_v7, %v561_v4 }
 0x107   :  { %v472_v11 = vadd.f32 %v471_v0, %v469_v9  ;;  %420 = vst [vmem:[%s815_s2 + $0x18] sm:$0xff] %v414_v10  ;;  %v457_v12 = vadd.f32 %v456_v8, %v414_v10  ;;  %v470_v13 = vmul.f32 %v414_v10, %v414_v10 }
 0x109   :  { %v458_v14 = vrot.slane %v457_v12, 4  ;;  %v473_v15 = vadd.f32 %v472_v11, %v470_v13 }
 0x10b   :  { %v459_v16 = vadd.f32 %v458_v14, %v457_v12  ;;  %v474_v17 = vrot.slane %v473_v15, 4 }
 0x10d   :  { %v460_v18 = vrot.slane %v459_v16, 2  ;;  %v475_v19 = vadd.f32 %v474_v17, %v473_v15 }
 0x10f   :  { %v461_v20 = vadd.f32 %v460_v18, %v459_v16  ;;  %v476_v21 = vrot.slane %v475_v19, 2 }
 0x111   :  { %v462_v22 = vrot.slane %v461_v20, 1  ;;  %v477_v23 = vadd.f32 %v476_v21, %v475_v19 }
 0x113   :  { %v463_v25 = vadd.f32 %v462_v22, %v461_v20  ;;  %v478_v26 = vrot.slane %v477_v23, 1 }
 0x115   :  { %v464_v28 = vadd.f32 %v463_v25, %v454_v24  ;;  %v479_v29 = vadd.f32 %v478_v26, %v477_v23 }
 0x117   :  { %465 = vst [vmem:[%s813_s3] sm:$0x1] %v464_v28  ;;  %v480_v30 = vadd.f32 %v479_v29, %v466_v27 }
 0x119   :  { %481 = vst [vmem:[%s814_s4] sm:$0x1] %v480_v30 }

// kernel: discriminator_forward.15
= control target key start
LH: loop header
LB: loop body
LE: loop exit
PB: predicated region body
PF: predicated region fallthrough
CT: control target
= control target key end

     0   :  { %v28_v0 = vlaneseq  ;;  %vm123_vm0 = vcmask 7168   ;;  %s166_s1 = inlined_call_operand.vmem [shape: bf16[1,1024], index: 1, kind: input, shape index: {}]   ;;  %s167_s0 = inlined_call_operand.vmem [shape: bf16[8,1024], index: 0, kind: input, shape index: {}]   ;;  %s168_s2 = inlined_call_operand.vmem [shape: f32[8,1], index: 2, kind: output, shape index: {}]  }
   0x1   :  { %v23_v1 = vld [vmem:[%s166_s1] sm:$0xff]  ;;  %v12_v3 = vld [vmem:[%s167_s0 + $0x8] sm:$0xff]  ;;  %v13_v14 = vld [vmem:[%s167_s0 + $0x10] sm:$0xff] }
   0x2   :  { %v11_v2 = vld [vmem:[%s167_s0] sm:$0xff]  ;;  %v24_v4 = vunpack.c.l.bf16 %v23_v1  ;;  %v29_v5 = vshrl.u32 %v28_v0, 7  ;;  %v25_v6 = vunpack.c.h.bf16 %v23_v1  ;;  %v17_v13 = vunpack.c.l.bf16 %v12_v3  ;;  %v14_v32 = vld [vmem:[%s167_s0 + $0x18] sm:$0xff] }
   0x3   :  { %v15_v11 = vunpack.c.l.bf16 %v11_v2  ;;  %v16_v12 = vunpack.c.h.bf16 %v11_v2  ;;  %v18_v19 = vunpack.c.h.bf16 %v12_v3  ;;  %v19_v26 = vunpack.c.l.bf16 %v13_v14 }
   0x4   :  { %v30_v7 = vsub.s32 0, %v29_v5  ;;  %v34_v8 = vsub.s32 2, %v29_v5  ;;  %v38_v9 = vsub.s32 4, %v29_v5  ;;  %v42_v10 = vsub.s32 6, %v29_v5 }
   0x5   :  { %v20_v33 = vunpack.c.h.bf16 %v13_v14  ;;  %v21_v38 = vunpack.c.l.bf16 %v14_v32  ;;  %v22_v42 = vunpack.c.h.bf16 %v14_v32 }
   0x6   :  { %v31_v15 = vrot.slane %v24_v4, %v30_v7  ;;  %v35_v16 = vrot.slane %v24_v4, %v34_v8  ;;  %v39_v17 = vrot.slane %v24_v4, %v38_v9  ;;  %v43_v18 = vrot.slane %v24_v4, %v42_v10 }
   0x7   :  { %v47_v20 = vrot.slane %v25_v6, %v30_v7  ;;  %v51_v21 = vrot.slane %v25_v6, %v34_v8  ;;  %v55_v27 = vrot.slane %v25_v6, %v38_v9  ;;  %v59_v34 = vrot.slane %v25_v6, %v42_v10 }
   0x8   :  { %v71_v22 = vrot.slane %v31_v15, %v30_v7  ;;  %v75_v23 = vrot.slane %v35_v16, %v30_v7  ;;  %v79_v24 = vrot.slane %v39_v17, %v30_v7  ;;  %v83_v25 = vrot.slane %v43_v18, %v30_v7 }
   0x9   :  { %v87_v28 = vrot.slane %v47_v20, %v30_v7  ;;  %v91_v35 = vrot.slane %v51_v21, %v30_v7  ;;  %v95_v39 = vrot.slane %v55_v27, %v30_v7  ;;  %v99_v43 = vrot.slane %v59_v34, %v30_v7 }
   0xa   :  { %v100_v29 = vmul.f32 %v71_v22, %v15_v11  ;;  %v101_v30 = vmul.f32 %v75_v23, %v16_v12  ;;  %v102_v31 = vmul.f32 %v79_v24, %v17_v13  ;;  %v103_v36 = vmul.f32 %v83_v25, %v18_v19 }
   0xb   :  { %v104_v40 = vmul.f32 %v87_v28, %v19_v26  ;;  %v105_v44 = vmul.f32 %v91_v35, %v20_v33  ;;  %v106_v46 = vmul.f32 %v95_v39, %v21_v38  ;;  %v107_v48 = vmul.f32 %v99_v43, %v22_v42 }
   0xc   :  { %v108_v37 = vadd.f32 %v101_v30, %v100_v29 }
   0xe   :  { %v109_v41 = vadd.f32 %v108_v37, %v102_v31 }
  0x10   :  { %v110_v45 = vadd.f32 %v109_v41, %v103_v36 }
  0x12   :  { %v111_v47 = vadd.f32 %v110_v45, %v104_v40 }
  0x14   :  { %v112_v49 = vadd.f32 %v111_v47, %v105_v44 }
  0x16   :  { %v113_v50 = vadd.f32 %v112_v49, %v106_v46 }
  0x18   :  { %v114_v51 = vadd.f32 %v113_v50, %v107_v48 }
  0x1a   :  { %115 = vadd.xlane.f32.xlu0 %v114_v51 }
  0xa7   :  { %v116_v52 = vpop.xlane.xlu0 %115 }
  0xa8   :  { %v117_v53 = vsub.f32 0.0, %v116_v52 }
  0xaa   :  { %v118_v54 = vmul.f32 1.442695, %v117_v53 }
  0xac   :  { %129 = vpow2.f32 %v118_v54 }
  0xb6   :  { %v130_v55 = vpop.eup %129 }
  0xb7   :  { %v120_v56 = vadd.f32 1.0, %v130_v55 }
  0xb9   :  { %131 = vrcp.f32 %v120_v56 }
  0xc3   :  { %v132_v57 = vpop.eup %131 }
  0xc4   :  { %124 = vst.msk [vmem:[%s168_s2] sm:$0xff] %vm123_vm0, %v132_v57 }

</bundles_post_ra>
